<compile_context>
chip_gen: v5e
topology: v5e:2x2
jax: 0.10.0
libtpu: 0.0.40
codegen_flags: <defaults>
</compile_context>

<pallas_src>
import functools
import numpy as np

import jax
import jax.numpy as jnp
from jax import lax
from jax.experimental import pallas as pl
from jax.experimental.pallas import tpu as pltpu


# ---------------------------------------------------------------------------
# shared math helpers (pure jnp -> usable both inside the kernel and in the ref)
# ---------------------------------------------------------------------------
def _layernorm(v, gamma, beta, eps=1e-5):
    mean = jnp.mean(v, axis=-1, keepdims=True)
    var = jnp.mean((v - mean) ** 2, axis=-1, keepdims=True)
    return (v - mean) * lax.rsqrt(var + eps) * gamma + beta


# ---------------------------------------------------------------------------
# Single fused kernel: ONE grid step = the whole [B, N, T, C] tensor
# ---------------------------------------------------------------------------
def _temfem_kernel(x_ref, emb_ref, wqkv_ref, wo_ref,
                   ff_w1_ref, ff_b1_ref, ff_w2_ref,
                   vec_ref, u1_ref, u2_ref, tt_ref, wc_ref,
                   out_ref, *, heads):
    B, N, T, C = x_ref.shape
    BN = B * N
    M = BN * T                                      # 64 rows for every matmul
    d = C // heads
    scale = 1.0 / float(np.sqrt(d))

    vec = vec_ref[...]                              # [10, C] packed small operands
    bo, g1, b1 = vec[0:1], vec[1:2], vec[2:3]
    bff2, g2, b2 = vec[3:4], vec[4:5], vec[5:6]
    u3, g3, b3, bc = vec[6:7], vec[7:8], vec[8:9], vec[9:10]

    # ---------------- stage 1: TTransformer block + residual -----------------
    x4 = x_ref[...]                                 # [B, N, T, C]
    q4 = x4 + emb_ref[...]                          # temporal embedding (bcast B, N)
    q_flat = q4.reshape(M, C)                       # tile-aligned major reshape
    x_flat = x4.reshape(M, C)

    # fused Q|K|V projection: one [M, C] @ [C, 3C] matmul
    qkv = jnp.dot(q_flat, wqkv_ref[...], preferred_element_type=jnp.float32)
    wo = wo_ref[...]                                # load once, slice sublanes below

    att_out = None
    for h in range(heads):                          # static loop; batched over B*N inside
        Qh = qkv[:, h * d:(h + 1) * d].reshape(BN, T, d)
        Kh = qkv[:, C + h * d:C + (h + 1) * d].reshape(BN, T, d)
        Vh = qkv[:, 2 * C + h * d:2 * C + (h + 1) * d].reshape(BN, T, d)
        s = jnp.einsum('gtd,gsd->gts', Qh, Kh,
                       preferred_element_type=jnp.float32) * scale       # [BN, T, T]
        s = s - jnp.max(s, axis=-1, keepdims=True)
        p = jnp.exp(s)
        p = p * pl.reciprocal(jnp.sum(p, axis=-1, keepdims=True), approx=True)
        ctx_h = jnp.einsum('gts,gsd->gtd', p, Vh,
                           preferred_element_type=jnp.float32)            # [BN, T, d]
        # fc_out folded in: concat(ctx_h) @ Wo == sum_h ctx_h @ Wo[h*d:(h+1)*d]
        contrib = jnp.dot(ctx_h.reshape(M, d), wo[h * d:(h + 1) * d, :],
                          preferred_element_type=jnp.float32)             # [M, C]
        att_out = contrib if att_out is None else att_out + contrib
    att_out = att_out + bo

    x1 = _layernorm(att_out + q_flat, g1, b1)
    ff = jnp.maximum(
        jnp.dot(x1, ff_w1_ref[...], preferred_element_type=jnp.float32) + ff_b1_ref[...],
        0.0)
    ff = jnp.dot(ff, ff_w2_ref[...], preferred_element_type=jnp.float32) + bff2
    x2_flat = _layernorm(ff + x1, g2, b2) + x_flat   # TemFEM residual uses ORIGINAL x
    x2_bn = x2_flat.reshape(BN, T, C)
    x2_4d = x2_flat.reshape(B, N, T, C)

    # ---------------- stage 2: bilinear temporal attention -> [B, T, T] ------
    # lhs1[b, t, c] = sum_n U1[n] * x2[b, n, t, c]  (N scalar-broadcast FMAs)
    lhs1 = u1_ref[0, 0] * x2_4d[:, 0]
    for n in range(1, N):
        lhs1 = lhs1 + u1_ref[0, n] * x2_4d[:, n]                          # [B, T, C]
    lhs = jnp.dot(lhs1.reshape(B * T, C), u2_ref[...],
                  preferred_element_type=jnp.float32).reshape(B, T, N)    # [B, T, N]
    rhs = jnp.sum(x2_4d * u3, axis=-1)                                    # [B, N, T]
    product = jnp.einsum('btn,bns->bts', lhs, rhs,
                         preferred_element_type=jnp.float32)              # [B, T, T]
    # sigmoid via the EUP: sigmoid(v) = 0.5*(1 + tanh(0.5*v))  (exact identity)
    sig = 0.5 * (1.0 + jnp.tanh(0.5 * (product + tt_ref[0])))             # + be
    ve_b = jnp.broadcast_to(tt_ref[1], (B, T, T))    # one-off 0.5 KiB broadcast
    E = jnp.einsum('bts,bsr->btr', ve_b, sig,
                   preferred_element_type=jnp.float32)                    # Ve @ sig
    # F.softmax(E, dim=1)
    E = E - jnp.max(E, axis=1, keepdims=True)
    e = jnp.exp(E)
    att = e * pl.reciprocal(jnp.sum(e, axis=1, keepdims=True), approx=True)  # [B, T, T]

    # ------- stage 3: apply attention + LayerNorm + conv(3,1) + ReLU ---------
    # z[b,n,t,c] = sum_s att[b,s,t] * x2[b,n,s,c] + x2[b,n,t,c]
    attT = jnp.swapaxes(att, 1, 2)                                        # [B, T, T]
    attT_bn = jnp.broadcast_to(attT[:, None], (B, N, T, T)).reshape(BN, T, T)
    z = jnp.einsum('gts,gsc->gtc', attT_bn, x2_bn,
                   preferred_element_type=jnp.float32) + x2_bn            # [BN, T, C]
    z = _layernorm(z, g3, b3)

    # temporal conv, kernel 3 over T (zero padded): three accumulating matmuls
    # on shifted copies (T-axis / sublane shifts only — no feature-axis concat).
    zero = jnp.zeros((BN, 1, C), dtype=z.dtype)
    prev = jnp.concatenate([zero, z[:, :-1, :]], axis=1)                  # z[t-1]
    nxt = jnp.concatenate([z[:, 1:, :], zero], axis=1)                    # z[t+1]
    out = (jnp.dot(prev.reshape(M, C), wc_ref[0], preferred_element_type=jnp.float32)
           + jnp.dot(z.reshape(M, C), wc_ref[1], preferred_element_type=jnp.float32)
           + jnp.dot(nxt.reshape(M, C), wc_ref[2], preferred_element_type=jnp.float32)
           + bc)
    out_ref[...] = jnp.maximum(out, 0.0).reshape(B, N, T, C)


# ---------------------------------------------------------------------------
# Wrapper: a single pallas_call, single grid step
# ---------------------------------------------------------------------------
def temfem_forward(x, params, heads):
    B, N, T, C = x.shape
    assert C % heads == 0
    C4 = params["ff_w1"].shape[1]
    f32 = jnp.float32

    # wrapper-side layout plumbing (packing only, no compute hoisting)
    wqkv = jnp.concatenate([params["wq"], params["wk"], params["wv"]], axis=1)  # [C, 3C]
    vec = jnp.concatenate([params["bo"], params["ln1_g"], params["ln1_b"],
                           params["ff_b2"], params["ln2_g"], params["ln2_b"],
                           params["u3"], params["ln3_g"], params["ln3_b"],
                           params["conv_b"]], axis=0)                           # [10, C]
    ttpack = jnp.stack([params["be"], params["ve"]], axis=0)                    # [2, T, T]

    # Every BlockSpec uses FULL array extents for its last two dims, so the
    # (8, 128) tiling rule is trivially satisfied.  Constant index maps keep
    # all operands VMEM-resident; total footprint is ~100 KiB.
    full = lambda shape: pl.BlockSpec(shape, lambda i: (0,) * len(shape))

    return pl.pallas_call(
        functools.partial(_temfem_kernel, heads=heads),
        out_shape=jax.ShapeDtypeStruct((B, N, T, C), f32),
        grid=(1,),                           # single step: launch-latency bound kernel
        in_specs=[
            full((B, N, T, C)),              # x (whole tensor)
            full((T, C)),                    # temporal embedding
            full((C, 3 * C)),                # fused Wq|Wk|Wv
            full((C, C)),                    # fc_out weight
            full((C, C4)),                   # FFN lin1 weight
            full((1, C4)),                   # FFN lin1 bias
            full((C4, C)),                   # FFN lin2 weight
            full((10, C)),                   # packed [1,C] operands
            pl.BlockSpec((1, N), lambda i: (0, 0),
                         memory_space=pltpu.MemorySpace.SMEM),   # U1 scalars
            full((C, N)),                    # U2
            full((2, T, T)),                 # be, Ve
            full((3, C, C)),                 # conv weight [k, Cin, Cout]
        ],
        out_specs=full((B, N, T, C)),
        compiler_params=pltpu.CompilerParams(dimension_semantics=("arbitrary",)),
    )(x, params["emb"], wqkv, params["wo"],
      params["ff_w1"], params["ff_b1"], params["ff_w2"],
      vec, params["u1"], params["u2"], ttpack, params["conv_w"])


# ---------------------------------------------------------------------------
# Deterministic parameter init (shapes follow the module's __init__)
# ---------------------------------------------------------------------------
def init_params(key, C, N, T, heads, forward_expansion=4):
    ks = jax.random.split(key, 20)
    nrm = lambda k, shape, s: (s * jax.random.normal(k, shape)).astype(jnp.float32)
    C4 = forward_expansion * C
    return {
        "emb": nrm(ks[0], (T, C), 1.0),                       # temporal_embedding
        # linear weights stored in math orientation [in, out]
        "wq": nrm(ks[1], (C, C), 1.0 / np.sqrt(C)),
        "wk": nrm(ks[2], (C, C), 1.0 / np.sqrt(C)),
        "wv": nrm(ks[3], (C, C), 1.0 / np.sqrt(C)),
        "wo": nrm(ks[4], (C, C), 1.0 / np.sqrt(C)),
        "bo": nrm(ks[5], (1, C), 0.05),
        "ln1_g": jnp.ones((1, C), jnp.float32),
        "ln1_b": jnp.zeros((1, C), jnp.float32),
        "ff_w1": nrm(ks[6], (C, C4), 1.0 / np.sqrt(C)),
        "ff_b1": nrm(ks[7], (1, C4), 0.05),
        "ff_w2": nrm(ks[8], (C4, C), 1.0 / np.sqrt(C4)),
        "ff_b2": nrm(ks[9], (1, C), 0.05),
        "ln2_g": jnp.ones((1, C), jnp.float32),
        "ln2_b": jnp.zeros((1, C), jnp.float32),
        # Temporal_Attention_layer (torch.randn init)
        "u1": nrm(ks[10], (1, N), 1.0),
        "u2": nrm(ks[11], (C, N), 1.0),
        "u3": nrm(ks[12], (1, C), 1.0),
        "be": nrm(ks[13], (T, T), 1.0),
        "ve": nrm(ks[14], (T, T), 1.0),
        # TemFEM norm1
        "ln3_g": jnp.ones((1, C), jnp.float32),
        "ln3_b": jnp.zeros((1, C), jnp.float32),
        # Conv2d(C, C, kernel=(3,1)): stored as [k, Cin, Cout]
        "conv_w": nrm(ks[15], (3, C, C), 1.0 / np.sqrt(3 * C)),
        "conv_b": nrm(ks[16], (1, C), 0.05),
    }


# ---------------------------------------------------------------------------
# Pure-JAX reference (mirrors the PyTorch code structure)
# ---------------------------------------------------------------------------
def temfem_ref(x, params, heads):
    B, N, T, C = x.shape
    d = C // heads
    lin = lambda v, w, b=None: (jnp.einsum('...i,ij->...j', v, w)
                                + (0.0 if b is None else b[0]))
    q = x + params["emb"]
    Q = lin(q, params["wq"]).reshape(B, N, T, heads, d).transpose(0, 3, 1, 2, 4)
    K = lin(q, params["wk"]).reshape(B, N, T, heads, d).transpose(0, 3, 1, 2, 4)
    V = lin(q, params["wv"]).reshape(B, N, T, heads, d).transpose(0, 3, 1, 2, 4)
    scores = jnp.einsum('bhntd,bhnsd->bhnts', Q, K) / np.sqrt(d)
    attn = jax.nn.softmax(scores, axis=-1)
    ctx = jnp.einsum('bhnts,bhnsd->bhntd', attn, V)
    ctx = ctx.transpose(0, 2, 3, 1, 4).reshape(B, N, T, C)
    att_out = lin(ctx, params["wo"], params["bo"])
    x1 = _layernorm(att_out + q, params["ln1_g"][0], params["ln1_b"][0])
    ff = jax.nn.relu(lin(x1, params["ff_w1"], params["ff_b1"]))
    ff = lin(ff, params["ff_w2"], params["ff_b2"])
    x2 = _layernorm(ff + x1, params["ln2_g"][0], params["ln2_b"][0]) + x

    y = x2.transpose(0, 1, 3, 2)                                   # [B, N, C, T]
    lhs = jnp.einsum('btcn,n->btc', y.transpose(0, 3, 2, 1), params["u1"][0])
    lhs = jnp.einsum('btc,cn->btn', lhs, params["u2"])
    rhs = jnp.einsum('c,bnct->bnt', params["u3"][0], y)
    product = jnp.einsum('btn,bns->bts', lhs, rhs)
    E = jnp.einsum('ts,bsr->btr', params["ve"],
                   jax.nn.sigmoid(product + params["be"][None]))
    t_att = jax.nn.softmax(E, axis=1)

    x_tat = jnp.matmul(x2.transpose(0, 1, 3, 2).reshape(B, N * C, T), t_att)
    x_tat = x_tat.reshape(B, N, C, T)
    x3 = _layernorm((x_tat + y).transpose(0, 1, 3, 2),
                    params["ln3_g"][0], params["ln3_b"][0])        # [B, N, T, C]

    x3p = x3.transpose(0, 3, 2, 1)                                 # [B, C, T, N]
    w_torch = jnp.transpose(params["conv_w"], (2, 1, 0))[:, :, :, None]  # OIHW
    conv = lax.conv_general_dilated(x3p, w_torch, (1, 1), ((1, 1), (0, 0)),
                                    dimension_numbers=('NCHW', 'OIHW', 'NCHW'))
    conv = conv + params["conv_b"][0][None, :, None, None]
    return jax.nn.relu(conv).transpose(0, 3, 2, 1)                 # [B, N, T, C]


# ---------------------------------------------------------------------------
if __name__ == "__main__":
    B, N, T, C, heads = 2, 4, 8, 32, 4          # time_num = T, num_nodes = N
    key = jax.random.PRNGKey(0)
    kx, kp = jax.random.split(key)
    x = jax.random.normal(kx, (B, N, T, C), dtype=jnp.float32)
    params = init_params(kp, C, N, T, heads)

    fwd = jax.jit(temfem_forward, static_argnames=("heads",))
    out = jax.block_until_ready(fwd(x, params, heads=heads))
    ref = jax.block_until_ready(temfem_ref(x, params, heads))

    assert out.shape == (B, N, T, C)
    assert np.all(np.isfinite(np.asarray(out)))
    err = float(np.max(np.abs(np.asarray(out) - np.asarray(ref))))
    assert np.allclose(np.asarray(out), np.asarray(ref), rtol=1e-1, atol=1e-1), (
        "max abs diff = %f" % err)
    print("KERNEL_OK")
</pallas_src>

<mosaic_0001>
module attributes {stable_mosaic.version = 11 : i64} {
  func.func @_temfem_kernel(%arg0: i32, %arg1: memref<2x4x8x32xf32, #tpu.memory_space<vmem>>, %arg2: memref<8x32xf32, #tpu.memory_space<vmem>>, %arg3: memref<32x96xf32, #tpu.memory_space<vmem>>, %arg4: memref<32x32xf32, #tpu.memory_space<vmem>>, %arg5: memref<32x128xf32, #tpu.memory_space<vmem>>, %arg6: memref<1x128xf32, #tpu.memory_space<vmem>>, %arg7: memref<128x32xf32, #tpu.memory_space<vmem>>, %arg8: memref<10x32xf32, #tpu.memory_space<vmem>>, %arg9: memref<1x4xf32, #tpu.memory_space<smem>>, %arg10: memref<32x4xf32, #tpu.memory_space<vmem>>, %arg11: memref<2x8x8xf32, #tpu.memory_space<vmem>>, %arg12: memref<3x32x32xf32, #tpu.memory_space<vmem>>, %arg13: memref<2x4x8x32xf32, #tpu.memory_space<vmem>>) attributes {dimension_semantics = [#tpu.dimension_semantics<arbitrary>], iteration_bounds = array<i64: 1>, scalar_prefetch = 0 : i64, scratch_operands = 0 : i64, tpu.core_type = #tpu.core_type<tc>, window_params = [{pipeline_mode = #tpu.pipeline_mode<synchronous>, transform_indices = @transform_0, window_bounds = array<i64: 2, 4, 8, 32>}, {pipeline_mode = #tpu.pipeline_mode<synchronous>, transform_indices = @transform_1, window_bounds = array<i64: 8, 32>}, {pipeline_mode = #tpu.pipeline_mode<synchronous>, transform_indices = @transform_2, window_bounds = array<i64: 32, 96>}, {pipeline_mode = #tpu.pipeline_mode<synchronous>, transform_indices = @transform_3, window_bounds = array<i64: 32, 32>}, {pipeline_mode = #tpu.pipeline_mode<synchronous>, transform_indices = @transform_4, window_bounds = array<i64: 32, 128>}, {pipeline_mode = #tpu.pipeline_mode<synchronous>, transform_indices = @transform_5, window_bounds = array<i64: 1, 128>}, {pipeline_mode = #tpu.pipeline_mode<synchronous>, transform_indices = @transform_6, window_bounds = array<i64: 128, 32>}, {pipeline_mode = #tpu.pipeline_mode<synchronous>, transform_indices = @transform_7, window_bounds = array<i64: 10, 32>}, {transform_indices = @transform_8, window_bounds = array<i64: 1, 4>}, {pipeline_mode = #tpu.pipeline_mode<synchronous>, transform_indices = @transform_9, window_bounds = array<i64: 32, 4>}, {pipeline_mode = #tpu.pipeline_mode<synchronous>, transform_indices = @transform_10, window_bounds = array<i64: 2, 8, 8>}, {pipeline_mode = #tpu.pipeline_mode<synchronous>, transform_indices = @transform_11, window_bounds = array<i64: 3, 32, 32>}, {pipeline_mode = #tpu.pipeline_mode<synchronous>, transform_indices = @transform_12, window_bounds = array<i64: 2, 4, 8, 32>}]} {
    %c0 = arith.constant 0 : index
    %c0_0 = arith.constant 0 : index
    %0 = vector.load %arg8[%c0, %c0_0] : memref<10x32xf32, #tpu.memory_space<vmem>>, vector<10x32xf32>
    %1 = vector.extract_strided_slice %0 {offsets = [0, 0], sizes = [1, 32], strides = [1, 1]} : vector<10x32xf32> to vector<1x32xf32>
    %2 = vector.extract_strided_slice %0 {offsets = [1, 0], sizes = [1, 32], strides = [1, 1]} : vector<10x32xf32> to vector<1x32xf32>
    %3 = vector.extract_strided_slice %0 {offsets = [2, 0], sizes = [1, 32], strides = [1, 1]} : vector<10x32xf32> to vector<1x32xf32>
    %4 = vector.extract_strided_slice %0 {offsets = [3, 0], sizes = [1, 32], strides = [1, 1]} : vector<10x32xf32> to vector<1x32xf32>
    %5 = vector.extract_strided_slice %0 {offsets = [4, 0], sizes = [1, 32], strides = [1, 1]} : vector<10x32xf32> to vector<1x32xf32>
    %6 = vector.extract_strided_slice %0 {offsets = [5, 0], sizes = [1, 32], strides = [1, 1]} : vector<10x32xf32> to vector<1x32xf32>
    %7 = vector.extract_strided_slice %0 {offsets = [6, 0], sizes = [1, 32], strides = [1, 1]} : vector<10x32xf32> to vector<1x32xf32>
    %8 = vector.extract_strided_slice %0 {offsets = [7, 0], sizes = [1, 32], strides = [1, 1]} : vector<10x32xf32> to vector<1x32xf32>
    %9 = vector.extract_strided_slice %0 {offsets = [8, 0], sizes = [1, 32], strides = [1, 1]} : vector<10x32xf32> to vector<1x32xf32>
    %10 = vector.extract_strided_slice %0 {offsets = [9, 0], sizes = [1, 32], strides = [1, 1]} : vector<10x32xf32> to vector<1x32xf32>
    %c0_1 = arith.constant 0 : index
    %c0_2 = arith.constant 0 : index
    %c0_3 = arith.constant 0 : index
    %c0_4 = arith.constant 0 : index
    %11 = vector.load %arg1[%c0_1, %c0_2, %c0_3, %c0_4] : memref<2x4x8x32xf32, #tpu.memory_space<vmem>>, vector<2x4x8x32xf32>
    %c0_5 = arith.constant 0 : index
    %c0_6 = arith.constant 0 : index
    %12 = vector.load %arg2[%c0_5, %c0_6] : memref<8x32xf32, #tpu.memory_space<vmem>>, vector<8x32xf32>
    %13 = vector.shape_cast %12 : vector<8x32xf32> to vector<1x1x8x32xf32>
    %14 = vector.broadcast %13 : vector<1x1x8x32xf32> to vector<2x4x8x32xf32>
    %15 = arith.addf %11, %14 : vector<2x4x8x32xf32>
    %16 = vector.shape_cast %15 : vector<2x4x8x32xf32> to vector<64x32xf32>
    %17 = vector.shape_cast %11 : vector<2x4x8x32xf32> to vector<64x32xf32>
    %c0_7 = arith.constant 0 : index
    %c0_8 = arith.constant 0 : index
    %18 = vector.load %arg3[%c0_7, %c0_8] : memref<32x96xf32, #tpu.memory_space<vmem>>, vector<32x96xf32>
    %cst = arith.constant dense<0.000000e+00> : vector<64x96xf32>
    %19 = tpu.matmul %16, %18, %cst {dimension_numbers = #tpu.dot_dimension_numbers<[1], [0], [0], [1], [0, 0, 1, 1], [], []>} : vector<64x32xf32>, vector<32x96xf32>, vector<64x96xf32> -> vector<64x96xf32>
    %c0_9 = arith.constant 0 : index
    %c0_10 = arith.constant 0 : index
    %20 = vector.load %arg4[%c0_9, %c0_10] : memref<32x32xf32, #tpu.memory_space<vmem>>, vector<32x32xf32>
    %21 = vector.extract_strided_slice %19 {offsets = [0, 0], sizes = [64, 8], strides = [1, 1]} : vector<64x96xf32> to vector<64x8xf32>
    %22 = vector.shape_cast %21 : vector<64x8xf32> to vector<8x8x8xf32>
    %23 = vector.extract_strided_slice %19 {offsets = [0, 32], sizes = [64, 8], strides = [1, 1]} : vector<64x96xf32> to vector<64x8xf32>
    %24 = vector.shape_cast %23 : vector<64x8xf32> to vector<8x8x8xf32>
    %25 = vector.extract_strided_slice %19 {offsets = [0, 64], sizes = [64, 8], strides = [1, 1]} : vector<64x96xf32> to vector<64x8xf32>
    %26 = vector.shape_cast %25 : vector<64x8xf32> to vector<8x8x8xf32>
    "tpu.trace_start"() <{level = 10 : i32, message = "gtd,gsd->gts"}> : () -> ()
    %cst_11 = arith.constant dense<0.000000e+00> : vector<8x8x8xf32>
    %27 = tpu.matmul %22, %24, %cst_11 {dimension_numbers = #tpu.dot_dimension_numbers<[2], [2], [1], [1], [0, 0, 0, 1, 1, 1], [0], [0]>} : vector<8x8x8xf32>, vector<8x8x8xf32>, vector<8x8x8xf32> -> vector<8x8x8xf32>
    "tpu.trace_stop"() : () -> ()
    %cst_12 = arith.constant 0.353553385 : f32
    %28 = vector.broadcast %cst_12 : f32 to vector<8x8x8xf32>
    %29 = arith.mulf %27, %28 : vector<8x8x8xf32>
    %cst_13 = arith.constant dense<0xFF800000> : vector<8x8xf32>
    %30 = vector.multi_reduction <maximumf>, %29, %cst_13 [2] : vector<8x8x8xf32> to vector<8x8xf32>
    %31 = vector.shape_cast %30 : vector<8x8xf32> to vector<8x8x1xf32>
    %32 = vector.broadcast %31 : vector<8x8x1xf32> to vector<8x8x8xf32>
    %33 = arith.subf %29, %32 : vector<8x8x8xf32>
    %34 = math.exp %33 : vector<8x8x8xf32>
    %cst_14 = arith.constant dense<0.000000e+00> : vector<8x8xf32>
    %35 = vector.multi_reduction <add>, %34, %cst_14 [2] : vector<8x8x8xf32> to vector<8x8xf32>
    %36 = vector.shape_cast %35 : vector<8x8xf32> to vector<8x8x1xf32>
    %37 = tpu.reciprocal %36 {approx = true} : vector<8x8x1xf32> -> vector<8x8x1xf32>
    %38 = vector.broadcast %37 : vector<8x8x1xf32> to vector<8x8x8xf32>
    %39 = arith.mulf %34, %38 : vector<8x8x8xf32>
    "tpu.trace_start"() <{level = 10 : i32, message = "gts,gsd->gtd"}> : () -> ()
    %cst_15 = arith.constant dense<0.000000e+00> : vector<8x8x8xf32>
    %40 = tpu.matmul %39, %26, %cst_15 {dimension_numbers = #tpu.dot_dimension_numbers<[2], [1], [1], [2], [0, 0, 0, 1, 1, 2], [0], [0]>} : vector<8x8x8xf32>, vector<8x8x8xf32>, vector<8x8x8xf32> -> vector<8x8x8xf32>
    "tpu.trace_stop"() : () -> ()
    %41 = vector.shape_cast %40 : vector<8x8x8xf32> to vector<64x8xf32>
    %42 = vector.extract_strided_slice %20 {offsets = [0, 0], sizes = [8, 32], strides = [1, 1]} : vector<32x32xf32> to vector<8x32xf32>
    %cst_16 = arith.constant dense<0.000000e+00> : vector<64x32xf32>
    %43 = tpu.matmul %41, %42, %cst_16 {dimension_numbers = #tpu.dot_dimension_numbers<[1], [0], [0], [1], [0, 0, 1, 1], [], []>} : vector<64x8xf32>, vector<8x32xf32>, vector<64x32xf32> -> vector<64x32xf32>
    %44 = vector.extract_strided_slice %19 {offsets = [0, 8], sizes = [64, 8], strides = [1, 1]} : vector<64x96xf32> to vector<64x8xf32>
    %45 = vector.shape_cast %44 : vector<64x8xf32> to vector<8x8x8xf32>
    %46 = vector.extract_strided_slice %19 {offsets = [0, 40], sizes = [64, 8], strides = [1, 1]} : vector<64x96xf32> to vector<64x8xf32>
    %47 = vector.shape_cast %46 : vector<64x8xf32> to vector<8x8x8xf32>
    %48 = vector.extract_strided_slice %19 {offsets = [0, 72], sizes = [64, 8], strides = [1, 1]} : vector<64x96xf32> to vector<64x8xf32>
    %49 = vector.shape_cast %48 : vector<64x8xf32> to vector<8x8x8xf32>
    "tpu.trace_start"() <{level = 10 : i32, message = "gtd,gsd->gts"}> : () -> ()
    %cst_17 = arith.constant dense<0.000000e+00> : vector<8x8x8xf32>
    %50 = tpu.matmul %45, %47, %cst_17 {dimension_numbers = #tpu.dot_dimension_numbers<[2], [2], [1], [1], [0, 0, 0, 1, 1, 1], [0], [0]>} : vector<8x8x8xf32>, vector<8x8x8xf32>, vector<8x8x8xf32> -> vector<8x8x8xf32>
    "tpu.trace_stop"() : () -> ()
    %cst_18 = arith.constant 0.353553385 : f32
    %51 = vector.broadcast %cst_18 : f32 to vector<8x8x8xf32>
    %52 = arith.mulf %50, %51 : vector<8x8x8xf32>
    %cst_19 = arith.constant dense<0xFF800000> : vector<8x8xf32>
    %53 = vector.multi_reduction <maximumf>, %52, %cst_19 [2] : vector<8x8x8xf32> to vector<8x8xf32>
    %54 = vector.shape_cast %53 : vector<8x8xf32> to vector<8x8x1xf32>
    %55 = vector.broadcast %54 : vector<8x8x1xf32> to vector<8x8x8xf32>
    %56 = arith.subf %52, %55 : vector<8x8x8xf32>
    %57 = math.exp %56 : vector<8x8x8xf32>
    %cst_20 = arith.constant dense<0.000000e+00> : vector<8x8xf32>
    %58 = vector.multi_reduction <add>, %57, %cst_20 [2] : vector<8x8x8xf32> to vector<8x8xf32>
    %59 = vector.shape_cast %58 : vector<8x8xf32> to vector<8x8x1xf32>
    %60 = tpu.reciprocal %59 {approx = true} : vector<8x8x1xf32> -> vector<8x8x1xf32>
    %61 = vector.broadcast %60 : vector<8x8x1xf32> to vector<8x8x8xf32>
    %62 = arith.mulf %57, %61 : vector<8x8x8xf32>
    "tpu.trace_start"() <{level = 10 : i32, message = "gts,gsd->gtd"}> : () -> ()
    %cst_21 = arith.constant dense<0.000000e+00> : vector<8x8x8xf32>
    %63 = tpu.matmul %62, %49, %cst_21 {dimension_numbers = #tpu.dot_dimension_numbers<[2], [1], [1], [2], [0, 0, 0, 1, 1, 2], [0], [0]>} : vector<8x8x8xf32>, vector<8x8x8xf32>, vector<8x8x8xf32> -> vector<8x8x8xf32>
    "tpu.trace_stop"() : () -> ()
    %64 = vector.shape_cast %63 : vector<8x8x8xf32> to vector<64x8xf32>
    %65 = vector.extract_strided_slice %20 {offsets = [8, 0], sizes = [8, 32], strides = [1, 1]} : vector<32x32xf32> to vector<8x32xf32>
    %cst_22 = arith.constant dense<0.000000e+00> : vector<64x32xf32>
    %66 = tpu.matmul %64, %65, %cst_22 {dimension_numbers = #tpu.dot_dimension_numbers<[1], [0], [0], [1], [0, 0, 1, 1], [], []>} : vector<64x8xf32>, vector<8x32xf32>, vector<64x32xf32> -> vector<64x32xf32>
    %67 = arith.addf %43, %66 : vector<64x32xf32>
    %68 = vector.extract_strided_slice %19 {offsets = [0, 16], sizes = [64, 8], strides = [1, 1]} : vector<64x96xf32> to vector<64x8xf32>
    %69 = vector.shape_cast %68 : vector<64x8xf32> to vector<8x8x8xf32>
    %70 = vector.extract_strided_slice %19 {offsets = [0, 48], sizes = [64, 8], strides = [1, 1]} : vector<64x96xf32> to vector<64x8xf32>
    %71 = vector.shape_cast %70 : vector<64x8xf32> to vector<8x8x8xf32>
    %72 = vector.extract_strided_slice %19 {offsets = [0, 80], sizes = [64, 8], strides = [1, 1]} : vector<64x96xf32> to vector<64x8xf32>
    %73 = vector.shape_cast %72 : vector<64x8xf32> to vector<8x8x8xf32>
    "tpu.trace_start"() <{level = 10 : i32, message = "gtd,gsd->gts"}> : () -> ()
    %cst_23 = arith.constant dense<0.000000e+00> : vector<8x8x8xf32>
    %74 = tpu.matmul %69, %71, %cst_23 {dimension_numbers = #tpu.dot_dimension_numbers<[2], [2], [1], [1], [0, 0, 0, 1, 1, 1], [0], [0]>} : vector<8x8x8xf32>, vector<8x8x8xf32>, vector<8x8x8xf32> -> vector<8x8x8xf32>
    "tpu.trace_stop"() : () -> ()
    %cst_24 = arith.constant 0.353553385 : f32
    %75 = vector.broadcast %cst_24 : f32 to vector<8x8x8xf32>
    %76 = arith.mulf %74, %75 : vector<8x8x8xf32>
    %cst_25 = arith.constant dense<0xFF800000> : vector<8x8xf32>
    %77 = vector.multi_reduction <maximumf>, %76, %cst_25 [2] : vector<8x8x8xf32> to vector<8x8xf32>
    %78 = vector.shape_cast %77 : vector<8x8xf32> to vector<8x8x1xf32>
    %79 = vector.broadcast %78 : vector<8x8x1xf32> to vector<8x8x8xf32>
    %80 = arith.subf %76, %79 : vector<8x8x8xf32>
    %81 = math.exp %80 : vector<8x8x8xf32>
    %cst_26 = arith.constant dense<0.000000e+00> : vector<8x8xf32>
    %82 = vector.multi_reduction <add>, %81, %cst_26 [2] : vector<8x8x8xf32> to vector<8x8xf32>
    %83 = vector.shape_cast %82 : vector<8x8xf32> to vector<8x8x1xf32>
    %84 = tpu.reciprocal %83 {approx = true} : vector<8x8x1xf32> -> vector<8x8x1xf32>
    %85 = vector.broadcast %84 : vector<8x8x1xf32> to vector<8x8x8xf32>
    %86 = arith.mulf %81, %85 : vector<8x8x8xf32>
    "tpu.trace_start"() <{level = 10 : i32, message = "gts,gsd->gtd"}> : () -> ()
    %cst_27 = arith.constant dense<0.000000e+00> : vector<8x8x8xf32>
    %87 = tpu.matmul %86, %73, %cst_27 {dimension_numbers = #tpu.dot_dimension_numbers<[2], [1], [1], [2], [0, 0, 0, 1, 1, 2], [0], [0]>} : vector<8x8x8xf32>, vector<8x8x8xf32>, vector<8x8x8xf32> -> vector<8x8x8xf32>
    "tpu.trace_stop"() : () -> ()
    %88 = vector.shape_cast %87 : vector<8x8x8xf32> to vector<64x8xf32>
    %89 = vector.extract_strided_slice %20 {offsets = [16, 0], sizes = [8, 32], strides = [1, 1]} : vector<32x32xf32> to vector<8x32xf32>
    %cst_28 = arith.constant dense<0.000000e+00> : vector<64x32xf32>
    %90 = tpu.matmul %88, %89, %cst_28 {dimension_numbers = #tpu.dot_dimension_numbers<[1], [0], [0], [1], [0, 0, 1, 1], [], []>} : vector<64x8xf32>, vector<8x32xf32>, vector<64x32xf32> -> vector<64x32xf32>
    %91 = arith.addf %67, %90 : vector<64x32xf32>
    %92 = vector.extract_strided_slice %19 {offsets = [0, 24], sizes = [64, 8], strides = [1, 1]} : vector<64x96xf32> to vector<64x8xf32>
    %93 = vector.shape_cast %92 : vector<64x8xf32> to vector<8x8x8xf32>
    %94 = vector.extract_strided_slice %19 {offsets = [0, 56], sizes = [64, 8], strides = [1, 1]} : vector<64x96xf32> to vector<64x8xf32>
    %95 = vector.shape_cast %94 : vector<64x8xf32> to vector<8x8x8xf32>
    %96 = vector.extract_strided_slice %19 {offsets = [0, 88], sizes = [64, 8], strides = [1, 1]} : vector<64x96xf32> to vector<64x8xf32>
    %97 = vector.shape_cast %96 : vector<64x8xf32> to vector<8x8x8xf32>
    "tpu.trace_start"() <{level = 10 : i32, message = "gtd,gsd->gts"}> : () -> ()
    %cst_29 = arith.constant dense<0.000000e+00> : vector<8x8x8xf32>
    %98 = tpu.matmul %93, %95, %cst_29 {dimension_numbers = #tpu.dot_dimension_numbers<[2], [2], [1], [1], [0, 0, 0, 1, 1, 1], [0], [0]>} : vector<8x8x8xf32>, vector<8x8x8xf32>, vector<8x8x8xf32> -> vector<8x8x8xf32>
    "tpu.trace_stop"() : () -> ()
    %cst_30 = arith.constant 0.353553385 : f32
    %99 = vector.broadcast %cst_30 : f32 to vector<8x8x8xf32>
    %100 = arith.mulf %98, %99 : vector<8x8x8xf32>
    %cst_31 = arith.constant dense<0xFF800000> : vector<8x8xf32>
    %101 = vector.multi_reduction <maximumf>, %100, %cst_31 [2] : vector<8x8x8xf32> to vector<8x8xf32>
    %102 = vector.shape_cast %101 : vector<8x8xf32> to vector<8x8x1xf32>
    %103 = vector.broadcast %102 : vector<8x8x1xf32> to vector<8x8x8xf32>
    %104 = arith.subf %100, %103 : vector<8x8x8xf32>
    %105 = math.exp %104 : vector<8x8x8xf32>
    %cst_32 = arith.constant dense<0.000000e+00> : vector<8x8xf32>
    %106 = vector.multi_reduction <add>, %105, %cst_32 [2] : vector<8x8x8xf32> to vector<8x8xf32>
    %107 = vector.shape_cast %106 : vector<8x8xf32> to vector<8x8x1xf32>
    %108 = tpu.reciprocal %107 {approx = true} : vector<8x8x1xf32> -> vector<8x8x1xf32>
    %109 = vector.broadcast %108 : vector<8x8x1xf32> to vector<8x8x8xf32>
    %110 = arith.mulf %105, %109 : vector<8x8x8xf32>
    "tpu.trace_start"() <{level = 10 : i32, message = "gts,gsd->gtd"}> : () -> ()
    %cst_33 = arith.constant dense<0.000000e+00> : vector<8x8x8xf32>
    %111 = tpu.matmul %110, %97, %cst_33 {dimension_numbers = #tpu.dot_dimension_numbers<[2], [1], [1], [2], [0, 0, 0, 1, 1, 2], [0], [0]>} : vector<8x8x8xf32>, vector<8x8x8xf32>, vector<8x8x8xf32> -> vector<8x8x8xf32>
    "tpu.trace_stop"() : () -> ()
    %112 = vector.shape_cast %111 : vector<8x8x8xf32> to vector<64x8xf32>
    %113 = vector.extract_strided_slice %20 {offsets = [24, 0], sizes = [8, 32], strides = [1, 1]} : vector<32x32xf32> to vector<8x32xf32>
    %cst_34 = arith.constant dense<0.000000e+00> : vector<64x32xf32>
    %114 = tpu.matmul %112, %113, %cst_34 {dimension_numbers = #tpu.dot_dimension_numbers<[1], [0], [0], [1], [0, 0, 1, 1], [], []>} : vector<64x8xf32>, vector<8x32xf32>, vector<64x32xf32> -> vector<64x32xf32>
    %115 = arith.addf %91, %114 : vector<64x32xf32>
    %116 = vector.broadcast %1 : vector<1x32xf32> to vector<64x32xf32>
    %117 = arith.addf %115, %116 : vector<64x32xf32>
    %118 = arith.addf %117, %16 : vector<64x32xf32>
    %cst_35 = arith.constant dense<0.000000e+00> : vector<64xf32>
    %119 = vector.multi_reduction <add>, %118, %cst_35 [1] : vector<64x32xf32> to vector<64xf32>
    %120 = vector.shape_cast %119 : vector<64xf32> to vector<64x1xf32>
    %cst_36 = arith.constant 3.200000e+01 : f32
    %121 = vector.broadcast %cst_36 : f32 to vector<64x1xf32>
    %122 = arith.divf %120, %121 : vector<64x1xf32>
    %123 = vector.broadcast %122 : vector<64x1xf32> to vector<64x32xf32>
    %124 = arith.subf %118, %123 : vector<64x32xf32>
    %125 = arith.mulf %124, %124 : vector<64x32xf32>
    %cst_37 = arith.constant dense<0.000000e+00> : vector<64xf32>
    %126 = vector.multi_reduction <add>, %125, %cst_37 [1] : vector<64x32xf32> to vector<64xf32>
    %127 = vector.shape_cast %126 : vector<64xf32> to vector<64x1xf32>
    %cst_38 = arith.constant 3.200000e+01 : f32
    %128 = vector.broadcast %cst_38 : f32 to vector<64x1xf32>
    %129 = arith.divf %127, %128 : vector<64x1xf32>
    %130 = vector.broadcast %122 : vector<64x1xf32> to vector<64x32xf32>
    %131 = arith.subf %118, %130 : vector<64x32xf32>
    %cst_39 = arith.constant 9.99999974E-6 : f32
    %132 = vector.broadcast %cst_39 : f32 to vector<64x1xf32>
    %133 = arith.addf %129, %132 : vector<64x1xf32>
    %134 = math.rsqrt %133 : vector<64x1xf32>
    %135 = vector.broadcast %134 : vector<64x1xf32> to vector<64x32xf32>
    %136 = arith.mulf %131, %135 : vector<64x32xf32>
    %137 = vector.broadcast %2 : vector<1x32xf32> to vector<64x32xf32>
    %138 = arith.mulf %136, %137 : vector<64x32xf32>
    %139 = vector.broadcast %3 : vector<1x32xf32> to vector<64x32xf32>
    %140 = arith.addf %138, %139 : vector<64x32xf32>
    %c0_40 = arith.constant 0 : index
    %c0_41 = arith.constant 0 : index
    %141 = vector.load %arg5[%c0_40, %c0_41] : memref<32x128xf32, #tpu.memory_space<vmem>>, vector<32x128xf32>
    %cst_42 = arith.constant dense<0.000000e+00> : vector<64x128xf32>
    %142 = tpu.matmul %140, %141, %cst_42 {dimension_numbers = #tpu.dot_dimension_numbers<[1], [0], [0], [1], [0, 0, 1, 1], [], []>} : vector<64x32xf32>, vector<32x128xf32>, vector<64x128xf32> -> vector<64x128xf32>
    %c0_43 = arith.constant 0 : index
    %c0_44 = arith.constant 0 : index
    %143 = vector.load %arg6[%c0_43, %c0_44] : memref<1x128xf32, #tpu.memory_space<vmem>>, vector<1x128xf32>
    %144 = vector.broadcast %143 : vector<1x128xf32> to vector<64x128xf32>
    %145 = arith.addf %142, %144 : vector<64x128xf32>
    %cst_45 = arith.constant 0.000000e+00 : f32
    %146 = vector.broadcast %cst_45 : f32 to vector<64x128xf32>
    %147 = arith.maximumf %145, %146 : vector<64x128xf32>
    %c0_46 = arith.constant 0 : index
    %c0_47 = arith.constant 0 : index
    %148 = vector.load %arg7[%c0_46, %c0_47] : memref<128x32xf32, #tpu.memory_space<vmem>>, vector<128x32xf32>
    %cst_48 = arith.constant dense<0.000000e+00> : vector<64x32xf32>
    %149 = tpu.matmul %147, %148, %cst_48 {dimension_numbers = #tpu.dot_dimension_numbers<[1], [0], [0], [1], [0, 0, 1, 1], [], []>} : vector<64x128xf32>, vector<128x32xf32>, vector<64x32xf32> -> vector<64x32xf32>
    %150 = vector.broadcast %4 : vector<1x32xf32> to vector<64x32xf32>
    %151 = arith.addf %149, %150 : vector<64x32xf32>
    %152 = arith.addf %151, %140 : vector<64x32xf32>
    %cst_49 = arith.constant dense<0.000000e+00> : vector<64xf32>
    %153 = vector.multi_reduction <add>, %152, %cst_49 [1] : vector<64x32xf32> to vector<64xf32>
    %154 = vector.shape_cast %153 : vector<64xf32> to vector<64x1xf32>
    %cst_50 = arith.constant 3.200000e+01 : f32
    %155 = vector.broadcast %cst_50 : f32 to vector<64x1xf32>
    %156 = arith.divf %154, %155 : vector<64x1xf32>
    %157 = vector.broadcast %156 : vector<64x1xf32> to vector<64x32xf32>
    %158 = arith.subf %152, %157 : vector<64x32xf32>
    %159 = arith.mulf %158, %158 : vector<64x32xf32>
    %cst_51 = arith.constant dense<0.000000e+00> : vector<64xf32>
    %160 = vector.multi_reduction <add>, %159, %cst_51 [1] : vector<64x32xf32> to vector<64xf32>
    %161 = vector.shape_cast %160 : vector<64xf32> to vector<64x1xf32>
    %cst_52 = arith.constant 3.200000e+01 : f32
    %162 = vector.broadcast %cst_52 : f32 to vector<64x1xf32>
    %163 = arith.divf %161, %162 : vector<64x1xf32>
    %164 = vector.broadcast %156 : vector<64x1xf32> to vector<64x32xf32>
    %165 = arith.subf %152, %164 : vector<64x32xf32>
    %cst_53 = arith.constant 9.99999974E-6 : f32
    %166 = vector.broadcast %cst_53 : f32 to vector<64x1xf32>
    %167 = arith.addf %163, %166 : vector<64x1xf32>
    %168 = math.rsqrt %167 : vector<64x1xf32>
    %169 = vector.broadcast %168 : vector<64x1xf32> to vector<64x32xf32>
    %170 = arith.mulf %165, %169 : vector<64x32xf32>
    %171 = vector.broadcast %5 : vector<1x32xf32> to vector<64x32xf32>
    %172 = arith.mulf %170, %171 : vector<64x32xf32>
    %173 = vector.broadcast %6 : vector<1x32xf32> to vector<64x32xf32>
    %174 = arith.addf %172, %173 : vector<64x32xf32>
    %175 = arith.addf %174, %17 : vector<64x32xf32>
    %176 = vector.shape_cast %175 : vector<64x32xf32> to vector<8x8x32xf32>
    %177 = vector.shape_cast %175 : vector<64x32xf32> to vector<2x4x8x32xf32>
    %c0_54 = arith.constant 0 : index
    %c0_55 = arith.constant 0 : index
    %178 = memref.load %arg9[%c0_54, %c0_55] : memref<1x4xf32, #tpu.memory_space<smem>>
    %179 = vector.extract_strided_slice %177 {offsets = [0, 0, 0, 0], sizes = [2, 1, 8, 32], strides = [1, 1, 1, 1]} : vector<2x4x8x32xf32> to vector<2x1x8x32xf32>
    %180 = vector.shape_cast %179 : vector<2x1x8x32xf32> to vector<2x8x32xf32>
    %181 = vector.broadcast %178 : f32 to vector<2x8x32xf32>
    %182 = arith.mulf %181, %180 : vector<2x8x32xf32>
    %c0_56 = arith.constant 0 : index
    %c1 = arith.constant 1 : index
    %183 = memref.load %arg9[%c0_56, %c1] : memref<1x4xf32, #tpu.memory_space<smem>>
    %184 = vector.extract_strided_slice %177 {offsets = [0, 1, 0, 0], sizes = [2, 1, 8, 32], strides = [1, 1, 1, 1]} : vector<2x4x8x32xf32> to vector<2x1x8x32xf32>
    %185 = vector.shape_cast %184 : vector<2x1x8x32xf32> to vector<2x8x32xf32>
    %186 = vector.broadcast %183 : f32 to vector<2x8x32xf32>
    %187 = arith.mulf %186, %185 : vector<2x8x32xf32>
    %188 = arith.addf %182, %187 : vector<2x8x32xf32>
    %c0_57 = arith.constant 0 : index
    %c2 = arith.constant 2 : index
    %189 = memref.load %arg9[%c0_57, %c2] : memref<1x4xf32, #tpu.memory_space<smem>>
    %190 = vector.extract_strided_slice %177 {offsets = [0, 2, 0, 0], sizes = [2, 1, 8, 32], strides = [1, 1, 1, 1]} : vector<2x4x8x32xf32> to vector<2x1x8x32xf32>
    %191 = vector.shape_cast %190 : vector<2x1x8x32xf32> to vector<2x8x32xf32>
    %192 = vector.broadcast %189 : f32 to vector<2x8x32xf32>
    %193 = arith.mulf %192, %191 : vector<2x8x32xf32>
    %194 = arith.addf %188, %193 : vector<2x8x32xf32>
    %c0_58 = arith.constant 0 : index
    %c3 = arith.constant 3 : index
    %195 = memref.load %arg9[%c0_58, %c3] : memref<1x4xf32, #tpu.memory_space<smem>>
    %196 = vector.extract_strided_slice %177 {offsets = [0, 3, 0, 0], sizes = [2, 1, 8, 32], strides = [1, 1, 1, 1]} : vector<2x4x8x32xf32> to vector<2x1x8x32xf32>
    %197 = vector.shape_cast %196 : vector<2x1x8x32xf32> to vector<2x8x32xf32>
    %198 = vector.broadcast %195 : f32 to vector<2x8x32xf32>
    %199 = arith.mulf %198, %197 : vector<2x8x32xf32>
    %200 = arith.addf %194, %199 : vector<2x8x32xf32>
    %201 = vector.shape_cast %200 : vector<2x8x32xf32> to vector<16x32xf32>
    %c0_59 = arith.constant 0 : index
    %c0_60 = arith.constant 0 : index
    %202 = vector.load %arg10[%c0_59, %c0_60] : memref<32x4xf32, #tpu.memory_space<vmem>>, vector<32x4xf32>
    %cst_61 = arith.constant dense<0.000000e+00> : vector<16x4xf32>
    %203 = tpu.matmul %201, %202, %cst_61 {dimension_numbers = #tpu.dot_dimension_numbers<[1], [0], [0], [1], [0, 0, 1, 1], [], []>} : vector<16x32xf32>, vector<32x4xf32>, vector<16x4xf32> -> vector<16x4xf32>
    %204 = vector.shape_cast %203 : vector<16x4xf32> to vector<2x8x4xf32>
    %205 = vector.shape_cast %7 : vector<1x32xf32> to vector<1x1x1x32xf32>
    %206 = vector.broadcast %205 : vector<1x1x1x32xf32> to vector<2x4x8x32xf32>
    %207 = arith.mulf %177, %206 : vector<2x4x8x32xf32>
    %cst_62 = arith.constant dense<0.000000e+00> : vector<2x4x8xf32>
    %208 = vector.multi_reduction <add>, %207, %cst_62 [3] : vector<2x4x8x32xf32> to vector<2x4x8xf32>
    "tpu.trace_start"() <{level = 10 : i32, message = "btn,bns->bts"}> : () -> ()
    %cst_63 = arith.constant dense<0.000000e+00> : vector<2x8x8xf32>
    %209 = tpu.matmul %204, %208, %cst_63 {dimension_numbers = #tpu.dot_dimension_numbers<[2], [1], [1], [2], [0, 0, 0, 1, 1, 2], [0], [0]>} : vector<2x8x4xf32>, vector<2x4x8xf32>, vector<2x8x8xf32> -> vector<2x8x8xf32>
    "tpu.trace_stop"() : () -> ()
    %c0_64 = arith.constant 0 : index
    %c0_65 = arith.constant 0 : index
    %c0_66 = arith.constant 0 : index
    %210 = vector.load %arg11[%c0_64, %c0_65, %c0_66] : memref<2x8x8xf32, #tpu.memory_space<vmem>>, vector<1x8x8xf32>
    %211 = vector.shape_cast %210 : vector<1x8x8xf32> to vector<8x8xf32>
    %212 = vector.shape_cast %211 : vector<8x8xf32> to vector<1x8x8xf32>
    %213 = vector.broadcast %212 : vector<1x8x8xf32> to vector<2x8x8xf32>
    %214 = arith.addf %209, %213 : vector<2x8x8xf32>
    %cst_67 = arith.constant 5.000000e-01 : f32
    %215 = vector.broadcast %cst_67 : f32 to vector<2x8x8xf32>
    %216 = arith.mulf %215, %214 : vector<2x8x8xf32>
    %217 = math.tanh %216 : vector<2x8x8xf32>
    %cst_68 = arith.constant 1.000000e+00 : f32
    %218 = vector.broadcast %cst_68 : f32 to vector<2x8x8xf32>
    %219 = arith.addf %218, %217 : vector<2x8x8xf32>
    %cst_69 = arith.constant 5.000000e-01 : f32
    %220 = vector.broadcast %cst_69 : f32 to vector<2x8x8xf32>
    %221 = arith.mulf %220, %219 : vector<2x8x8xf32>
    %c1_70 = arith.constant 1 : index
    %c0_71 = arith.constant 0 : index
    %c0_72 = arith.constant 0 : index
    %222 = vector.load %arg11[%c1_70, %c0_71, %c0_72] : memref<2x8x8xf32, #tpu.memory_space<vmem>>, vector<1x8x8xf32>
    %223 = vector.shape_cast %222 : vector<1x8x8xf32> to vector<8x8xf32>
    %224 = vector.shape_cast %223 : vector<8x8xf32> to vector<1x8x8xf32>
    %225 = vector.broadcast %224 : vector<1x8x8xf32> to vector<2x8x8xf32>
    "tpu.trace_start"() <{level = 10 : i32, message = "bts,bsr->btr"}> : () -> ()
    %cst_73 = arith.constant dense<0.000000e+00> : vector<2x8x8xf32>
    %226 = tpu.matmul %225, %221, %cst_73 {dimension_numbers = #tpu.dot_dimension_numbers<[2], [1], [1], [2], [0, 0, 0, 1, 1, 2], [0], [0]>} : vector<2x8x8xf32>, vector<2x8x8xf32>, vector<2x8x8xf32> -> vector<2x8x8xf32>
    "tpu.trace_stop"() : () -> ()
    %cst_74 = arith.constant dense<0xFF800000> : vector<2x8xf32>
    %227 = vector.multi_reduction <maximumf>, %226, %cst_74 [1] : vector<2x8x8xf32> to vector<2x8xf32>
    %228 = vector.shape_cast %227 : vector<2x8xf32> to vector<2x1x8xf32>
    %229 = vector.broadcast %228 : vector<2x1x8xf32> to vector<2x8x8xf32>
    %230 = arith.subf %226, %229 : vector<2x8x8xf32>
    %231 = math.exp %230 : vector<2x8x8xf32>
    %cst_75 = arith.constant dense<0.000000e+00> : vector<2x8xf32>
    %232 = vector.multi_reduction <add>, %231, %cst_75 [1] : vector<2x8x8xf32> to vector<2x8xf32>
    %233 = vector.shape_cast %232 : vector<2x8xf32> to vector<2x1x8xf32>
    %234 = tpu.reciprocal %233 {approx = true} : vector<2x1x8xf32> -> vector<2x1x8xf32>
    %235 = vector.broadcast %234 : vector<2x1x8xf32> to vector<2x8x8xf32>
    %236 = arith.mulf %231, %235 : vector<2x8x8xf32>
    %237 = tpu.transpose %236, [0, 2, 1] : vector<2x8x8xf32> -> vector<2x8x8xf32>
    %238 = vector.shape_cast %237 : vector<2x8x8xf32> to vector<2x1x8x8xf32>
    %239 = vector.shape_cast %238 : vector<2x1x8x8xf32> to vector<2x1x8x8xf32>
    %240 = vector.broadcast %239 : vector<2x1x8x8xf32> to vector<2x4x8x8xf32>
    %241 = vector.shape_cast %240 : vector<2x4x8x8xf32> to vector<8x8x8xf32>
    "tpu.trace_start"() <{level = 10 : i32, message = "gts,gsc->gtc"}> : () -> ()
    %cst_76 = arith.constant dense<0.000000e+00> : vector<8x8x32xf32>
    %242 = tpu.matmul %241, %176, %cst_76 {dimension_numbers = #tpu.dot_dimension_numbers<[2], [1], [1], [2], [0, 0, 0, 1, 1, 2], [0], [0]>} : vector<8x8x8xf32>, vector<8x8x32xf32>, vector<8x8x32xf32> -> vector<8x8x32xf32>
    "tpu.trace_stop"() : () -> ()
    %243 = arith.addf %242, %176 : vector<8x8x32xf32>
    %cst_77 = arith.constant dense<0.000000e+00> : vector<8x8xf32>
    %244 = vector.multi_reduction <add>, %243, %cst_77 [2] : vector<8x8x32xf32> to vector<8x8xf32>
    %245 = vector.shape_cast %244 : vector<8x8xf32> to vector<8x8x1xf32>
    %cst_78 = arith.constant 3.200000e+01 : f32
    %246 = vector.broadcast %cst_78 : f32 to vector<8x8x1xf32>
    %247 = arith.divf %245, %246 : vector<8x8x1xf32>
    %248 = vector.broadcast %247 : vector<8x8x1xf32> to vector<8x8x32xf32>
    %249 = arith.subf %243, %248 : vector<8x8x32xf32>
    %250 = arith.mulf %249, %249 : vector<8x8x32xf32>
    %cst_79 = arith.constant dense<0.000000e+00> : vector<8x8xf32>
    %251 = vector.multi_reduction <add>, %250, %cst_79 [2] : vector<8x8x32xf32> to vector<8x8xf32>
    %252 = vector.shape_cast %251 : vector<8x8xf32> to vector<8x8x1xf32>
    %cst_80 = arith.constant 3.200000e+01 : f32
    %253 = vector.broadcast %cst_80 : f32 to vector<8x8x1xf32>
    %254 = arith.divf %252, %253 : vector<8x8x1xf32>
    %255 = vector.broadcast %247 : vector<8x8x1xf32> to vector<8x8x32xf32>
    %256 = arith.subf %243, %255 : vector<8x8x32xf32>
    %cst_81 = arith.constant 9.99999974E-6 : f32
    %257 = vector.broadcast %cst_81 : f32 to vector<8x8x1xf32>
    %258 = arith.addf %254, %257 : vector<8x8x1xf32>
    %259 = math.rsqrt %258 : vector<8x8x1xf32>
    %260 = vector.broadcast %259 : vector<8x8x1xf32> to vector<8x8x32xf32>
    %261 = arith.mulf %256, %260 : vector<8x8x32xf32>
    %262 = vector.shape_cast %8 : vector<1x32xf32> to vector<1x1x32xf32>
    %263 = vector.broadcast %262 : vector<1x1x32xf32> to vector<8x8x32xf32>
    %264 = arith.mulf %261, %263 : vector<8x8x32xf32>
    %265 = vector.shape_cast %9 : vector<1x32xf32> to vector<1x1x32xf32>
    %266 = vector.broadcast %265 : vector<1x1x32xf32> to vector<8x8x32xf32>
    %267 = arith.addf %264, %266 : vector<8x8x32xf32>
    %cst_82 = arith.constant 0.000000e+00 : f32
    %268 = vector.broadcast %cst_82 : f32 to vector<8x1x32xf32>
    %269 = vector.extract_strided_slice %267 {offsets = [0, 0, 0], sizes = [8, 7, 32], strides = [1, 1, 1]} : vector<8x8x32xf32> to vector<8x7x32xf32>
    %270 = tpu.concatenate %268, %269 in 1 : vector<8x1x32xf32>, vector<8x7x32xf32> -> vector<8x8x32xf32>
    %271 = vector.extract_strided_slice %267 {offsets = [0, 1, 0], sizes = [8, 7, 32], strides = [1, 1, 1]} : vector<8x8x32xf32> to vector<8x7x32xf32>
    %272 = tpu.concatenate %271, %268 in 1 : vector<8x7x32xf32>, vector<8x1x32xf32> -> vector<8x8x32xf32>
    %273 = vector.shape_cast %270 : vector<8x8x32xf32> to vector<64x32xf32>
    %c0_83 = arith.constant 0 : index
    %c0_84 = arith.constant 0 : index
    %c0_85 = arith.constant 0 : index
    %274 = vector.load %arg12[%c0_83, %c0_84, %c0_85] : memref<3x32x32xf32, #tpu.memory_space<vmem>>, vector<1x32x32xf32>
    %275 = vector.shape_cast %274 : vector<1x32x32xf32> to vector<32x32xf32>
    %cst_86 = arith.constant dense<0.000000e+00> : vector<64x32xf32>
    %276 = tpu.matmul %273, %275, %cst_86 {dimension_numbers = #tpu.dot_dimension_numbers<[1], [0], [0], [1], [0, 0, 1, 1], [], []>} : vector<64x32xf32>, vector<32x32xf32>, vector<64x32xf32> -> vector<64x32xf32>
    %277 = vector.shape_cast %267 : vector<8x8x32xf32> to vector<64x32xf32>
    %c1_87 = arith.constant 1 : index
    %c0_88 = arith.constant 0 : index
    %c0_89 = arith.constant 0 : index
    %278 = vector.load %arg12[%c1_87, %c0_88, %c0_89] : memref<3x32x32xf32, #tpu.memory_space<vmem>>, vector<1x32x32xf32>
    %279 = vector.shape_cast %278 : vector<1x32x32xf32> to vector<32x32xf32>
    %cst_90 = arith.constant dense<0.000000e+00> : vector<64x32xf32>
    %280 = tpu.matmul %277, %279, %cst_90 {dimension_numbers = #tpu.dot_dimension_numbers<[1], [0], [0], [1], [0, 0, 1, 1], [], []>} : vector<64x32xf32>, vector<32x32xf32>, vector<64x32xf32> -> vector<64x32xf32>
    %281 = arith.addf %276, %280 : vector<64x32xf32>
    %282 = vector.shape_cast %272 : vector<8x8x32xf32> to vector<64x32xf32>
    %c2_91 = arith.constant 2 : index
    %c0_92 = arith.constant 0 : index
    %c0_93 = arith.constant 0 : index
    %283 = vector.load %arg12[%c2_91, %c0_92, %c0_93] : memref<3x32x32xf32, #tpu.memory_space<vmem>>, vector<1x32x32xf32>
    %284 = vector.shape_cast %283 : vector<1x32x32xf32> to vector<32x32xf32>
    %cst_94 = arith.constant dense<0.000000e+00> : vector<64x32xf32>
    %285 = tpu.matmul %282, %284, %cst_94 {dimension_numbers = #tpu.dot_dimension_numbers<[1], [0], [0], [1], [0, 0, 1, 1], [], []>} : vector<64x32xf32>, vector<32x32xf32>, vector<64x32xf32> -> vector<64x32xf32>
    %286 = arith.addf %281, %285 : vector<64x32xf32>
    %287 = vector.broadcast %10 : vector<1x32xf32> to vector<64x32xf32>
    %288 = arith.addf %286, %287 : vector<64x32xf32>
    %cst_95 = arith.constant 0.000000e+00 : f32
    %289 = vector.broadcast %cst_95 : f32 to vector<64x32xf32>
    %290 = arith.maximumf %288, %289 : vector<64x32xf32>
    %291 = vector.shape_cast %290 : vector<64x32xf32> to vector<2x4x8x32xf32>
    %c0_96 = arith.constant 0 : index
    %c0_97 = arith.constant 0 : index
    %c0_98 = arith.constant 0 : index
    %c0_99 = arith.constant 0 : index
    %292 = vector.load %arg13[%c0_96, %c0_97, %c0_98, %c0_99] : memref<2x4x8x32xf32, #tpu.memory_space<vmem>>, vector<2x4x8x32xf32>
    tpu.vector_store %arg13[%c0_96, %c0_97, %c0_98, %c0_99], %291 {strides = array<i32>} : memref<2x4x8x32xf32, #tpu.memory_space<vmem>>, vector<2x4x8x32xf32>,
    return
  }
  func.func @transform_0(%arg0: i32) -> (i32, i32, i32, i32) {
    %c0_i32 = arith.constant 0 : i32
    %c0_i32_0 = arith.constant 0 : i32
    %c0_i32_1 = arith.constant 0 : i32
    %c0_i32_2 = arith.constant 0 : i32
    %c0_i32_3 = arith.constant 0 : i32
    return %c0_i32, %c0_i32_0, %c0_i32_1, %c0_i32_2 : i32, i32, i32, i32
  }
  func.func @transform_1(%arg0: i32) -> (i32, i32) {
    %c0_i32 = arith.constant 0 : i32
    %c0_i32_0 = arith.constant 0 : i32
    %c0_i32_1 = arith.constant 0 : i32
    return %c0_i32, %c0_i32_0 : i32, i32
  }
  func.func @transform_2(%arg0: i32) -> (i32, i32) {
    %c0_i32 = arith.constant 0 : i32
    %c0_i32_0 = arith.constant 0 : i32
    %c0_i32_1 = arith.constant 0 : i32
    return %c0_i32, %c0_i32_0 : i32, i32
  }
  func.func @transform_3(%arg0: i32) -> (i32, i32) {
    %c0_i32 = arith.constant 0 : i32
    %c0_i32_0 = arith.constant 0 : i32
    %c0_i32_1 = arith.constant 0 : i32
    return %c0_i32, %c0_i32_0 : i32, i32
  }
  func.func @transform_4(%arg0: i32) -> (i32, i32) {
    %c0_i32 = arith.constant 0 : i32
    %c0_i32_0 = arith.constant 0 : i32
    %c0_i32_1 = arith.constant 0 : i32
    return %c0_i32, %c0_i32_0 : i32, i32
  }
  func.func @transform_5(%arg0: i32) -> (i32, i32) {
    %c0_i32 = arith.constant 0 : i32
    %c0_i32_0 = arith.constant 0 : i32
    %c0_i32_1 = arith.constant 0 : i32
    return %c0_i32, %c0_i32_0 : i32, i32
  }
  func.func @transform_6(%arg0: i32) -> (i32, i32) {
    %c0_i32 = arith.constant 0 : i32
    %c0_i32_0 = arith.constant 0 : i32
    %c0_i32_1 = arith.constant 0 : i32
    return %c0_i32, %c0_i32_0 : i32, i32
  }
  func.func @transform_7(%arg0: i32) -> (i32, i32) {
    %c0_i32 = arith.constant 0 : i32
    %c0_i32_0 = arith.constant 0 : i32
    %c0_i32_1 = arith.constant 0 : i32
    return %c0_i32, %c0_i32_0 : i32, i32
  }
  func.func @transform_8(%arg0: i32) -> (i32, i32) {
    %c0_i32 = arith.constant 0 : i32
    %c0_i32_0 = arith.constant 0 : i32
    %c0_i32_1 = arith.constant 0 : i32
    return %c0_i32, %c0_i32_0 : i32, i32
  }
  func.func @transform_9(%arg0: i32) -> (i32, i32) {
    %c0_i32 = arith.constant 0 : i32
    %c0_i32_0 = arith.constant 0 : i32
    %c0_i32_1 = arith.constant 0 : i32
    return %c0_i32, %c0_i32_0 : i32, i32
  }
  func.func @transform_10(%arg0: i32) -> (i32, i32, i32) {
    %c0_i32 = arith.constant 0 : i32
    %c0_i32_0 = arith.constant 0 : i32
    %c0_i32_1 = arith.constant 0 : i32
    %c0_i32_2 = arith.constant 0 : i32
    return %c0_i32, %c0_i32_0, %c0_i32_1 : i32, i32, i32
  }
  func.func @transform_11(%arg0: i32) -> (i32, i32, i32) {
    %c0_i32 = arith.constant 0 : i32
    %c0_i32_0 = arith.constant 0 : i32
    %c0_i32_1 = arith.constant 0 : i32
    %c0_i32_2 = arith.constant 0 : i32
    return %c0_i32, %c0_i32_0, %c0_i32_1 : i32, i32, i32
  }
  func.func @transform_12(%arg0: i32) -> (i32, i32, i32, i32) {
    %c0_i32 = arith.constant 0 : i32
    %c0_i32_0 = arith.constant 0 : i32
    %c0_i32_1 = arith.constant 0 : i32
    %c0_i32_2 = arith.constant 0 : i32
    %c0_i32_3 = arith.constant 0 : i32
    return %c0_i32, %c0_i32_0, %c0_i32_1, %c0_i32_2 : i32, i32, i32, i32
  }
}

</mosaic_0001>

<bundles_post_ra>
// kernel: temfem_forward.1
= control target key start
LH: loop header
LB: loop body
LE: loop exit
PB: predicated region body
PF: predicated region fallthrough
CT: control target
= control target key end

     0   :  { %17 = vsyncpa [#allocation4], 0  ;;  %s6083_s0 = inlined_call_operand.vmem [shape: f32[2,4,8,32], index: 0, kind: input, shape index: {}]   ;;  %s6084_s1 = inlined_call_operand.vmem [shape: f32[8,32], index: 1, kind: input, shape index: {}]   ;;  %s6085_s2 = inlined_call_operand.vmem [shape: f32[32,96], index: 2, kind: input, shape index: {}]   ;;  %s6086_s3 = inlined_call_operand.vmem [shape: f32[32,32], index: 3, kind: input, shape index: {}]   ;;  %s6087_s4 = inlined_call_operand.vmem [shape: f32[32,128], index: 4, kind: input, shape index: {}]   ;;  %s6088_s5 = inlined_call_operand.vmem [shape: f32[1,128], index: 5, kind: input, shape index: {}]   ;;  %s6089_s6 = inlined_call_operand.vmem [shape: f32[128,32], index: 6, kind: input, shape index: {}]   ;;  %s6090_s7 = inlined_call_operand.vmem [shape: f32[10,32], index: 7, kind: input, shape index: {}]   ;;  %s6091_s8 = inlined_call_operand.vmem [shape: f32[1,4], index: 8, kind: input, shape index: {}]   ;;  %s6092_s9 = inlined_call_operand.vmem [shape: f32[32,4], index: 9, kind: input, shape index: {}]   ;;  %s6093_s10 = inlined_call_operand.vmem [shape: f32[2,8,8], index: 10, kind: input, shape index: {}]   ;;  %s6094_s11 = inlined_call_operand.vmem [shape: f32[3,32,32], index: 11, kind: input, shape index: {}]   ;;  %s6095_s12 = inlined_call_operand.hbm [shape: f32[2,4,8,32], index: 12, kind: output, shape index: {}]  }
   0x1   :  { %18 = vsyncpa [#allocation3], 0  ;;  %s40_s23 = sshll.u32 %s6091_s8, 4  ;;  %s4618_s24 = smov [#allocation2]   ;;  %s41_s23 = int_to_ptr.vmem [resolvable:$true] %s40_s23 }
   0x2   :  { %43 = dma.vmem_to_smem %s41_s23, 16, %s4618_s24, [#allocation4]  }
   0x3   :  { %4614 = dma.done.wait [#allocation4], 16  }
   0x4   :  { %4615 = vsyncadd [#allocation4], 4294967280 }
   0x5   :  { %54 = sfence }
   0x6   :  { %v77_v0 = vld [vmem:[%s6085_s2 + $0x18] sm:$0xff]  ;;  %v76_v1 = vld [vmem:[%s6085_s2 + $0x10] sm:$0xff]  ;;  %v57_v2 = vld [vmem:[%s6083_s0] sm:$0xff]  ;;  %vm78_vm0 = vcmask 261120   ;;  %s4619_s30 = smov 96   ;;  %s4620_s8 = smov 64  }
   0x7   :  { %115 = vmatpush.msra.mxu0 %v77_v0  ;;  %v65_v3 = vld [vmem:[%s6084_s1] sm:$0xff]  ;;  %4286 = vmatpush.msra.mxu1 %v77_v0  ;;  %v75_v4 = vld [vmem:[%s6085_s2 + $0x8] sm:$0xff]  ;;  %v59_v9 = vld [vmem:[%s6083_s0 + $0x10] sm:$0xff]  ;;  %s4621_s13 = smov 88   ;;  %s4622_s14 = smov 120   ;;  %vm151_vm1 = vcmask 64512  }
   0x8   :  { %v74_v5 = vld [vmem:[%s6085_s2] sm:$0xff]  ;;  %v4720_v6 = vadd.f32 %v65_v3, %v57_v2  ;;  %v58_v7 = vld [vmem:[%s6083_s0 + $0x8] sm:$0xff]  ;;  %v4734_v10 = vadd.f32 %v65_v3, %v59_v9  ;;  %v64_v11 = vld [vmem:[%s6083_s0 + $0x38] sm:$0xff]  ;;  %s4623_s15 = smov 112   ;;  %s4624_s16 = smov 56  }
   0x9   :  { %116 = vmatpush.msra.mxu0 %v76_v1  ;;  %4287 = vmatpush.msra.mxu1 %v76_v1  ;;  %v4727_v8 = vadd.f32 %v65_v3, %v58_v7  ;;  %v60_v12 = vld [vmem:[%s6083_s0 + $0x18] sm:$0xff]  ;;  %v4744_v13 = vadd.f32 %v65_v3, %v64_v11  ;;  %v61_v15 = vld [vmem:[%s6083_s0 + $0x20] sm:$0xff]  ;;  %v62_v17 = vld [vmem:[%s6083_s0 + $0x28] sm:$0xff]  ;;  %s4625_s17 = smov 80   ;;  %s4626_s1 = smov 48  }
   0xa   :  { %v4748_v14 = vadd.f32 %v65_v3, %v60_v12  ;;  %v4755_v16 = vadd.f32 %v65_v3, %v61_v15  ;;  %v4762_v18 = vadd.f32 %v65_v3, %v62_v17  ;;  %v63_v19 = vld [vmem:[%s6083_s0 + $0x30] sm:$0xff]  ;;  %s4627_s18 = smov 72   ;;  %s4628_s2 = smov 104  }
   0xb   :  { %117 = vmatpush.msra.mxu0 %v75_v4  ;;  %4288 = vmatpush.msra.mxu1 %v75_v4  ;;  %v4769_v20 = vadd.f32 %v65_v3, %v63_v19  ;;  %s4629_s23 = smov 40   ;;  %s4077_s29 = sshll.u32 %s6095_s12, 4  ;;  %s4078_s29 = int_to_ptr.hbm [resolvable:$true] %s4077_s29 }
   0xd   :  { %118 = vmatpush.msra.mxu0 %v74_v5  ;;  %4289 = vmatpush.msra.mxu1 %v74_v5 }
   0xe   :  { %4090 = vmatmul.msk.f32.vlgmr.msra.gmra.mxu0 %vm78_vm0, %v4720_v6  ;;  %4097 = vmatmul.msk.f32.vlgmr.msra.gmra.mxu1 %vm78_vm0, %v4744_v13 }
  0x16   :  { %4091 = vmatmul.msk.f32.gmra.mxu0 %vm78_vm0, %v4727_v8 }
  0x1e   :  { %4092 = vmatmul.msk.f32.gmra.mxu0 %vm78_vm0, %v4734_v10 }
  0x26   :  { %4093 = vmatmul.msk.f32.gmra.mxu0 %vm78_vm0, %v4748_v14 }
  0x2e   :  { %4094 = vmatmul.msk.f32.gmra.mxu0 %vm78_vm0, %v4755_v16 }
  0x36   :  { %4095 = vmatmul.msk.f32.gmra.mxu0 %vm78_vm0, %v4762_v18 }
  0x3e   :  { %4096 = vmatmul.msk.f32.gmra.mxu0 %vm78_vm0, %v4769_v20 }
  0x8b   :  { %v4773_v21 = vpop.f32.mrf.mxu0  ;;  %v4793_v28 = vpop.f32.mrf.mxu1 }
  0x8c   :  { %149 = vrot.lane.b32.xlu2 %v4773_v21, %s4619_s30 }
  0x93   :  { %v4776_v22 = vpop.f32.mrf.mxu0 }
  0x94   :  { %177 = vrot.lane.b32.xlu0 %v4776_v22, %s4619_s30  ;;  %339 = vrot.lane.b32.xlu2 %v4793_v28, %s4619_s30 }
  0x9b   :  { %v4779_v23 = vpop.f32.mrf.mxu0 }
  0x9c   :  { %204 = vrot.lane.b32.xlu0 %v4779_v23, %s4619_s30  ;;  %v4308_v25 = vpack.i.bf16 %v4776_v22, %v4779_v23 }
  0xa3   :  { %v4782_v24 = vpop.f32.mrf.mxu0 }
  0xa4   :  { %231 = vrot.lane.b32.xlu0 %v4782_v24, %s4619_s30 }
  0xab   :  { %v4787_v26 = vpop.f32.mrf.mxu0 }
  0xac   :  { %4309 = vrot.lane.b32.xlu0 %v4308_v25, %s4620_s8  ;;  %v4318_v57 = vpack.i.bf16 %v4782_v24, %v4787_v26 }
  0xb3   :  { %v4790_v27 = vpop.f32.mrf.mxu0 }
  0xb4   :  { %285 = vrot.lane.b32.xlu1 %v4790_v27, %s4619_s30  ;;  %v4313_v30 = vpack.i.bf16 %v4773_v21, %v4790_v27 }
  0xbb   :  { %v4797_v29 = vpop.f32.mrf.mxu0 }
  0xbc   :  { %258 = vrot.lane.b32.xlu1 %v4787_v26, %s4619_s30  ;;  %v4323_v31 = vpack.i.bf16 %v4797_v29, %v4793_v28 }
  0xc4   :  { %312 = vrot.lane.b32.xlu1 %v4797_v29, %s4619_s30  ;;  %s4632_s30 = smov 128  }
  0xcc   :  { %4314 = vrot.lane.b32.xlu1 %v4313_v30, %s4620_s8 }
  0xd4   :  { %671 = vrot.lane.b32.xlu1 %v4773_v21, %s4621_s13 }
  0xdc   :  { %669 = vrot.lane.b32.xlu1 %v4773_v21, %s4622_s14 }
  0xe4   :  { %4324 = vrot.lane.b32.xlu1 %v4323_v31, %s4620_s8 }
  0xe6   :  { %v150_v32 = vpop.permute.xlu2 %149 }
  0xe7   :  { %4098 = vmatpush.xpose.msk.msrb.mxu1 %vm151_vm1, %v150_v32 }
  0xea   :  { %4099 = vmatmul.msk.f32.vlgmr.msrb.gmra.mxu1 %vm151_vm1, %v4773_v21 }
  0xec   :  { %755 = vrot.lane.b32.xlu1 %v4782_v24, %s4621_s13 }
  0xee   :  { %v340_v37 = vpop.permute.xlu2 %339 }
  0xf4   :  { %727 = vrot.lane.b32.xlu1 %v4779_v23, %s4621_s13 }
  0xfc   :  { %839 = vrot.lane.b32.xlu1 %v4797_v29, %s4621_s13 }
 0x106   :  { %v178_v33 = vpop.permute.xlu0 %177 }
 0x107   :  { %4100 = vmatpush.xpose.msk.msra.mxu2 %vm151_vm1, %v178_v33 }
 0x10a   :  { %4101 = vmatmul.msk.f32.vlgmr.msra.gmra.mxu2 %vm151_vm1, %v4776_v22 }
 0x10e   :  { %v205_v34 = vpop.permute.xlu0 %204 }
 0x10f   :  { %4102 = vmatpush.xpose.msk.msrb.mxu2 %vm151_vm1, %v205_v34 }
 0x112   :  { %4103 = vmatmul.msk.f32.vlgmr.msrb.gmra.mxu2 %vm151_vm1, %v4779_v23 }
 0x116   :  { %v232_v35 = vpop.permute.xlu0 %231 }
 0x117   :  { %4104 = vmatpush.xpose.msk.msra.mxu1 %vm151_vm1, %v232_v35 }
 0x11a   :  { %4105 = vmatmul.msk.f32.vlgmr.msra.gmra.mxu1 %vm151_vm1, %v4782_v24 }
 0x11e   :  { %v4310_v38 = vpop.permute.xlu0 %4309 }
 0x11f   :  { %v4311_v40 = vunpack.i.l.bf16 %v4310_v38  ;;  %v4312_v41 = vunpack.i.h.bf16 %v4310_v38 }
 0x126   :  { %v286_v36 = vpop.permute.xlu1 %285 }
 0x127   :  { %4108 = vmatpush.xpose.msk.msra.mxu3 %vm151_vm1, %v286_v36 }
 0x12a   :  { %4109 = vmatmul.msk.f32.vlgmr.msra.gmra.mxu3 %vm151_vm1, %v4790_v27 }
 0x12e   :  { %v259_v39 = vpop.permute.xlu1 %258 }
 0x12f   :  { %4106 = vmatpush.xpose.msk.msra.mxu2 %vm151_vm1, %v259_v39 }
 0x132   :  { %4107 = vmatmul.msk.f32.vlgmr.msra.gmra.mxu2 %vm151_vm1, %v4787_v26 }
 0x133   :  { %4112 = vmatpush.xpose.msk.msrb.mxu2 %vm151_vm1, %v340_v37 }
 0x136   :  { %v313_v42 = vpop.permute.xlu1 %312 }
 0x137   :  { %534 = vmatpush.msra.mxu2 %v4311_v40  ;;  %4110 = vmatpush.xpose.msk.msrb.mxu1 %vm151_vm1, %v313_v42 }
 0x13a   :  { %4111 = vmatmul.msk.f32.vlgmr.msrb.gmra.mxu1 %vm151_vm1, %v4797_v29  ;;  %4113 = vmatmul.msk.f32.vlgmr.msrb.gmra.mxu2 %vm151_vm1, %v4793_v28 }
 0x13b   :  { %508 = vmatpush.msra.mxu1 %v4312_v41 }
 0x13e   :  { %v4315_v43 = vpop.permute.xlu1 %4314 }
 0x13f   :  { %v4316_v44 = vunpack.i.l.bf16 %v4315_v43  ;;  %v4317_v45 = vunpack.i.h.bf16 %v4315_v43 }
 0x141   :  { %482 = vmatpush.msrb.mxu3 %v4317_v45  ;;  %612 = vmatpush.msrb.mxu2 %v4316_v44 }
 0x146   :  { %v4863_v17 = vpop.permute.xlu1 %671 }
 0x14e   :  { %v4867_v32 = vpop.permute.xlu1 %669 }
 0x156   :  { %v4873_v41 = vpop.permute.xlu1 %4324 }
 0x15e   :  { %v4879_v44 = vpop.permute.xlu1 %755 }
 0x166   :  { %v4881_v45 = vpop.permute.xlu1 %727 }
 0x167   :  { %v173_v46 = vpop.f32.mrf.mxu1 }
 0x168   :  { %v365_v47 = vmul.f32 0.35355338, %v173_v46 }
 0x16a   :  { %v373_v48 = vsel %vm151_vm1, %v365_v47, -inf }
 0x16b   :  { %374 = vmax.xlane.f32.xlu2 %v373_v48 }
 0x16e   :  { %v4887_v46 = vpop.permute.xlu1 %839 }
 0x18d   :  { %v200_v49 = vpop.f32.mrf.mxu2 }
 0x18e   :  { %v366_v50 = vmul.f32 0.35355338, %v200_v49 }
 0x190   :  { %v376_v51 = vsel %vm151_vm1, %v366_v50, -inf }
 0x191   :  { %377 = vmax.xlane.f32.xlu0 %v376_v51 }
 0x195   :  { %v227_v52 = vpop.f32.mrf.mxu2 }
 0x196   :  { %v367_v53 = vmul.f32 0.35355338, %v227_v52 }
 0x197   :  { %v254_v63 = vpop.f32.mrf.mxu1 }
 0x198   :  { %v379_v54 = vsel %vm151_vm1, %v367_v53, -inf  ;;  %v368_v0 = vmul.f32 0.35355338, %v254_v63 }
 0x199   :  { %380 = vmax.xlane.f32.xlu2 %v379_v54 }
 0x19a   :  { %v382_v1 = vsel %vm151_vm1, %v368_v0, -inf }
 0x1a5   :  { %753 = vrot.lane.b32.xlu0 %v4782_v24, %s4622_s14 }
 0x1ad   :  { %v308_v55 = vpop.f32.mrf.mxu3 }
 0x1ae   :  { %v4845_v56 = vmul.f32 0.35355338, %v308_v55 }
 0x1b0   :  { %v388_v58 = vsel %vm151_vm1, %v4845_v56, -inf }
 0x1b1   :  { %4319 = vrot.lane.b32.xlu2 %v4318_v57, %s4620_s8  ;;  %389 = vmax.xlane.f32.xlu1 %v388_v58  ;;  %s4633_s8 = smov 8  }
 0x1b5   :  { %v281_v59 = vpop.f32.mrf.mxu2 }
 0x1b6   :  { %v369_v2 = vmul.f32 0.35355338, %v281_v59 }
 0x1b7   :  { %v335_v4 = vpop.f32.mrf.mxu1 }
 0x1b8   :  { %v385_v3 = vsel %vm151_vm1, %v369_v2, -inf  ;;  %v4857_v5 = vmul.f32 0.35355338, %v335_v4 }
 0x1ba   :  { %v391_v7 = vsel %vm151_vm1, %v4857_v5, -inf }
 0x1bd   :  { %v362_v60 = vpop.f32.mrf.mxu2 }
 0x1be   :  { %v372_v61 = vmul.f32 0.35355338, %v362_v60 }
 0x1c0   :  { %v394_v62 = vsel %vm151_vm1, %v372_v61, -inf }
 0x1c1   :  { %395 = vmax.xlane.f32.xlu1 %v394_v62 }
 0x1cf   :  { %383 = vmax.xlane.f32.xlu0 %v382_v1 }
 0x1da   :  { %386 = vmax.xlane.f32.xlu2 %v385_v3  ;;  %725 = vrot.lane.b32.xlu1 %v4779_v23, %s4622_s14 }
 0x1de   :  { %v375_v9 = vpop.xlane.xlu2 %374 }
 0x1df   :  { %v397_v11 = vsub.f32 %v365_v47, %v375_v9 }
 0x1e1   :  { %v405_v12 = vmul.f32 1.442695, %v397_v11 }
 0x1e2   :  { %392 = vmax.xlane.f32.xlu2 %v391_v7 }
 0x1e3   :  { %4379 = vpow2.f32 %v405_v12 }
 0x1e9   :  { %v4861_v15 = vpop.eup %4379 }
 0x1ea   :  { %v421_v19 = vsel %vm151_vm1, %v4861_v15, 0.0 }
 0x204   :  { %v378_v25 = vpop.xlane.xlu0 %377  ;;  %422 = vadd.xlane.f32.xlu1 %v421_v19 }
 0x205   :  { %v398_v30 = vsub.f32 %v366_v50, %v378_v25 }
 0x207   :  { %v407_v31 = vmul.f32 1.442695, %v398_v30 }
 0x209   :  { %4381 = vpow2.f32 %v407_v31  ;;  %v4327_v31 = vunpack.i.h.bf16 %v4873_v41 }
 0x20c   :  { %v381_v33 = vpop.xlane.xlu2 %380 }
 0x20d   :  { %v399_v34 = vsub.f32 %v367_v53, %v381_v33 }
 0x20f   :  { %v4869_v35 = vpop.eup %4381  ;;  %v409_v36 = vmul.f32 1.442695, %v399_v34 }
 0x210   :  { %v424_v37 = vsel %vm151_vm1, %v4869_v35, 0.0 }
 0x211   :  { %4383 = vpow2.f32 %v409_v36  ;;  %425 = vadd.xlane.f32.xlu1 %v424_v37 }
 0x214   :  { %v4320_v38 = vpop.permute.xlu2 %4319 }
 0x215   :  { %v4322_v39 = vunpack.i.h.bf16 %v4320_v38  ;;  %v4321_v40 = vunpack.i.l.bf16 %v4320_v38  ;;  %v4326_v38 = vunpack.i.l.bf16 %v4873_v41 }
 0x217   :  { %v4875_v42 = vpop.eup %4383  ;;  %560 = vmatpush.msra.mxu3 %v4322_v39  ;;  %586 = vmatpush.msrb.mxu1 %v4321_v40  ;;  %v4891_v47 = vpop.permute.xlu0 %753 }
 0x218   :  { %v427_v43 = vsel %vm151_vm1, %v4875_v42, 0.0 }
 0x219   :  { %428 = vadd.xlane.f32.xlu0 %v427_v43 }
 0x224   :  { %v390_v48 = vpop.xlane.xlu1 %389 }
 0x225   :  { %v402_v60 = vsub.f32 %v4845_v56, %v390_v48 }
 0x227   :  { %v415_v1 = vmul.f32 1.442695, %v402_v60 }
 0x22a   :  { %697 = vrot.lane.b32.xlu1 %v4776_v22, %s4622_s14 }
 0x22d   :  { %837 = vrot.lane.b32.xlu0 %v4797_v29, %s4622_s14 }
 0x232   :  { %781 = vrot.lane.b32.xlu1 %v4787_v26, %s4622_s14 }
 0x234   :  { %v396_v49 = vpop.xlane.xlu1 %395 }
 0x235   :  { %v404_v52 = vsub.f32 %v372_v61, %v396_v49 }
 0x237   :  { %v419_v54 = vmul.f32 1.442695, %v404_v52 }
 0x23a   :  { %865 = vrot.lane.b32.xlu1 %v4793_v28, %s4622_s14 }
 0x242   :  { %v384_v50 = vpop.xlane.xlu0 %383 }
 0x243   :  { %v400_v51 = vsub.f32 %v368_v0, %v384_v50 }
 0x245   :  { %v411_v53 = vmul.f32 1.442695, %v400_v51 }
 0x247   :  { %4385 = vpow2.f32 %v411_v53 }
 0x248   :  { %4387 = vpow2.f32 %v419_v54 }
 0x24c   :  { %v726_v19 = vpop.permute.xlu1 %725 }
 0x24d   :  { %v4386_v55 = vpop.eup %4385  ;;  %v387_v57 = vpop.xlane.xlu2 %386 }
 0x24e   :  { %v401_v58 = vsub.f32 %v369_v2, %v387_v57  ;;  %v430_v59 = vsel %vm151_vm1, %v4386_v55, 0.0  ;;  %v4388_v63 = vpop.eup %4387 }
 0x24f   :  { %431 = vadd.xlane.f32.xlu2 %v430_v59  ;;  %v442_v0 = vsel %vm151_vm1, %v4388_v63, 0.0 }
 0x250   :  { %v413_v62 = vmul.f32 1.442695, %v401_v58 }
 0x252   :  { %4389 = vpow2.f32 %v413_v62 }
 0x253   :  { %4391 = vpow2.f32 %v415_v1 }
 0x255   :  { %v393_v3 = vpop.xlane.xlu2 %392 }
 0x256   :  { %v403_v4 = vsub.f32 %v4857_v5, %v393_v3 }
 0x257   :  { %443 = vadd.xlane.f32.xlu0 %v442_v0 }
 0x258   :  { %v4390_v61 = vpop.eup %4389  ;;  %v417_v2 = vmul.f32 1.442695, %v403_v4 }
 0x259   :  { %v433_v7 = vsel %vm151_vm1, %v4390_v61, 0.0  ;;  %v4392_v9 = vpop.eup %4391 }
 0x25a   :  { %434 = vadd.xlane.f32.xlu2 %v433_v7  ;;  %4393 = vpow2.f32 %v417_v2  ;;  %v436_v56 = vsel %vm151_vm1, %v4392_v9, 0.0 }
 0x260   :  { %v4394_v11 = vpop.eup %4393 }
 0x261   :  { %v439_v12 = vsel %vm151_vm1, %v4394_v11, 0.0 }
 0x262   :  { %437 = vadd.xlane.f32.xlu2 %v436_v56 }
 0x26a   :  { %440 = vadd.xlane.f32.xlu2 %v439_v12 }
 0x26b   :  { %783 = vrot.lane.b32.xlu0 %v4787_v26, %s4621_s13 }
 0x273   :  { %867 = vrot.lane.b32.xlu0 %v4793_v28, %s4621_s13 }
 0x277   :  { %v423_v5 = vpop.xlane.xlu1 %422 }
 0x278   :  { %4395 = vrcp.f32 %v423_v5 }
 0x27e   :  { %v4396_v25 = vpop.eup %4395 }
 0x27f   :  { %v453_v30 = vmul.f32 %v4396_v25, %v4861_v15 }
 0x281   :  { %4114 = vmatmul.msk.f32.vlgmr.msrb.gmra.mxu3 %vm151_vm1, %v453_v30 }
 0x282   :  { %638 = vmatpush.msrb.mxu3 %v4327_v31  ;;  %699 = vrot.lane.b32.xlu2 %v4776_v22, %s4621_s13 }
 0x284   :  { %v426_v33 = vpop.xlane.xlu1 %425 }
 0x285   :  { %4397 = vrcp.f32 %v426_v33 }
 0x28b   :  { %v4398_v34 = vpop.eup %4397 }
 0x28c   :  { %v454_v36 = vmul.f32 %v4398_v34, %v4869_v35  ;;  %v429_v37 = vpop.xlane.xlu0 %428 }
 0x28d   :  { %4399 = vrcp.f32 %v429_v37 }
 0x28e   :  { %4115 = vmatmul.msk.f32.vlgmr.msra.gmra.mxu1 %vm151_vm1, %v454_v36  ;;  %v4328_v36 = vpack.i.bf16 %v4797_v29, %v4779_v23 }
 0x28f   :  { %664 = vmatpush.msra.mxu1 %v4326_v38 }
 0x293   :  { %v4400_v15 = vpop.eup %4399 }
 0x294   :  { %v455_v39 = vmul.f32 %v4400_v15, %v4875_v42 }
 0x296   :  { %4116 = vmatmul.msk.f32.vlgmr.msra.gmra.mxu2 %vm151_vm1, %v455_v39 }
 0x297   :  { %4122 = vmatpush.xpose.msk.msra.mxu2 %vm151_vm1, %v4863_v17 }
 0x29f   :  { %v838_v48 = vpop.permute.xlu0 %837 }
 0x2c2   :  { %v432_v40 = vpop.xlane.xlu2 %431 }
 0x2c3   :  { %4401 = vrcp.f32 %v432_v40 }
 0x2c9   :  { %v4402_v43 = vpop.eup %4401 }
 0x2ca   :  { %v456_v35 = vmul.f32 %v4402_v43, %v4386_v55  ;;  %v444_v49 = vpop.xlane.xlu0 %443 }
 0x2cc   :  { %4117 = vmatmul.msk.f32.vlgmr.msra.gmra.mxu3 %vm151_vm1, %v456_v35 }
 0x2cd   :  { %v435_v41 = vpop.xlane.xlu2 %434 }
 0x2ce   :  { %4403 = vrcp.f32 %v435_v41 }
 0x2cf   :  { %4405 = vrcp.f32 %v444_v49 }
 0x2d4   :  { %v4404_v50 = vpop.eup %4403 }
 0x2d5   :  { %v457_v51 = vmul.f32 %v4404_v50, %v4390_v61  ;;  %v438_v52 = vpop.xlane.xlu2 %437  ;;  %v4406_v17 = vpop.eup %4405 }
 0x2d6   :  { %4407 = vrcp.f32 %v438_v52  ;;  %v460_v53 = vmul.f32 %v4406_v17, %v4388_v63 }
 0x2d7   :  { %4118 = vmatmul.msk.f32.vlgmr.msrb.gmra.mxu1 %vm151_vm1, %v457_v51 }
 0x2d8   :  { %4126 = vmatpush.xpose.msk.msrb.mxu1 %vm151_vm1, %v4881_v45  ;;  %v698_v45 = vpop.permute.xlu1 %697 }
 0x2dc   :  { %v4408_v42 = vpop.eup %4407 }
 0x2dd   :  { %v458_v54 = vmul.f32 %v4408_v42, %v4392_v9  ;;  %v441_v55 = vpop.xlane.xlu2 %440  ;;  %v784_v59 = vpop.permute.xlu0 %783 }
 0x2de   :  { %4409 = vrcp.f32 %v441_v55 }
 0x2df   :  { %4119 = vmatmul.msk.f32.vlgmr.msrb.gmra.mxu2 %vm151_vm1, %v458_v54  ;;  %4121 = vmatmul.msk.f32.vlgmr.msra.gmra.mxu1 %vm151_vm1, %v460_v53 }
 0x2e0   :  { %4128 = vmatpush.xpose.msk.msrb.mxu2 %vm151_vm1, %v4879_v44  ;;  %v782_v62 = vpop.permute.xlu1 %781 }
 0x2e4   :  { %v4410_v57 = vpop.eup %4409 }
 0x2e5   :  { %v459_v58 = vmul.f32 %v4410_v57, %v4394_v11  ;;  %v700_v60 = vpop.permute.xlu2 %699  ;;  %v868_v44 = vpop.permute.xlu0 %867 }
 0x2e6   :  { %4124 = vmatpush.xpose.msk.msra.mxu3 %vm151_vm1, %v700_v60 }
 0x2e7   :  { %4120 = vmatmul.msk.f32.vlgmr.msrb.gmra.mxu3 %vm151_vm1, %v459_v58  ;;  %4123 = vmatmul.msk.f32.vlgmr.msra.gmra.mxu2 %vm151_vm1, %v4867_v32 }
 0x2e8   :  { %4127 = vmatmul.msk.f32.vlgmr.msrb.gmra.mxu1 %vm151_vm1, %v726_v19  ;;  %4134 = vmatpush.xpose.msk.msra.mxu2 %vm151_vm1, %v4887_v46  ;;  %v866_v32 = vpop.permute.xlu1 %865 }
 0x2ea   :  { %4130 = vmatpush.xpose.msk.msrb.mxu3 %vm151_vm1, %v784_v59 }
 0x2ef   :  { %4125 = vmatmul.msk.f32.vlgmr.msra.gmra.mxu3 %vm151_vm1, %v698_v45  ;;  %4129 = vmatmul.msk.f32.vlgmr.msrb.gmra.mxu2 %vm151_vm1, %v4891_v47 }
 0x2f0   :  { %4136 = vmatpush.xpose.msk.msra.mxu3 %vm151_vm1, %v868_v44 }
 0x2f7   :  { %4131 = vmatmul.msk.f32.vlgmr.msrb.gmra.mxu3 %vm151_vm1, %v782_v62  ;;  %4135 = vmatmul.msk.f32.vlgmr.msra.gmra.mxu2 %vm151_vm1, %v838_v48 }
 0x2ff   :  { %4137 = vmatmul.msk.f32.vlgmr.msra.gmra.mxu3 %vm151_vm1, %v866_v32 }
 0x304   :  { %v4945_v1 = vpop.f32.mrf.mxu3 }
 0x30b   :  { %v4941_v63 = vpop.f32.mrf.mxu1 }
 0x319   :  { %v4947_v3 = vpop.f32.mrf.mxu2 }
 0x34f   :  { %v4951_v47 = vpop.f32.mrf.mxu3 }
 0x354   :  { %v4943_v46 = vpop.f32.mrf.mxu1 }
 0x35c   :  { %v4949_v0 = vpop.f32.mrf.mxu1 }
 0x362   :  { %v4953_v61 = vpop.f32.mrf.mxu2 }
 0x365   :  { %v750_v4 = vpop.f32.mrf.mxu1 }
 0x366   :  { %v895_v7 = vmul.f32 0.35355338, %v750_v4 }
 0x368   :  { %v907_v2 = vsel %vm151_vm1, %v895_v7, -inf }
 0x369   :  { %908 = vmax.xlane.f32.xlu0 %v907_v2 }
 0x36a   :  { %v4956_v9 = vpop.f32.mrf.mxu3  ;;  %v4958_v56 = vpop.f32.mrf.mxu2 }
 0x372   :  { %v4960_v11 = vpop.f32.mrf.mxu3  ;;  %v778_v12 = vpop.f32.mrf.mxu2 }
 0x373   :  { %v4997_v50 = vmul.f32 0.35355338, %v778_v12 }
 0x375   :  { %v910_v52 = vsel %vm151_vm1, %v4997_v50, -inf }
 0x37a   :  { %v4962_v19 = vpop.f32.mrf.mxu3  ;;  %v862_v5 = vpop.f32.mrf.mxu2 }
 0x37b   :  { %v899_v25 = vmul.f32 0.35355338, %v862_v5 }
 0x37d   :  { %v919_v30 = vsel %vm151_vm1, %v899_v25, -inf }
 0x37e   :  { %920 = vmax.xlane.f32.xlu2 %v919_v30 }
 0x382   :  { %v890_v31 = vpop.f32.mrf.mxu3 }
 0x383   :  { %v900_v33 = vmul.f32 0.35355338, %v890_v31  ;;  %v5019_v31 = vmul.f32 0.35355338, %v4960_v11 }
 0x385   :  { %v922_v34 = vsel %vm151_vm1, %v900_v33, -inf }
 0x386   :  { %923 = vmax.xlane.f32.xlu1 %v922_v34 }
 0x396   :  { %1327 = vrot.lane.b32.xlu2 %v4773_v21, %s4623_s15 }
 0x39e   :  { %1383 = vrot.lane.b32.xlu2 %v4779_v23, %s4623_s15 }
 0x39f   :  { %4329 = vrot.lane.b32.xlu1 %v4328_v36, %s4624_s16 }
 0x3a6   :  { %1441 = vrot.lane.b32.xlu2 %v4787_v26, %s4625_s17 }
 0x3a7   :  { %1385 = vrot.lane.b32.xlu1 %v4779_v23, %s4625_s17 }
 0x3ae   :  { %1357 = vrot.lane.b32.xlu2 %v4776_v22, %s4625_s17 }
 0x3af   :  { %1171 = vrot.lane.b32.xlu1 %v4793_v28, %s4624_s16 }
 0x3b7   :  { %1439 = vrot.lane.b32.xlu1 %v4787_v26, %s4623_s15 }
 0x3bf   :  { %1355 = vrot.lane.b32.xlu1 %v4776_v22, %s4623_s15 }
 0x3c7   :  { %1411 = vrot.lane.b32.xlu1 %v4782_v24, %s4623_s15 }
 0x3cf   :  { %1469 = vrot.lane.b32.xlu1 %v4790_v27, %s4625_s17 }
 0x3d7   :  { %1525 = vrot.lane.b32.xlu1 %v4793_v28, %s4625_s17 }
 0x3dc   :  { %v909_v37 = vpop.xlane.xlu0 %908 }
 0x3dd   :  { %v927_v38 = vsub.f32 %v895_v7, %v909_v37 }
 0x3df   :  { %v937_v15 = vmul.f32 1.442695, %v927_v38  ;;  %811 = vrot.lane.b32.xlu1 %v4790_v27, %s4621_s13 }
 0x3e1   :  { %4411 = vpow2.f32 %v937_v15 }
 0x3e7   :  { %v4412_v39 = vpop.eup %4411 }
 0x3e8   :  { %v955_v40 = vsel %vm151_vm1, %v4412_v39, 0.0 }
 0x3e9   :  { %956 = vadd.xlane.f32.xlu0 %v955_v40 }
 0x3f1   :  { %v921_v43 = vpop.xlane.xlu2 %920 }
 0x3f2   :  { %v931_v48 = vsub.f32 %v899_v25, %v921_v43  ;;  %v4333_v25 = vpack.i.bf16 %v4779_v23, %v4773_v21 }
 0x3f4   :  { %v945_v35 = vmul.f32 1.442695, %v931_v48 }
 0x3f6   :  { %4413 = vpow2.f32 %v945_v35 }
 0x3f9   :  { %v1328_v51 = vpop.permute.xlu2 %1327  ;;  %v924_v17 = vpop.xlane.xlu1 %923 }
 0x3fa   :  { %v932_v57 = vsub.f32 %v900_v33, %v924_v17  ;;  %v904_v33 = vsel %vm151_vm1, %v5019_v31, -inf }
 0x3fc   :  { %v4414_v41 = vpop.eup %4413  ;;  %v947_v59 = vmul.f32 1.442695, %v932_v57 }
 0x3fd   :  { %1329 = vrot.lane.b32.xlu0 %v4773_v21, %s4625_s17  ;;  %v967_v49 = vsel %vm151_vm1, %v4414_v41, 0.0 }
 0x3fe   :  { %968 = vadd.xlane.f32.xlu2 %v967_v49  ;;  %4415 = vpow2.f32 %v947_v59 }
 0x401   :  { %v1384_v42 = vpop.permute.xlu2 %1383 }
 0x404   :  { %v4416_v62 = vpop.eup %4415 }
 0x405   :  { %v970_v32 = vsel %vm151_vm1, %v4416_v62, 0.0 }
 0x409   :  { %911 = vmax.xlane.f32.xlu1 %v910_v52  ;;  %v1442_v58 = vpop.permute.xlu2 %1441 }
 0x411   :  { %v4330_v53 = vpop.permute.xlu1 %4329  ;;  %v1358_v44 = vpop.permute.xlu2 %1357 }
 0x412   :  { %v4332_v54 = vunpack.i.h.bf16 %v4330_v53  ;;  %v4331_v55 = vunpack.i.l.bf16 %v4330_v53 }
 0x414   :  { %1062 = vmatpush.msrb.mxu3 %v4331_v55 }
 0x416   :  { %1166 = vmatpush.msra.mxu3 %v4332_v54  ;;  %1413 = vrot.lane.b32.xlu2 %v4782_v24, %s4625_s17 }
 0x419   :  { %v1386_v60 = vpop.permute.xlu1 %1385 }
 0x41e   :  { %1497 = vrot.lane.b32.xlu2 %v4797_v29, %s4625_s17 }
 0x421   :  { %v1172_v45 = vpop.permute.xlu1 %1171 }
 0x422   :  { %1192 = vmatpush.msrb.mxu0 %v1172_v45 }
 0x424   :  { %4164 = vmatpush.xpose.msk.msra.mxu0 %vm151_vm1, %v1358_v44 }
 0x426   :  { %1467 = vrot.lane.b32.xlu2 %v4790_v27, %s4623_s15 }
 0x427   :  { %971 = vadd.xlane.f32.xlu0 %v970_v32 }
 0x429   :  { %v1440_v4 = vpop.permute.xlu1 %1439 }
 0x42e   :  { %1523 = vrot.lane.b32.xlu2 %v4793_v28, %s4623_s15 }
 0x431   :  { %v1356_v7 = vpop.permute.xlu1 %1355 }
 0x439   :  { %v1412_v2 = vpop.permute.xlu1 %1411 }
 0x43b   :  { %1495 = vrot.lane.b32.xlu0 %v4797_v29, %s4623_s15 }
 0x441   :  { %v1470_v12 = vpop.permute.xlu1 %1469 }
 0x443   :  { %809 = vrot.lane.b32.xlu0 %v4790_v27, %s4622_s14 }
 0x449   :  { %v1526_v5 = vpop.permute.xlu1 %1525 }
 0x44b   :  { %4334 = vrot.lane.b32.xlu0 %v4333_v25, %s4626_s1 }
 0x451   :  { %v812_v30 = vpop.permute.xlu1 %811 }
 0x452   :  { %4132 = vmatpush.xpose.msk.msra.mxu1 %vm151_vm1, %v812_v30 }
 0x457   :  { %905 = vmax.xlane.f32.xlu2 %v904_v33 }
 0x45c   :  { %v957_v34 = vpop.xlane.xlu0 %956 }
 0x45d   :  { %4417 = vrcp.f32 %v957_v34 }
 0x463   :  { %v4418_v36 = vpop.eup %4417 }
 0x464   :  { %v983_v37 = vmul.f32 %v4418_v36, %v4412_v39 }
 0x466   :  { %4140 = vmatmul.msk.f32.vlgmr.msrb.gmra.mxu3 %vm151_vm1, %v983_v37 }
 0x46f   :  { %v1330_v38 = vpop.permute.xlu0 %1329 }
 0x470   :  { %4162 = vmatpush.xpose.msk.msrb.mxu3 %vm151_vm1, %v1330_v38 }
 0x471   :  { %v969_v15 = vpop.xlane.xlu2 %968 }
 0x472   :  { %4419 = vrcp.f32 %v969_v15 }
 0x478   :  { %v4420_v40 = vpop.eup %4419 }
 0x479   :  { %v987_v11 = vmul.f32 %v4420_v40, %v4414_v41  ;;  %v1414_v43 = vpop.permute.xlu2 %1413 }
 0x47b   :  { %4144 = vmatmul.msk.f32.vlgmr.msra.gmra.mxu3 %vm151_vm1, %v987_v11 }
 0x47c   :  { %4166 = vmatpush.xpose.msk.msra.mxu3 %vm151_vm1, %v1386_v60 }
 0x481   :  { %v1498_v48 = vpop.permute.xlu2 %1497 }
 0x483   :  { %4163 = vmatmul.msk.f32.vlgmr.msrb.gmra.mxu3 %vm151_vm1, %v1328_v51 }
 0x484   :  { %4170 = vmatpush.xpose.msk.msrb.mxu3 %vm151_vm1, %v1442_v58 }
 0x489   :  { %v1468_v52 = vpop.permute.xlu2 %1467 }
 0x48b   :  { %4167 = vmatmul.msk.f32.vlgmr.msra.gmra.mxu3 %vm151_vm1, %v1384_v42 }
 0x48c   :  { %4174 = vmatpush.xpose.msk.msra.mxu3 %vm151_vm1, %v1498_v48 }
 0x491   :  { %v1524_v54 = vpop.permute.xlu2 %1523 }
 0x493   :  { %4171 = vmatmul.msk.f32.vlgmr.msrb.gmra.mxu3 %vm151_vm1, %v1440_v4 }
 0x49a   :  { %v972_v39 = vpop.xlane.xlu0 %971 }
 0x49b   :  { %4421 = vrcp.f32 %v972_v39 }
 0x4a1   :  { %v4422_v35 = vpop.eup %4421 }
 0x4a2   :  { %v988_v41 = vmul.f32 %v4422_v35, %v4416_v62 }
 0x4a4   :  { %4145 = vmatmul.msk.f32.vlgmr.msrb.gmra.mxu0 %vm151_vm1, %v988_v41 }
 0x4a5   :  { %4168 = vmatpush.xpose.msk.msrb.mxu0 %vm151_vm1, %v1414_v43 }
 0x4ac   :  { %4165 = vmatmul.msk.f32.vlgmr.msra.gmra.mxu0 %vm151_vm1, %v1356_v7 }
 0x4ad   :  { %4172 = vmatpush.xpose.msk.msra.mxu0 %vm151_vm1, %v1470_v12  ;;  %v1496_v49 = vpop.permute.xlu0 %1495 }
 0x4ae   :  { %4175 = vmatmul.msk.f32.vlgmr.msra.gmra.mxu3 %vm151_vm1, %v1496_v49 }
 0x4b4   :  { %4169 = vmatmul.msk.f32.vlgmr.msrb.gmra.mxu0 %vm151_vm1, %v1412_v2 }
 0x4b5   :  { %4176 = vmatpush.xpose.msk.msrb.mxu0 %vm151_vm1, %v1526_v5  ;;  %v810_v51 = vpop.permute.xlu0 %809 }
 0x4b6   :  { %4133 = vmatmul.msk.f32.vlgmr.msra.gmra.mxu1 %vm151_vm1, %v810_v51 }
 0x4bc   :  { %4173 = vmatmul.msk.f32.vlgmr.msra.gmra.mxu0 %vm151_vm1, %v1468_v52  ;;  %v912_v52 = vpop.xlane.xlu1 %911 }
 0x4bd   :  { %v4335_v17 = vpop.permute.xlu0 %4334 }
 0x4be   :  { %v4337_v42 = vunpack.i.h.bf16 %v4335_v17  ;;  %v4336_v53 = vunpack.i.l.bf16 %v4335_v17 }
 0x4c0   :  { %1668 = vmatpush.msrb.mxu3 %v4336_v53 }
 0x4c2   :  { %1720 = vmatpush.msra.mxu3 %v4337_v42  ;;  %v928_v42 = vsub.f32 %v4997_v50, %v912_v52 }
 0x4c4   :  { %4177 = vmatmul.msk.f32.vlgmr.msrb.gmra.mxu0 %vm151_vm1, %v1524_v54 }
 0x4ca   :  { %v5060_v35 = vpop.xlane.xlu2 %905 }
 0x4e9   :  { %v5043_v55 = vpop.f32.mrf.mxu3 }
 0x4fe   :  { %v5045_v57 = vpop.f32.mrf.mxu3 }
 0x506   :  { %v1352_v58 = vpop.f32.mrf.mxu3 }
 0x507   :  { %v1551_v59 = vmul.f32 0.35355338, %v1352_v58  ;;  %v939_v58 = vmul.f32 1.442695, %v928_v42 }
 0x509   :  { %v1559_v60 = vsel %vm151_vm1, %v1551_v59, -inf }
 0x50a   :  { %1560 = vmax.xlane.f32.xlu2 %v1559_v60 }
 0x50e   :  { %v1408_v45 = vpop.f32.mrf.mxu3 }
 0x50f   :  { %v1553_v37 = vmul.f32 0.35355338, %v1408_v45 }
 0x511   :  { %v1565_v40 = vsel %vm151_vm1, %v1553_v37, -inf }
 0x516   :  { %v1464_v44 = vpop.f32.mrf.mxu3 }
 0x517   :  { %v1555_v62 = vmul.f32 0.35355338, %v1464_v44 }
 0x519   :  { %v1571_v32 = vsel %vm151_vm1, %v1555_v62, -inf }
 0x51a   :  { %1572 = vmax.xlane.f32.xlu2 %v1571_v32 }
 0x521   :  { %v5049_v4 = vpop.f32.mrf.mxu0 }
 0x529   :  { %v1380_v7 = vpop.f32.mrf.mxu0 }
 0x52a   :  { %v1552_v2 = vmul.f32 0.35355338, %v1380_v7 }
 0x52c   :  { %v1562_v12 = vsel %vm151_vm1, %v1552_v2, -inf }
 0x52d   :  { %1563 = vmax.xlane.f32.xlu0 %v1562_v12 }
 0x531   :  { %v1436_v5 = vpop.f32.mrf.mxu0  ;;  %v1520_v25 = vpop.f32.mrf.mxu3 }
 0x532   :  { %v1554_v30 = vmul.f32 0.35355338, %v1436_v5  ;;  %v5052_v33 = vmul.f32 0.35355338, %v1520_v25 }
 0x533   :  { %v834_v54 = vpop.f32.mrf.mxu1 }
 0x534   :  { %v1568_v34 = vsel %vm151_vm1, %v1554_v30, -inf  ;;  %v1577_v36 = vsel %vm151_vm1, %v5052_v33, -inf  ;;  %v5067_v60 = vmul.f32 0.35355338, %v834_v54 }
 0x535   :  { %1569 = vmax.xlane.f32.xlu1 %v1568_v34  ;;  %1578 = vmax.xlane.f32.xlu2 %v1577_v36 }
 0x536   :  { %v916_v45 = vsel %vm151_vm1, %v5067_v60, -inf }
 0x539   :  { %v1492_v38 = vpop.f32.mrf.mxu0 }
 0x53a   :  { %v1556_v15 = vmul.f32 0.35355338, %v1492_v38 }
 0x53c   :  { %v1574_v11 = vsel %vm151_vm1, %v1556_v15, -inf }
 0x53d   :  { %1566 = vmax.xlane.f32.xlu1 %v1565_v40  ;;  %1575 = vmax.xlane.f32.xlu0 %v1574_v11 }
 0x541   :  { %v1548_v43 = vpop.f32.mrf.mxu0 }
 0x542   :  { %v1558_v48 = vmul.f32 0.35355338, %v1548_v43 }
 0x544   :  { %v1580_v39 = vsel %vm151_vm1, %v1558_v48, -inf }
 0x545   :  { %1581 = vmax.xlane.f32.xlu1 %v1580_v39 }
 0x57d   :  { %v1561_v41 = vpop.xlane.xlu2 %1560 }
 0x57e   :  { %v1583_v49 = vsub.f32 %v1551_v59, %v1561_v41 }
 0x580   :  { %v1591_v51 = vmul.f32 1.442695, %v1583_v49 }
 0x582   :  { %4423 = vpow2.f32 %v1591_v51 }
 0x583   :  { %4425 = vpow2.f32 %v939_v58 }
 0x588   :  { %v5062_v17 = vpop.eup %4423 }
 0x589   :  { %v1607_v53 = vsel %vm151_vm1, %v5062_v17, 0.0  ;;  %v5071_v59 = vpop.eup %4425 }
 0x58a   :  { %1608 = vadd.xlane.f32.xlu0 %v1607_v53  ;;  %v958_v44 = vsel %vm151_vm1, %v5071_v59, 0.0 }
 0x58d   :  { %v1573_v50 = vpop.xlane.xlu2 %1572 }
 0x58e   :  { %v1587_v12 = vsub.f32 %v1555_v62, %v1573_v50  ;;  %v4338_v50 = vpack.i.bf16 %v4787_v26, %v4776_v22 }
 0x590   :  { %v1599_v25 = vmul.f32 1.442695, %v1587_v12  ;;  %v4343_v12 = vpack.i.bf16 %v4790_v27, %v4782_v24 }
 0x592   :  { %917 = vmax.xlane.f32.xlu0 %v916_v45 }
 0x59a   :  { %959 = vadd.xlane.f32.xlu0 %v958_v44 }
 0x5a0   :  { %v1564_v32 = vpop.xlane.xlu0 %1563 }
 0x5a1   :  { %v1584_v7 = vsub.f32 %v1552_v2, %v1564_v32 }
 0x5a3   :  { %v1593_v5 = vmul.f32 1.442695, %v1584_v7 }
 0x5a5   :  { %4427 = vpow2.f32 %v1593_v5 }
 0x5a6   :  { %4429 = vpow2.f32 %v1599_v25  ;;  %v5110_v25 = vpack.i.bf16 %v4793_v28, %v4797_v29 }
 0x5a8   :  { %v1570_v34 = vpop.xlane.xlu1 %1569  ;;  %v1579_v5 = vpop.xlane.xlu2 %1578 }
 0x5a9   :  { %v1586_v36 = vsub.f32 %v1554_v30, %v1570_v34 }
 0x5ab   :  { %v5075_v38 = vpop.eup %4427  ;;  %v1597_v40 = vmul.f32 1.442695, %v1586_v36 }
 0x5ac   :  { %v1610_v11 = vsel %vm151_vm1, %v5075_v38, 0.0  ;;  %v5081_v62 = vpop.eup %4429 }
 0x5ad   :  { %4431 = vpow2.f32 %v1597_v40  ;;  %1611 = vadd.xlane.f32.xlu2 %v1610_v11  ;;  %v1619_v52 = vsel %vm151_vm1, %v5081_v62, 0.0  ;;  %v926_v11 = vsub.f32 %v5019_v31, %v5060_v35 }
 0x5ae   :  { %1015 = vrot.lane.b32.xlu0 %v4776_v22, %s4624_s16 }
 0x5b0   :  { %v1567_v43 = vpop.xlane.xlu1 %1566  ;;  %v1576_v2 = vpop.xlane.xlu0 %1575 }
 0x5b1   :  { %v1585_v39 = vsub.f32 %v1553_v37, %v1567_v43  ;;  %v1588_v49 = vsub.f32 %v1556_v15, %v1576_v2  ;;  %v935_v43 = vmul.f32 1.442695, %v926_v11 }
 0x5b3   :  { %v5083_v41 = vpop.eup %4431  ;;  %v1595_v30 = vmul.f32 1.442695, %v1585_v39  ;;  %v1601_v42 = vmul.f32 1.442695, %v1588_v49 }
 0x5b4   :  { %v1616_v51 = vsel %vm151_vm1, %v5083_v41, 0.0 }
 0x5b5   :  { %4433 = vpow2.f32 %v1595_v30  ;;  %1617 = vadd.xlane.f32.xlu1 %v1616_v51  ;;  %1620 = vadd.xlane.f32.xlu2 %v1619_v52 }
 0x5b6   :  { %4435 = vpow2.f32 %v1601_v42 }
 0x5b8   :  { %v1582_v15 = vpop.xlane.xlu1 %1581 }
 0x5b9   :  { %v1590_v45 = vsub.f32 %v1558_v48, %v1582_v15  ;;  %v1589_v48 = vsub.f32 %v5052_v33, %v1579_v5 }
 0x5bb   :  { %v5089_v53 = vpop.eup %4433  ;;  %v1605_v44 = vmul.f32 1.442695, %v1590_v45  ;;  %v1603_v34 = vmul.f32 1.442695, %v1589_v48 }
 0x5bc   :  { %v1613_v37 = vsel %vm151_vm1, %v5089_v53, 0.0  ;;  %v5093_v54 = vpop.eup %4435 }
 0x5bd   :  { %1614 = vadd.xlane.f32.xlu1 %v1613_v37  ;;  %v1622_v58 = vsel %vm151_vm1, %v5093_v54, 0.0  ;;  %4437 = vpow2.f32 %v1605_v44 }
 0x5be   :  { %4439 = vpow2.f32 %v1603_v34 }
 0x5c3   :  { %v5100_v32 = vpop.eup %4437 }
 0x5c4   :  { %v1628_v7 = vsel %vm151_vm1, %v5100_v32, 0.0  ;;  %v5116_v36 = vpop.eup %4439 }
 0x5c5   :  { %1623 = vadd.xlane.f32.xlu1 %v1622_v58  ;;  %v1625_v33 = vsel %vm151_vm1, %v5116_v36, 0.0 }
 0x5cd   :  { %4339 = vrot.lane.b32.xlu2 %v4338_v50, %s4626_s1 }
 0x5d8   :  { %1629 = vadd.xlane.f32.xlu0 %v1628_v7 }
 0x5de   :  { %4344 = vrot.lane.b32.xlu1 %v4343_v12, %s4626_s1 }
 0x5e6   :  { %4349 = vrot.lane.b32.xlu1 %v5110_v25, %s4626_s1  ;;  %s5755_s1 = sld [smem:[#allocation2]] }
 0x5ec   :  { %1119 = vrot.lane.b32.xlu0 %v4790_v27, %s4624_s16 }
 0x5f4   :  { %1958 = vrot.lane.b32.xlu0 %v4776_v22, %s4627_s18 }
 0x5f6   :  { %1626 = vadd.xlane.f32.xlu2 %v1625_v33 }
 0x5fc   :  { %1928 = vrot.lane.b32.xlu0 %v4773_v21, %s4628_s2 }
 0x5fd   :  { %v1609_v40 = vpop.xlane.xlu0 %1608 }
 0x5fe   :  { %4441 = vrcp.f32 %v1609_v40 }
 0x5ff   :  { %4443 = vpow2.f32 %v935_v43 }
 0x604   :  { %v4442_v2 = vpop.eup %4441  ;;  %1986 = vrot.lane.b32.xlu0 %v4779_v23, %s4627_s18 }
 0x605   :  { %v1639_v39 = vmul.f32 %v4442_v2, %v5062_v17  ;;  %v918_v30 = vpop.xlane.xlu0 %917  ;;  %v5131_v52 = vpop.eup %4443 }
 0x606   :  { %v930_v49 = vsub.f32 %v5067_v60, %v918_v30  ;;  %v952_v31 = vsel %vm151_vm1, %v5131_v52, 0.0 }
 0x607   :  { %4178 = vmatmul.msk.f32.vlgmr.msrb.gmra.mxu3 %vm151_vm1, %v1639_v39 }
 0x608   :  { %v943_v51 = vmul.f32 1.442695, %v930_v49 }
 0x60a   :  { %4445 = vpow2.f32 %v943_v51 }
 0x60c   :  { %2014 = vrot.lane.b32.xlu0 %v4782_v24, %s4627_s18 }
 0x60d   :  { %v5143_v60 = vpop.xlane.xlu0 %959 }
 0x610   :  { %v5137_v35 = vpop.eup %4445  ;;  %953 = vadd.xlane.f32.xlu1 %v952_v31 }
 0x611   :  { %v964_v17 = vsel %vm151_vm1, %v5137_v35, 0.0 }
 0x612   :  { %965 = vadd.xlane.f32.xlu2 %v964_v17 }
 0x614   :  { %2040 = vrot.lane.b32.xlu0 %v4787_v26, %s4628_s2 }
 0x61c   :  { %2098 = vrot.lane.b32.xlu0 %v4797_v29, %s4627_s18 }
 0x620   :  { %v1612_v42 = vpop.xlane.xlu2 %1611  ;;  %v1016_v37 = vpop.permute.xlu0 %1015 }
 0x621   :  { %1036 = vmatpush.msrb.mxu2 %v1016_v37  ;;  %4447 = vrcp.f32 %v1612_v42  ;;  %v5182_v42 = vmul.f32 0.35355338, %v4958_v56 }
 0x624   :  { %2124 = vrot.lane.b32.xlu0 %v4793_v28, %s4628_s2 }
 0x627   :  { %v4448_v45 = vpop.eup %4447 }
 0x628   :  { %v1618_v15 = vpop.xlane.xlu1 %1617  ;;  %v1621_v58 = vpop.xlane.xlu2 %1620  ;;  %v1640_v5 = vmul.f32 %v4448_v45, %v5075_v38 }
 0x629   :  { %1930 = vrot.lane.b32.xlu1 %v4773_v21, %s4627_s18 }
 0x62a   :  { %1067 = vrot.lane.b32.xlu2 %v4782_v24, %s4624_s16 }
 0x630   :  { %v1615_v44 = vpop.xlane.xlu1 %1614  ;;  %v4340_v50 = vpop.permute.xlu2 %4339 }
 0x631   :  { %4449 = vrcp.f32 %v1615_v44  ;;  %v4342_v7 = vunpack.i.h.bf16 %v4340_v50  ;;  %v4341_v12 = vunpack.i.l.bf16 %v4340_v50  ;;  %2042 = vrot.lane.b32.xlu1 %v4787_v26, %s4627_s18 }
 0x632   :  { %1956 = vrot.lane.b32.xlu2 %v4776_v22, %s4628_s2  ;;  %4451 = vrcp.f32 %v1621_v58 }
 0x633   :  { %1694 = vmatpush.msra.mxu0 %v4341_v12  ;;  %1772 = vmatpush.msrb.mxu3 %v4342_v7  ;;  %4453 = vrcp.f32 %v1618_v15 }
 0x634   :  { %4179 = vmatmul.msk.f32.vlgmr.msra.gmra.mxu0 %vm151_vm1, %v1640_v5 }
 0x637   :  { %v4450_v48 = vpop.eup %4449 }
 0x638   :  { %v1641_v34 = vmul.f32 %v4450_v48, %v5089_v53  ;;  %v4452_v38 = vpop.eup %4451  ;;  %v1624_v53 = vpop.xlane.xlu1 %1623 }
 0x639   :  { %2070 = vrot.lane.b32.xlu1 %v4790_v27, %s4627_s18  ;;  %v1643_v33 = vmul.f32 %v4452_v38, %v5081_v62  ;;  %v4454_v40 = vpop.eup %4453  ;;  %4455 = vrcp.f32 %v1624_v53 }
 0x63a   :  { %4180 = vmatmul.msk.f32.vlgmr.msra.gmra.mxu3 %vm151_vm1, %v1641_v34  ;;  %1984 = vrot.lane.b32.xlu2 %v4779_v23, %s4628_s2  ;;  %v1642_v62 = vmul.f32 %v4454_v40, %v5083_v41  ;;  %v4353_v34 = vpack.i.bf16 %v4787_v26, %v4773_v21 }
 0x63f   :  { %v4456_v39 = vpop.eup %4455 }
 0x640   :  { %v1644_v31 = vmul.f32 %v4456_v39, %v5093_v54  ;;  %v901_v54 = vsel %vm151_vm1, %v5182_v42, -inf }
 0x641   :  { %2126 = vrot.lane.b32.xlu1 %v4793_v28, %s4627_s18  ;;  %s5757_s18 = sld [smem:[#allocation2 + $0x2]] }
 0x642   :  { %4182 = vmatmul.msk.f32.vlgmr.msrb.gmra.mxu3 %vm151_vm1, %v1643_v33  ;;  %2012 = vrot.lane.b32.xlu2 %v4782_v24, %s4628_s2 }
 0x64a   :  { %2068 = vrot.lane.b32.xlu2 %v4790_v27, %s4628_s2 }
 0x64b   :  { %v1630_v28 = vpop.xlane.xlu0 %1629 }
 0x64c   :  { %4457 = vrcp.f32 %v1630_v28 }
 0x650   :  { %v4345_v11 = vpop.permute.xlu1 %4344 }
 0x651   :  { %v4347_v43 = vunpack.i.h.bf16 %v4345_v11  ;;  %v4346_v2 = vunpack.i.l.bf16 %v4345_v11 }
 0x652   :  { %2096 = vrot.lane.b32.xlu2 %v4797_v29, %s4628_s2  ;;  %v4458_v17 = vpop.eup %4457 }
 0x653   :  { %1746 = vmatpush.msrb.mxu0 %v4346_v2  ;;  %v1646_v29 = vmul.f32 %v4458_v17, %v5100_v32  ;;  %v5192_v32 = vmul.f32 0.35355338, %v4962_v19 }
 0x654   :  { %4181 = vmatmul.msk.f32.vlgmr.msrb.gmra.mxu0 %vm151_vm1, %v1642_v62 }
 0x655   :  { %1798 = vmatpush.msra.mxu0 %v4347_v43  ;;  %v913_v50 = vsel %vm151_vm1, %v5192_v32, -inf }
 0x658   :  { %v4350_v30 = vpop.permute.xlu1 %4349 }
 0x659   :  { %v4352_v49 = vunpack.i.h.bf16 %v4350_v30  ;;  %v4351_v51 = vunpack.i.l.bf16 %v4350_v30 }
 0x65b   :  { %1824 = vmatpush.msra.mxu3 %v4351_v51  ;;  %1850 = vmatpush.msrb.mxu0 %v4352_v49 }
 0x65c   :  { %4183 = vmatmul.msk.f32.vlgmr.msra.gmra.mxu0 %vm151_vm1, %v1644_v31 }
 0x65e   :  { %v1120_v41 = vpop.permute.xlu0 %1119 }
 0x664   :  { %4185 = vmatmul.msk.f32.vlgmr.msrb.gmra.mxu0 %vm151_vm1, %v1646_v29 }
 0x666   :  { %v1959_v37 = vpop.permute.xlu0 %1958 }
 0x667   :  { %4196 = vmatpush.xpose.msk.msrb.mxu3 %vm151_vm1, %v1959_v37 }
 0x669   :  { %v1627_v15 = vpop.xlane.xlu2 %1626 }
 0x66a   :  { %4459 = vrcp.f32 %v1627_v15 }
 0x66b   :  { %902 = vmax.xlane.f32.xlu1 %v901_v54 }
 0x66e   :  { %v5187_v58 = vpop.permute.xlu0 %1928 }
 0x670   :  { %v4460_v45 = vpop.eup %4459 }
 0x671   :  { %v1645_v44 = vmul.f32 %v4460_v45, %v5116_v36 }
 0x673   :  { %4184 = vmatmul.msk.f32.vlgmr.msra.gmra.mxu3 %vm151_vm1, %v1645_v44 }
 0x676   :  { %v1987_v56 = vpop.permute.xlu0 %1986 }
 0x677   :  { %4198 = vmatpush.xpose.msk.msra.mxu0 %vm151_vm1, %v1987_v56 }
 0x67b   :  { %914 = vmax.xlane.f32.xlu2 %v913_v50 }
 0x67e   :  { %v2015_v53 = vpop.permute.xlu0 %2014 }
 0x683   :  { %v954_v7 = vpop.xlane.xlu1 %953 }
 0x684   :  { %4461 = vrcp.f32 %v954_v7 }
 0x685   :  { %v966_v12 = vpop.xlane.xlu2 %965  ;;  %4463 = vrcp.f32 %v5143_v60  ;;  %v144_v60 = vld [vmem:[%s6086_s3] sm:$0xff] }
 0x686   :  { %4465 = vrcp.f32 %v966_v12  ;;  %v2041_v2 = vpop.permute.xlu0 %2040 }
 0x68a   :  { %v4462_v5 = vpop.eup %4461 }
 0x68b   :  { %v982_v36 = vmul.f32 %v4462_v5, %v5131_v52  ;;  %v4464_v19 = vpop.eup %4463 }
 0x68c   :  { %v984_v38 = vmul.f32 %v4464_v19, %v5071_v59  ;;  %v4466_v33 = vpop.eup %4465  ;;  %v5213_v59 = vld [vmem:[%s6086_s3 + $0x10] sm:$0xff] }
 0x68d   :  { %4139 = vmatmul.msk.f32.vlgmr.msrb.gmra.mxu2 %vm151_vm1, %v982_v36  ;;  %v1068_v48 = vpop.permute.xlu2 %1067  ;;  %v986_v40 = vmul.f32 %v4466_v33, %v5137_v35 }
 0x68e   :  { %1088 = vmatpush.msra.mxu2 %v1068_v48  ;;  %v2099_v39 = vpop.permute.xlu0 %2098 }
 0x690   :  { %1140 = vmatpush.msrb.mxu2 %v1120_v41 }
 0x693   :  { %4354 = vrot.lane.b32.xlu2 %v4353_v34, %s4624_s16 }
 0x695   :  { %4141 = vmatmul.msk.f32.vlgmr.msra.gmra.mxu2 %vm151_vm1, %v984_v38  ;;  %v1957_v52 = vpop.permute.xlu2 %1956 }
 0x696   :  { %4197 = vmatmul.msk.f32.vlgmr.msrb.gmra.mxu3 %vm151_vm1, %v1957_v52  ;;  %1301 = vmatpush.msra.mxu2 %v144_v60 }
 0x69b   :  { %v1931_v11 = vpop.permute.xlu1 %1930 }
 0x69d   :  { %4143 = vmatmul.msk.f32.vlgmr.msrb.gmra.mxu2 %vm151_vm1, %v986_v40  ;;  %v1985_v43 = vpop.permute.xlu2 %1984 }
 0x69e   :  { %4199 = vmatmul.msk.f32.vlgmr.msra.gmra.mxu0 %vm151_vm1, %v1985_v43  ;;  %4290 = vmatpush.msrb.mxu2 %v5213_v59 }
 0x6a3   :  { %v2043_v62 = vpop.permute.xlu1 %2042 }
 0x6a4   :  { %4202 = vmatpush.xpose.msk.msra.mxu3 %vm151_vm1, %v2043_v62 }
 0x6a5   :  { %4154 = vmatmul.msk.f32.vlgmr.msra.gmra.mxu2 %vm151_vm1, %v4945_v1  ;;  %v2013_v35 = vpop.permute.xlu2 %2012  ;;  %v2125_v1 = vpop.permute.xlu0 %2124 }
 0x6a6   :  { %4194 = vmatpush.xpose.msk.msra.mxu2 %vm151_vm1, %v1931_v11 }
 0x6a7   :  { %4203 = vmatmul.msk.f32.vlgmr.msra.gmra.mxu3 %vm151_vm1, %v2041_v2 }
 0x6ab   :  { %v2071_v28 = vpop.permute.xlu1 %2070 }
 0x6ac   :  { %4204 = vmatpush.xpose.msk.msrb.mxu0 %vm151_vm1, %v2071_v28 }
 0x6ad   :  { %4155 = vmatmul.msk.f32.gmra.mxu2 %vm151_vm1, %v4941_v63  ;;  %v2069_v30 = vpop.permute.xlu2 %2068  ;;  %v5237_v63 = vpop.f32.mrf.mxu3 }
 0x6af   :  { %4205 = vmatmul.msk.f32.vlgmr.msrb.gmra.mxu0 %vm151_vm1, %v2069_v30 }
 0x6b1   :  { %v5241_v51 = vpop.f32.mrf.mxu0 }
 0x6b3   :  { %v2127_v49 = vpop.permute.xlu1 %2126 }
 0x6b4   :  { %4208 = vmatpush.xpose.msk.msrb.mxu3 %vm151_vm1, %v2127_v49 }
 0x6b5   :  { %4156 = vmatmul.msk.f32.gmra.mxu2 %vm151_vm1, %v4947_v3  ;;  %v2097_v17 = vpop.permute.xlu2 %2096 }
 0x6b7   :  { %4209 = vmatmul.msk.f32.vlgmr.msrb.gmra.mxu3 %vm151_vm1, %v2125_v1 }
 0x6bd   :  { %4157 = vmatmul.msk.f32.gmra.mxu2 %vm151_vm1, %v4951_v47  ;;  %v5243_v3 = vpop.f32.mrf.mxu3 }
 0x6c5   :  { %4158 = vmatmul.msk.f32.gmra.mxu2 %vm151_vm1, %v4943_v46 }
 0x6cd   :  { %4159 = vmatmul.msk.f32.gmra.mxu2 %vm151_vm1, %v4953_v61  ;;  %v1774_v61 = vpop.f32.mrf.mxu3 }
 0x6d1   :  { %v5248_v46 = vpop.f32.mrf.mxu0 }
 0x6d5   :  { %4160 = vmatmul.msk.f32.gmra.mxu2 %vm151_vm1, %v4956_v9 }
 0x6d9   :  { %v1800_v37 = vpop.f32.mrf.mxu0 }
 0x6dd   :  { %4161 = vmatmul.msk.f32.gmra.mxu2 %vm151_vm1, %v4949_v0 }
 0x6de   :  { %v903_v31 = vpop.xlane.xlu1 %902 }
 0x6df   :  { %v925_v47 = vsub.f32 %v5182_v42, %v903_v31 }
 0x6e1   :  { %v933_v41 = vmul.f32 1.442695, %v925_v47  ;;  %v1852_v12 = vpop.f32.mrf.mxu0 }
 0x6e3   :  { %4467 = vpow2.f32 %v933_v41 }
 0x6e5   :  { %4190 = vmatmul.msk.f32.vlgmr.msrb.gmra.mxu2 %vm151_vm1, %v1774_v61 }
 0x6e6   :  { %4200 = vmatpush.xpose.msk.msrb.mxu2 %vm151_vm1, %v2015_v53 }
 0x6e9   :  { %v4468_v9 = vpop.eup %4467 }
 0x6ea   :  { %v949_v29 = vsel %vm151_vm1, %v4468_v9, 0.0 }
 0x6eb   :  { %950 = vadd.xlane.f32.xlu0 %v949_v29 }
 0x6ed   :  { %4191 = vmatmul.msk.f32.gmra.mxu2 %vm151_vm1, %v1800_v37 }
 0x6ee   :  { %v915_v0 = vpop.xlane.xlu2 %914 }
 0x6ef   :  { %v929_v42 = vsub.f32 %v5192_v32, %v915_v0 }
 0x6f1   :  { %v941_v15 = vmul.f32 1.442695, %v929_v42 }
 0x6f3   :  { %4469 = vpow2.f32 %v941_v15 }
 0x6f6   :  { %v1826_v54 = vpop.f32.mrf.mxu3  ;;  %v4355_v45 = vpop.permute.xlu2 %4354 }
 0x6f7   :  { %v4357_v44 = vunpack.i.h.bf16 %v4355_v45  ;;  %v4356_v56 = vunpack.i.l.bf16 %v4355_v45  ;;  %4192 = vmatmul.msk.f32.gmra.mxu2 %vm151_vm1, %v1826_v54 }
 0x6f9   :  { %v4470_v50 = vpop.eup %4469  ;;  %1010 = vmatpush.msrb.mxu1 %v4356_v56 }
 0x6fa   :  { %v961_v7 = vsel %vm151_vm1, %v4470_v50, 0.0 }
 0x6fb   :  { %1114 = vmatpush.msra.mxu1 %v4357_v44  ;;  %962 = vadd.xlane.f32.xlu0 %v961_v7 }
 0x6ff   :  { %4193 = vmatmul.msk.f32.gmra.mxu2 %vm151_vm1, %v1852_v12 }
 0x707   :  { %4195 = vmatmul.msk.f32.vlgmr.msra.gmra.mxu2 %vm151_vm1, %v5187_v58 }
 0x708   :  { %4206 = vmatpush.xpose.msk.msra.mxu2 %vm151_vm1, %v2099_v39 }
 0x70f   :  { %4201 = vmatmul.msk.f32.vlgmr.msrb.gmra.mxu2 %vm151_vm1, %v2013_v35 }
 0x710   :  { %v5262_v32 = vpop.f32.mrf.mxu2 }
 0x717   :  { %4207 = vmatmul.msk.f32.vlgmr.msra.gmra.mxu2 %vm151_vm1, %v2097_v17 }
 0x718   :  { %v5265_v5 = vpop.f32.mrf.mxu2 }
 0x719   :  { %v1981_v36 = vpop.f32.mrf.mxu3 }
 0x71a   :  { %v2153_v48 = vmul.f32 0.35355338, %v1981_v36 }
 0x71b   :  { %v2009_v19 = vpop.f32.mrf.mxu0 }
 0x71c   :  { %v2154_v34 = vmul.f32 0.35355338, %v2009_v19  ;;  %v2163_v38 = vsel %vm151_vm1, %v2153_v48, -inf }
 0x71d   :  { %2164 = vmax.xlane.f32.xlu0 %v2163_v38 }
 0x71e   :  { %v2166_v60 = vsel %vm151_vm1, %v2154_v34, -inf }
 0x71f   :  { %2167 = vmax.xlane.f32.xlu1 %v2166_v60 }
 0x720   :  { %v5269_v58 = vpop.f32.mrf.mxu2 }
 0x728   :  { %v5271_v52 = vpop.f32.mrf.mxu2 }
 0x72a   :  { %v2065_v33 = vpop.f32.mrf.mxu3 }
 0x72b   :  { %v2156_v53 = vmul.f32 0.35355338, %v2065_v33 }
 0x72c   :  { %v2093_v40 = vpop.f32.mrf.mxu0 }
 0x72d   :  { %v2157_v11 = vmul.f32 0.35355338, %v2093_v40  ;;  %v2172_v43 = vsel %vm151_vm1, %v2156_v53, -inf }
 0x72e   :  { %2173 = vmax.xlane.f32.xlu0 %v2172_v43 }
 0x72f   :  { %v2175_v2 = vsel %vm151_vm1, %v2157_v11, -inf }
 0x730   :  { %v5275_v62 = vpop.f32.mrf.mxu2  ;;  %2176 = vmax.xlane.f32.xlu1 %v2175_v2 }
 0x738   :  { %v5277_v35 = vpop.f32.mrf.mxu2 }
 0x73a   :  { %v2149_v28 = vpop.f32.mrf.mxu3 }
 0x73b   :  { %v5279_v39 = vmul.f32 0.35355338, %v2149_v28 }
 0x73d   :  { %v2181_v30 = vsel %vm151_vm1, %v5279_v39, -inf }
 0x73e   :  { %2182 = vmax.xlane.f32.xlu0 %v2181_v30 }
 0x740   :  { %v5283_v49 = vpop.f32.mrf.mxu2 }
 0x748   :  { %v5285_v1 = vpop.f32.mrf.mxu2 }
 0x750   :  { %v5287_v31 = vpop.f32.mrf.mxu2 }
 0x758   :  { %v5289_v47 = vpop.f32.mrf.mxu2 }
 0x75e   :  { %v951_v41 = vpop.xlane.xlu0 %950 }
 0x75f   :  { %4471 = vrcp.f32 %v951_v41 }
 0x760   :  { %v5291_v61 = vpop.f32.mrf.mxu2 }
 0x765   :  { %v4472_v17 = vpop.eup %4471 }
 0x766   :  { %v981_v29 = vmul.f32 %v4472_v17, %v4468_v9 }
 0x768   :  { %4138 = vmatmul.msk.f32.vlgmr.msrb.gmra.mxu1 %vm151_vm1, %v981_v29  ;;  %v5294_v37 = vpop.f32.mrf.mxu2 }
 0x76e   :  { %v963_v0 = vpop.xlane.xlu0 %962 }
 0x76f   :  { %4473 = vrcp.f32 %v963_v0 }
 0x770   :  { %v5296_v42 = vpop.f32.mrf.mxu2 }
 0x775   :  { %v4474_v15 = vpop.eup %4473 }
 0x776   :  { %v985_v54 = vmul.f32 %v4474_v15, %v4470_v50 }
 0x778   :  { %4142 = vmatmul.msk.f32.vlgmr.msra.gmra.mxu1 %vm151_vm1, %v985_v54 }
 0x77a   :  { %v5299_v45 = vpop.f32.mrf.mxu2 }
 0x782   :  { %v5301_v44 = vpop.f32.mrf.mxu2 }
 0x78a   :  { %v1953_v56 = vpop.f32.mrf.mxu2 }
 0x78b   :  { %v2152_v7 = vmul.f32 0.35355338, %v1953_v56 }
 0x78d   :  { %v2160_v9 = vsel %vm151_vm1, %v2152_v7, -inf }
 0x78e   :  { %2161 = vmax.xlane.f32.xlu1 %v2160_v9 }
 0x790   :  { %v2165_v12 = vpop.xlane.xlu0 %2164 }
 0x791   :  { %v2185_v36 = vsub.f32 %v2153_v48, %v2165_v12 }
 0x792   :  { %v2037_v19 = vpop.f32.mrf.mxu2  ;;  %v2168_v38 = vpop.xlane.xlu1 %2167 }
 0x793   :  { %v2194_v60 = vmul.f32 1.442695, %v2185_v36  ;;  %v5304_v33 = vmul.f32 0.35355338, %v2037_v19  ;;  %v2186_v40 = vsub.f32 %v2154_v34, %v2168_v38 }
 0x795   :  { %4475 = vpow2.f32 %v2194_v60  ;;  %v2169_v50 = vsel %vm151_vm1, %v5304_v33, -inf  ;;  %v2196_v43 = vmul.f32 1.442695, %v2186_v40  ;;  %v145_v60 = vld [vmem:[%s6086_s3 + $0x8] sm:$0xff] }
 0x796   :  { %2170 = vmax.xlane.f32.xlu1 %v2169_v50  ;;  %1236 = vmatpush.msrb.mxu1 %v145_v60 }
 0x797   :  { %4477 = vpow2.f32 %v2196_v43 }
 0x798   :  { %1894 = vmatpush.msra.mxu1 %v5213_v59 }
 0x79a   :  { %v2121_v2 = vpop.f32.mrf.mxu2 }
 0x79b   :  { %v5308_v28 = vpop.eup %4475  ;;  %v2158_v30 = vmul.f32 0.35355338, %v2121_v2 }
 0x79c   :  { %v2211_v48 = vsel %vm151_vm1, %v5308_v28, 0.0 }
 0x79d   :  { %2212 = vadd.xlane.f32.xlu0 %v2211_v48  ;;  %v2178_v41 = vsel %vm151_vm1, %v2158_v30, -inf  ;;  %v5313_v17 = vpop.eup %4477 }
 0x79e   :  { %2179 = vmax.xlane.f32.xlu2 %v2178_v41  ;;  %v2214_v56 = vsel %vm151_vm1, %v5313_v17, 0.0 }
 0x7a1   :  { %v2174_v34 = vpop.xlane.xlu0 %2173 }
 0x7a2   :  { %v2188_v29 = vsub.f32 %v2156_v53, %v2174_v34  ;;  %v4363_v53 = vpack.i.bf16 %v4782_v24, %v4779_v23 }
 0x7a3   :  { %v2177_v0 = vpop.xlane.xlu1 %2176 }
 0x7a4   :  { %v2200_v15 = vmul.f32 1.442695, %v2188_v29  ;;  %v2189_v54 = vsub.f32 %v2157_v11, %v2177_v0  ;;  %v4368_v11 = vpack.i.bf16 %v4790_v27, %v4787_v26 }
 0x7a5   :  { %2215 = vadd.xlane.f32.xlu0 %v2214_v56 }
 0x7a6   :  { %4479 = vpow2.f32 %v2200_v15  ;;  %v2202_v9 = vmul.f32 1.442695, %v2189_v54 }
 0x7a8   :  { %4481 = vpow2.f32 %v2202_v9 }
 0x7ac   :  { %v5317_v12 = vpop.eup %4479 }
 0x7ad   :  { %v2220_v36 = vsel %vm151_vm1, %v5317_v12, 0.0 }
 0x7ae   :  { %2221 = vadd.xlane.f32.xlu2 %v2220_v36  ;;  %v4482_v19 = vpop.eup %4481 }
 0x7af   :  { %v2223_v38 = vsel %vm151_vm1, %v4482_v19, 0.0 }
 0x7b1   :  { %v2183_v40 = vpop.xlane.xlu0 %2182 }
 0x7b2   :  { %v2191_v50 = vsub.f32 %v5279_v39, %v2183_v40 }
 0x7b4   :  { %v2206_v43 = vmul.f32 1.442695, %v2191_v50 }
 0x7b6   :  { %2224 = vadd.xlane.f32.xlu2 %v2223_v38  ;;  %4483 = vpow2.f32 %v2206_v43 }
 0x7b9   :  { %4364 = vrot.lane.b32.xlu0 %v4363_v53, %s4629_s23 }
 0x7bc   :  { %v5334_v24 = vpop.eup %4483 }
 0x7bd   :  { %v2229_v26 = vsel %vm151_vm1, %v5334_v24, 0.0 }
 0x7c1   :  { %4369 = vrot.lane.b32.xlu0 %v4368_v11, %s4629_s23 }
 0x7e5   :  { %v1012_v23 = vpop.f32.mrf.mxu1 }
 0x7e6   :  { %4146 = vmatmul.msk.f32.vlgmr.msrb.gmra.mxu1 %vm151_vm1, %v1012_v23 }
 0x7eb   :  { %2230 = vadd.xlane.f32.xlu0 %v2229_v26 }
 0x7ee   :  { %4147 = vmatmul.msk.f32.gmra.mxu1 %vm151_vm1, %v5262_v32 }
 0x7f5   :  { %v1116_v2 = vpop.f32.mrf.mxu1 }
 0x7f6   :  { %4148 = vmatmul.msk.f32.gmra.mxu1 %vm151_vm1, %v5043_v55 }
 0x7fe   :  { %4149 = vmatmul.msk.f32.gmra.mxu1 %vm151_vm1, %v5265_v5 }
 0x801   :  { %v2162_v27 = vpop.xlane.xlu1 %2161 }
 0x802   :  { %v2184_v59 = vsub.f32 %v2152_v7, %v2162_v27 }
 0x804   :  { %v2192_v39 = vmul.f32 1.442695, %v2184_v59 }
 0x806   :  { %4485 = vpow2.f32 %v2192_v39  ;;  %4150 = vmatmul.msk.f32.gmra.mxu1 %vm151_vm1, %v1116_v2 }
 0x80c   :  { %v4486_v48 = vpop.eup %4485 }
 0x80d   :  { %v2208_v41 = vsel %vm151_vm1, %v4486_v48, 0.0 }
 0x80e   :  { %4151 = vmatmul.msk.f32.gmra.mxu1 %vm151_vm1, %v5269_v58  ;;  %2209 = vadd.xlane.f32.xlu1 %v2208_v41 }
 0x810   :  { %v2213_v5 = vpop.xlane.xlu0 %2212 }
 0x811   :  { %v2180_v32 = vpop.xlane.xlu2 %2179 }
 0x812   :  { %v2190_v34 = vsub.f32 %v2158_v30, %v2180_v32  ;;  %v4358_v30 = vpack.i.bf16 %v4776_v22, %v4773_v21 }
 0x814   :  { %v2204_v55 = vmul.f32 1.442695, %v2190_v34 }
 0x816   :  { %4487 = vpow2.f32 %v2204_v55  ;;  %4152 = vmatmul.msk.f32.gmra.mxu1 %vm151_vm1, %v5045_v57 }
 0x818   :  { %v2216_v0 = vpop.xlane.xlu0 %2215 }
 0x819   :  { %4489 = vrcp.f32 %v2216_v0 }
 0x81c   :  { %v5350_v7 = vpop.eup %4487 }
 0x81d   :  { %v2226_v29 = vsel %vm151_vm1, %v5350_v7, 0.0 }
 0x81e   :  { %4153 = vmatmul.msk.f32.gmra.mxu1 %vm151_vm1, %v5049_v4  ;;  %2227 = vadd.xlane.f32.xlu2 %v2226_v29 }
 0x81f   :  { %v4490_v57 = vpop.eup %4489 }
 0x820   :  { %v2242_v9 = vmul.f32 %v4490_v57, %v5313_v17 }
 0x821   :  { %v2222_v58 = vpop.xlane.xlu2 %2221 }
 0x826   :  { %4186 = vmatmul.msk.f32.vlgmr.msra.gmra.mxu1 %vm151_vm1, %v5237_v63  ;;  %v2171_v63 = vpop.xlane.xlu1 %2170 }
 0x827   :  { %4359 = vrot.lane.b32.xlu1 %v4358_v30, %s4629_s23 }
 0x829   :  { %v2225_v15 = vpop.xlane.xlu2 %2224 }
 0x82a   :  { %4491 = vrcp.f32 %v2225_v15 }
 0x82b   :  { %v4365_v54 = vpop.permute.xlu0 %4364 }
 0x82c   :  { %v4366_v56 = vunpack.i.l.bf16 %v4365_v54  ;;  %v4367_v23 = vunpack.i.h.bf16 %v4365_v54 }
 0x82e   :  { %4187 = vmatmul.msk.f32.gmra.mxu1 %vm151_vm1, %v5241_v51  ;;  %2321 = vmatpush.msra.mxu3 %v4366_v56  ;;  %v2187_v51 = vsub.f32 %v5304_v33, %v2171_v63 }
 0x82f   :  { %4212 = vmatmul.msk.f32.vlgmr.msra.gmra.mxu3 %vm151_vm1, %v2242_v9 }
 0x830   :  { %v4492_v4 = vpop.eup %4491  ;;  %v2198_v17 = vmul.f32 1.442695, %v2187_v51 }
 0x831   :  { %v2245_v36 = vmul.f32 %v4492_v4, %v4482_v19 }
 0x832   :  { %4493 = vpow2.f32 %v2198_v17 }
 0x833   :  { %v4370_v21 = vpop.permute.xlu0 %4369  ;;  %4495 = vrcp.f32 %v2213_v5 }
 0x834   :  { %v4372_v22 = vunpack.i.h.bf16 %v4370_v21  ;;  %v4371_v26 = vunpack.i.l.bf16 %v4370_v21 }
 0x836   :  { %4188 = vmatmul.msk.f32.gmra.mxu1 %vm151_vm1, %v5243_v3  ;;  %4374 = vrot.lane.b32.xlu2 %v5110_v25, %s4629_s23 }
 0x837   :  { %2399 = vmatpush.msrb.mxu3 %v4372_v22 }
 0x838   :  { %4215 = vmatmul.msk.f32.vlgmr.msrb.gmra.mxu3 %vm151_vm1, %v2245_v36  ;;  %v4494_v38 = vpop.eup %4493 }
 0x839   :  { %v2217_v19 = vsel %vm151_vm1, %v4494_v38, 0.0  ;;  %v4496_v25 = vpop.eup %4495 }
 0x83e   :  { %4189 = vmatmul.msk.f32.gmra.mxu1 %vm151_vm1, %v5248_v46  ;;  %v2241_v46 = vmul.f32 %v4496_v25, %v5308_v28 }
 0x851   :  { %2218 = vadd.xlane.f32.xlu1 %v2217_v19 }
 0x85e   :  { %v2231_v39 = vpop.xlane.xlu0 %2230 }
 0x863   :  { %v1238_v30 = vpop.f32.mrf.mxu1 }
 0x864   :  { %v1304_v19 = vadd.f32 %v5271_v52, %v1238_v30 }
 0x881   :  { %v2210_v53 = vpop.xlane.xlu1 %2209 }
 0x882   :  { %4497 = vrcp.f32 %v2210_v53 }
 0x883   :  { %4499 = vrcp.f32 %v2222_v58 }
 0x884   :  { %4501 = vrcp.f32 %v2231_v39 }
 0x888   :  { %v4498_v11 = vpop.eup %4497 }
 0x889   :  { %v2240_v33 = vmul.f32 %v4498_v11, %v4486_v48  ;;  %v4500_v2 = vpop.eup %4499 }
 0x88a   :  { %v2244_v28 = vmul.f32 %v4500_v2, %v5317_v12  ;;  %v4502_v48 = vpop.eup %4501  ;;  %v147_v12 = vld [vmem:[%s6086_s3 + $0x18] sm:$0xff] }
 0x88b   :  { %v2247_v41 = vmul.f32 %v4502_v48, %v5334_v24  ;;  %2495 = vmatpush.msra.mxu3 %v147_v12 }
 0x891   :  { %v2228_v3 = vpop.xlane.xlu2 %2227 }
 0x899   :  { %v4360_v60 = vpop.permute.xlu1 %4359  ;;  %v4375_v43 = vpop.permute.xlu2 %4374 }
 0x89a   :  { %v4362_v40 = vunpack.i.h.bf16 %v4360_v60  ;;  %v4361_v50 = vunpack.i.l.bf16 %v4360_v60  ;;  %v4377_v27 = vunpack.i.h.bf16 %v4375_v43  ;;  %v4376_v59 = vunpack.i.l.bf16 %v4375_v43 }
 0x89c   :  { %2269 = vmatpush.msra.mxu0 %v4361_v50  ;;  %2295 = vmatpush.msrb.mxu2 %v4362_v40 }
 0x89d   :  { %4210 = vmatmul.msk.f32.vlgmr.msra.gmra.mxu0 %vm151_vm1, %v2240_v33  ;;  %4211 = vmatmul.msk.f32.vlgmr.msrb.gmra.mxu2 %vm151_vm1, %v2241_v46 }
 0x89e   :  { %2347 = vmatpush.msrb.mxu0 %v4367_v23  ;;  %2373 = vmatpush.msra.mxu2 %v4371_v26 }
 0x8a0   :  { %2425 = vmatpush.msra.mxu0 %v4376_v59  ;;  %2451 = vmatpush.msrb.mxu2 %v4377_v27 }
 0x8a5   :  { %4214 = vmatmul.msk.f32.vlgmr.msra.gmra.mxu2 %vm151_vm1, %v2244_v28 }
 0x8ad   :  { %4217 = vmatmul.msk.f32.vlgmr.msrb.gmra.mxu2 %vm151_vm1, %v2247_v41 }
 0x8b2   :  { %v2323_v58 = vpop.f32.mrf.mxu3 }
 0x8bb   :  { %v2401_v56 = vpop.f32.mrf.mxu3 }
 0x8c4   :  { %v2219_v32 = vpop.xlane.xlu1 %2218 }
 0x8c5   :  { %4503 = vrcp.f32 %v2219_v32 }
 0x8c6   :  { %4505 = vrcp.f32 %v2228_v3 }
 0x8cb   :  { %v4504_v34 = vpop.eup %4503 }
 0x8cc   :  { %v2243_v55 = vmul.f32 %v4504_v34, %v4494_v38  ;;  %v4506_v5 = vpop.eup %4505  ;;  %v5398_v38 = vld [vmem:[%s6090_s7] sm:$0xff] }
 0x8cd   :  { %v2246_v29 = vmul.f32 %v4506_v5, %v5350_v7  ;;  %v1241_v7 = vpop.f32.mrf.mxu1  ;;  %v2529_v3 = vperm.slane %v5398_v38, 0 }
 0x8ce   :  { %4213 = vmatmul.msk.f32.vlgmr.msrb.gmra.mxu0 %vm151_vm1, %v2243_v55  ;;  %v1307_v50 = vadd.f32 %v5275_v62, %v1241_v7 }
 0x8d5   :  { %v1244_v54 = vpop.f32.mrf.mxu1 }
 0x8d6   :  { %4216 = vmatmul.msk.f32.vlgmr.msra.gmra.mxu0 %vm151_vm1, %v2246_v29  ;;  %v1310_v59 = vadd.f32 %v5277_v35, %v1244_v54 }
 0x8dd   :  { %v1247_v4 = vpop.f32.mrf.mxu1 }
 0x8de   :  { %v1313_v35 = vadd.f32 %v5283_v49, %v1247_v4 }
 0x8e5   :  { %v1250_v22 = vpop.f32.mrf.mxu1 }
 0x8e6   :  { %v1316_v29 = vadd.f32 %v5285_v1, %v1250_v22 }
 0x8ed   :  { %v1253_v36 = vpop.f32.mrf.mxu1 }
 0x8f5   :  { %v1256_v63 = vpop.f32.mrf.mxu1 }
 0x8fd   :  { %v1259_v51 = vpop.f32.mrf.mxu1 }
 0x905   :  { %v1896_v17 = vpop.f32.mrf.mxu1 }
 0x906   :  { %v1920_v53 = vadd.f32 %v1896_v17, %v1304_v19 }
 0x90d   :  { %v1899_v60 = vpop.f32.mrf.mxu1 }
 0x90e   :  { %v1921_v46 = vadd.f32 %v1899_v60, %v1307_v50 }
 0x915   :  { %v1902_v27 = vpop.f32.mrf.mxu1 }
 0x916   :  { %v1922_v2 = vadd.f32 %v1902_v27, %v1310_v59 }
 0x91a   :  { %v2271_v24 = vpop.f32.mrf.mxu0 }
 0x91b   :  { %4218 = vmatmul.msk.f32.vlgmr.msra.gmra.mxu3 %vm151_vm1, %v2271_v24 }
 0x91d   :  { %v1905_v34 = vpop.f32.mrf.mxu1 }
 0x920   :  { %v2297_v0 = vpop.f32.mrf.mxu2 }
 0x923   :  { %4219 = vmatmul.msk.f32.gmra.mxu3 %vm151_vm1, %v2297_v0  ;;  %v1924_v0 = vadd.f32 %v5294_v37, %v1316_v29  ;;  %v1322_v37 = vadd.f32 %v5289_v47, %v1256_v63 }
 0x925   :  { %v1926_v4 = vadd.f32 %v5299_v45, %v1322_v37 }
 0x928   :  { %v2375_v15 = vpop.f32.mrf.mxu2 }
 0x92b   :  { %4220 = vmatmul.msk.f32.gmra.mxu3 %vm151_vm1, %v2323_v58 }
 0x930   :  { %v2453_v21 = vpop.f32.mrf.mxu2 }
 0x94b   :  { %v2349_v57 = vpop.f32.mrf.mxu0 }
 0x94c   :  { %4221 = vmatmul.msk.f32.gmra.mxu3 %vm151_vm1, %v2349_v57  ;;  %v1319_v57 = vadd.f32 %v5287_v31, %v1253_v36 }
 0x953   :  { %v2427_v9 = vpop.f32.mrf.mxu0 }
 0x954   :  { %4222 = vmatmul.msk.f32.gmra.mxu3 %vm151_vm1, %v2375_v15  ;;  %v1925_v15 = vadd.f32 %v5296_v42, %v1319_v57 }
 0x95c   :  { %4223 = vmatmul.msk.f32.gmra.mxu3 %vm151_vm1, %v2401_v56 }
 0x964   :  { %4224 = vmatmul.msk.f32.gmra.mxu3 %vm151_vm1, %v2427_v9 }
 0x96c   :  { %4225 = vmatmul.msk.f32.gmra.mxu3 %vm151_vm1, %v2453_v21 }
 0x99e   :  { %v2497_v25 = vpop.f32.mrf.mxu3 }
 0x99f   :  { %v2521_v11 = vadd.f32 %v2497_v25, %v1920_v53  ;;  %v4630_v25 = vmov 32.0  }
 0x9a0   :  { %4507 = vrcp.f32 %v4630_v25 }
 0x9a1   :  { %v2530_v40 = vadd.f32 %v2529_v3, %v2521_v11 }
 0x9a3   :  { %v5404_v43 = vadd.f32 %v2530_v40, %v4720_v6 }
 0x9a5   :  { %v2546_v33 = vsel %vm78_vm0, %v5404_v43, 0.0 }
 0x9a6   :  { %v2500_v23 = vpop.f32.mrf.mxu3  ;;  %2547 = vadd.xlane.f32.xlu1 %v2546_v33  ;;  %v4508_v11 = vpop.eup %4507 }
 0x9a7   :  { %v2522_v26 = vadd.f32 %v2500_v23, %v1921_v46  ;;  %vm2575_vm2 = vweird.f32 %v4508_v11 }
 0x9a9   :  { %v2531_v52 = vadd.f32 %v2529_v3, %v2522_v26 }
 0x9ab   :  { %v5410_v39 = vadd.f32 %v2531_v52, %v4727_v8  ;;  %v1923_v8 = vadd.f32 %v1905_v34, %v1313_v35 }
 0x9ad   :  { %v2549_v62 = vsel %vm78_vm0, %v5410_v39, 0.0 }
 0x9ae   :  { %v2503_v6 = vpop.f32.mrf.mxu3  ;;  %2550 = vadd.xlane.f32.xlu2 %v2549_v62 }
 0x9af   :  { %v2523_v28 = vadd.f32 %v2503_v6, %v1922_v2 }
 0x9b1   :  { %v2532_v48 = vadd.f32 %v2529_v3, %v2523_v28 }
 0x9b3   :  { %v5415_v41 = vadd.f32 %v2532_v48, %v4734_v10 }
 0x9b5   :  { %v2552_v32 = vsel %vm78_vm0, %v5415_v41, 0.0 }
 0x9b6   :  { %2553 = vadd.xlane.f32.xlu1 %v2552_v32 }
 0x9cf   :  { %v2506_v55 = vpop.f32.mrf.mxu3 }
 0x9d0   :  { %v2524_v5 = vadd.f32 %v2506_v55, %v1923_v8 }
 0x9d2   :  { %v2533_v12 = vadd.f32 %v2529_v3, %v2524_v5 }
 0x9d4   :  { %v5422_v24 = vadd.f32 %v2533_v12, %v4748_v14 }
 0x9d6   :  { %v2555_v10 = vsel %vm78_vm0, %v5422_v24, 0.0 }
 0x9d7   :  { %v2509_v58 = vpop.f32.mrf.mxu3  ;;  %2556 = vadd.xlane.f32.xlu1 %v2555_v10 }
 0x9d8   :  { %v2525_v30 = vadd.f32 %v2509_v58, %v1924_v0 }
 0x9da   :  { %v2534_v49 = vadd.f32 %v2529_v3, %v2525_v30 }
 0x9dc   :  { %v2542_v7 = vadd.f32 %v2534_v49, %v4755_v16  ;;  %v1325_v16 = vadd.f32 %v5291_v61, %v1259_v51  ;;  %v2571_v61 = vmul.f32 32.0, %v4508_v11 }
 0x9de   :  { %v2558_v1 = vsel %vm78_vm0, %v2542_v7, 0.0  ;;  %v1927_v17 = vadd.f32 %v5301_v44, %v1325_v16  ;;  %v2572_v51 = vsub.f32 1.0, %v2571_v61 }
 0x9df   :  { %v2512_v54 = vpop.f32.mrf.mxu3  ;;  %2559 = vadd.xlane.f32.xlu0 %v2558_v1 }
 0x9e0   :  { %v2526_v14 = vadd.f32 %v2512_v54, %v1925_v15  ;;  %v2573_v60 = vmul.f32 %v4508_v11, %v2572_v51 }
 0x9e2   :  { %v2535_v56 = vadd.f32 %v2529_v3, %v2526_v14 }
 0x9e4   :  { %v2543_v9 = vadd.f32 %v2535_v56, %v4762_v18  ;;  %v2750_v56 = vld [vmem:[%s6087_s4 + $0x18] sm:$0xff] }
 0x9e5   :  { %2791 = vmatpush.msrb.mxu0 %v2750_v56 }
 0x9e6   :  { %v2561_v21 = vsel %vm78_vm0, %v2543_v9, 0.0 }
 0x9e7   :  { %v2515_v31 = vpop.f32.mrf.mxu3  ;;  %2562 = vadd.xlane.f32.xlu1 %v2561_v21  ;;  %v2747_v21 = vld [vmem:[%s6087_s4] sm:$0xff] }
 0x9e8   :  { %v2527_v22 = vadd.f32 %v2515_v31, %v1926_v4  ;;  %v2748_v4 = vld [vmem:[%s6087_s4 + $0x8] sm:$0xff] }
 0x9ea   :  { %v2536_v42 = vadd.f32 %v2529_v3, %v2527_v22 }
 0x9ec   :  { %v2544_v36 = vadd.f32 %v2536_v42, %v4769_v20  ;;  %v2574_v20 = vadd.f32 %v4508_v11, %v2573_v60 }
 0x9ee   :  { %v2564_v19 = vsel %vm78_vm0, %v2544_v36, 0.0  ;;  %v5441_v44 = vsel %vm2575_vm2, %v4508_v11, %v2574_v20  ;;  %v5511_v20 = vperm.slane %v5398_v38, 1 }
 0x9ef   :  { %v2518_v47 = vpop.f32.mrf.mxu3  ;;  %2565 = vadd.xlane.f32.xlu1 %v2564_v19 }
 0x9f0   :  { %v2528_v63 = vadd.f32 %v2518_v47, %v1927_v17 }
 0x9f2   :  { %v2537_v18 = vadd.f32 %v2529_v3, %v2528_v63 }
 0x9f4   :  { %v2545_v45 = vadd.f32 %v2537_v18, %v4744_v13 }
 0x9f6   :  { %v2567_v53 = vsel %vm78_vm0, %v2545_v45, 0.0 }
 0x9f7   :  { %2568 = vadd.xlane.f32.xlu1 %v2567_v53 }
 0xa19   :  { %v2548_v40 = vpop.xlane.xlu1 %2547 }
 0xa1a   :  { %v2577_v50 = vmul.f32 %v5441_v44, %v2548_v40 }
 0xa1c   :  { %v5445_v3 = vsub.f32 %v5404_v43, %v2577_v50 }
 0xa1e   :  { %v2593_v13 = vmul.f32 %v5445_v3, %v5445_v3 }
 0xa20   :  { %v2601_v46 = vsel %vm78_vm0, %v2593_v13, 0.0 }
 0xa21   :  { %v2551_v33 = vpop.xlane.xlu2 %2550  ;;  %2602 = vadd.xlane.f32.xlu0 %v2601_v46  ;;  %v5515_v46 = vperm.slane %v5398_v38, 2 }
 0xa22   :  { %v2578_v23 = vmul.f32 %v5441_v44, %v2551_v33 }
 0xa24   :  { %v5452_v26 = vsub.f32 %v5410_v39, %v2578_v23 }
 0xa26   :  { %v2594_v52 = vmul.f32 %v5452_v26, %v5452_v26 }
 0xa28   :  { %v2604_v27 = vsel %vm78_vm0, %v2594_v52, 0.0 }
 0xa29   :  { %2605 = vadd.xlane.f32.xlu0 %v2604_v27  ;;  %v2554_v43 = vpop.xlane.xlu1 %2553 }
 0xa2a   :  { %v2579_v59 = vmul.f32 %v5441_v44, %v2554_v43 }
 0xa2c   :  { %v5459_v2 = vsub.f32 %v5415_v41, %v2579_v59 }
 0xa2e   :  { %v2595_v62 = vmul.f32 %v5459_v2, %v5459_v2 }
 0xa30   :  { %v2607_v6 = vsel %vm78_vm0, %v2595_v62, 0.0 }
 0xa31   :  { %2608 = vadd.xlane.f32.xlu0 %v2607_v6 }
 0xa4a   :  { %v2557_v39 = vpop.xlane.xlu1 %2556 }
 0xa4b   :  { %v2580_v28 = vmul.f32 %v5441_v44, %v2557_v39 }
 0xa4d   :  { %v5466_v48 = vsub.f32 %v5422_v24, %v2580_v28 }
 0xa4f   :  { %v2596_v32 = vmul.f32 %v5466_v48, %v5466_v48 }
 0xa51   :  { %v2610_v34 = vsel %vm78_vm0, %v2596_v32, 0.0 }
 0xa52   :  { %v2560_v35 = vpop.xlane.xlu0 %2559  ;;  %2611 = vadd.xlane.f32.xlu2 %v2610_v34 }
 0xa53   :  { %v2581_v41 = vmul.f32 %v5441_v44, %v2560_v35 }
 0xa55   :  { %v5472_v8 = vsub.f32 %v2542_v7, %v2581_v41 }
 0xa57   :  { %v2597_v55 = vmul.f32 %v5472_v8, %v5472_v8 }
 0xa59   :  { %v2613_v5 = vsel %vm78_vm0, %v2597_v55, 0.0 }
 0xa5a   :  { %2614 = vadd.xlane.f32.xlu1 %v2613_v5  ;;  %v2563_v29 = vpop.xlane.xlu1 %2562 }
 0xa5b   :  { %v2582_v12 = vmul.f32 %v5441_v44, %v2563_v29 }
 0xa5d   :  { %v5478_v24 = vsub.f32 %v2543_v9, %v2582_v12  ;;  %v2749_v9 = vld [vmem:[%s6087_s4 + $0x10] sm:$0xff]  ;;  %s5753_s4 = sld [smem:[#allocation2 + $0x1]] }
 0xa5e   :  { %2792 = vmatpush.msrb.mxu0 %v2749_v9 }
 0xa5f   :  { %v2598_v0 = vmul.f32 %v5478_v24, %v5478_v24 }
 0xa60   :  { %2793 = vmatpush.msrb.mxu0 %v2748_v4 }
 0xa61   :  { %v2616_v10 = vsel %vm78_vm0, %v2598_v0, 0.0 }
 0xa62   :  { %2617 = vadd.xlane.f32.xlu0 %v2616_v10  ;;  %v2566_v58 = vpop.xlane.xlu1 %2565  ;;  %2794 = vmatpush.msrb.mxu0 %v2747_v21 }
 0xa63   :  { %v2583_v30 = vmul.f32 %v5441_v44, %v2566_v58 }
 0xa65   :  { %v5484_v57 = vsub.f32 %v2544_v36, %v2583_v30 }
 0xa67   :  { %v2599_v49 = vmul.f32 %v5484_v57, %v5484_v57 }
 0xa69   :  { %v2619_v7 = vsel %vm78_vm0, %v2599_v49, 0.0 }
 0xa6a   :  { %2620 = vadd.xlane.f32.xlu2 %v2619_v7  ;;  %v2569_v15 = vpop.xlane.xlu1 %2568 }
 0xa6b   :  { %v2584_v1 = vmul.f32 %v5441_v44, %v2569_v15 }
 0xa6d   :  { %v5490_v54 = vsub.f32 %v2545_v45, %v2584_v1 }
 0xa6f   :  { %v2600_v14 = vmul.f32 %v5490_v54, %v5490_v54 }
 0xa71   :  { %v2622_v37 = vsel %vm78_vm0, %v2600_v14, 0.0 }
 0xa72   :  { %2623 = vadd.xlane.f32.xlu1 %v2622_v37 }
 0xa94   :  { %v2603_v31 = vpop.xlane.xlu0 %2602 }
 0xa95   :  { %v2625_v22 = vmul.f32 %v2603_v31, %v5441_v44 }
 0xa97   :  { %v2633_v16 = vadd.f32 1e-05, %v2625_v22 }
 0xa99   :  { %4509 = vrsqrt.f32 %v2633_v16  ;;  %vm2647_vm4 = vweird.f32 %v2633_v16 }
 0xa9c   :  { %v2606_v42 = vpop.xlane.xlu0 %2605 }
 0xa9d   :  { %v2626_v36 = vmul.f32 %v2606_v42, %v5441_v44 }
 0xa9f   :  { %v4510_v17 = vpop.eup %4509  ;;  %v2634_v19 = vadd.f32 1e-05, %v2626_v36 }
 0xaa0   :  { %v2642_v47 = vmul.f32 %v4510_v17, %v2633_v16  ;;  %vm2648_vm3 = vweird.f32 %v4510_v17 }
 0xaa1   :  { %4511 = vrsqrt.f32 %v2634_v19  ;;  %vm2649_vm5 = vmor %vm2647_vm4, %vm2648_vm3  ;;  %vm2657_vm7 = vweird.f32 %v2634_v19 }
 0xaa2   :  { %v2643_v63 = vmul.f32 %v4510_v17, %v2642_v47 }
 0xaa4   :  { %v2644_v18 = vmul.f32 0.5, %v2643_v63  ;;  %v2609_v45 = vpop.xlane.xlu0 %2608 }
 0xaa5   :  { %v2627_v53 = vmul.f32 %v2609_v45, %v5441_v44 }
 0xaa6   :  { %v2645_v25 = vsub.f32 1.5, %v2644_v18 }
 0xaa7   :  { %v4512_v11 = vpop.eup %4511  ;;  %v2635_v61 = vadd.f32 1e-05, %v2627_v53 }
 0xaa8   :  { %v2646_v51 = vmul.f32 %v4510_v17, %v2645_v25  ;;  %v2652_v60 = vmul.f32 %v4512_v11, %v2634_v19  ;;  %vm2658_vm6 = vweird.f32 %v4512_v11 }
 0xaa9   :  { %4513 = vrsqrt.f32 %v2635_v61  ;;  %vm2659_vm8 = vmor %vm2657_vm7, %vm2658_vm6  ;;  %vm2667_vm10 = vweird.f32 %v2635_v61 }
 0xaaa   :  { %v2650_v40 = vsel %vm2649_vm5, %v4510_v17, %v2646_v51  ;;  %v2653_v50 = vmul.f32 %v4512_v11, %v2652_v60 }
 0xaab   :  { %v2721_v13 = vmul.f32 %v2650_v40, %v5445_v3 }
 0xaac   :  { %v2654_v33 = vmul.f32 0.5, %v2653_v50  ;;  %v2841_v50 = vld [vmem:[%s6089_s6 + $0x68] sm:$0xff] }
 0xaad   :  { %v2730_v23 = vmul.f32 %v5511_v20, %v2721_v13 }
 0xaae   :  { %v2655_v52 = vsub.f32 1.5, %v2654_v33 }
 0xaaf   :  { %v4514_v27 = vpop.eup %4513  ;;  %v5519_v43 = vadd.f32 %v5515_v46, %v2730_v23 }
 0xab0   :  { %v2656_v59 = vmul.f32 %v4512_v11, %v2655_v52  ;;  %v2662_v62 = vmul.f32 %v4514_v27, %v2635_v61  ;;  %vm2668_vm9 = vweird.f32 %v4514_v27  ;;  %v2842_v61 = vld [vmem:[%s6089_s6 + $0x70] sm:$0xff] }
 0xab1   :  { %4226 = vmatmul.msk.f32.vlgmr.msrb.gmra.mxu0 %vm78_vm0, %v5519_v43  ;;  %vm2669_vm11 = vmor %vm2667_vm10, %vm2668_vm9 }
 0xab2   :  { %v2660_v3 = vsel %vm2659_vm8, %v4512_v11, %v2656_v59  ;;  %v2663_v6 = vmul.f32 %v4514_v27, %v2662_v62 }
 0xab3   :  { %v2722_v39 = vmul.f32 %v2660_v3, %v5452_v26 }
 0xab4   :  { %v2664_v28 = vmul.f32 0.5, %v2663_v6  ;;  %v2839_v6 = vld [vmem:[%s6089_s6 + $0x58] sm:$0xff] }
 0xab5   :  { %v2731_v32 = vmul.f32 %v5511_v20, %v2722_v39 }
 0xab6   :  { %v2665_v34 = vsub.f32 1.5, %v2664_v28 }
 0xab7   :  { %v5526_v35 = vadd.f32 %v5515_v46, %v2731_v32  ;;  %v2838_v32 = vld [vmem:[%s6089_s6 + $0x50] sm:$0xff] }
 0xab8   :  { %v2666_v41 = vmul.f32 %v4514_v27, %v2665_v34 }
 0xab9   :  { %4227 = vmatmul.msk.f32.gmra.mxu0 %vm78_vm0, %v5526_v35 }
 0xaba   :  { %v2670_v55 = vsel %vm2669_vm11, %v4514_v27, %v2666_v41  ;;  %v2840_v27 = vld [vmem:[%s6089_s6 + $0x60] sm:$0xff] }
 0xabb   :  { %v2723_v5 = vmul.f32 %v2670_v55, %v5459_v2 }
 0xabd   :  { %v2732_v29 = vmul.f32 %v5511_v20, %v2723_v5  ;;  %v2837_v5 = vld [vmem:[%s6089_s6 + $0x48] sm:$0xff] }
 0xabf   :  { %v5533_v26 = vadd.f32 %v5515_v46, %v2732_v29 }
 0xac1   :  { %4228 = vmatmul.msk.f32.gmra.mxu0 %vm78_vm0, %v5533_v26 }
 0xac5   :  { %v2612_v12 = vpop.xlane.xlu2 %2611 }
 0xac6   :  { %v2628_v0 = vmul.f32 %v2612_v12, %v5441_v44 }
 0xac8   :  { %v2636_v10 = vadd.f32 1e-05, %v2628_v0  ;;  %v2836_v0 = vld [vmem:[%s6089_s6 + $0x40] sm:$0xff] }
 0xaca   :  { %4515 = vrsqrt.f32 %v2636_v10  ;;  %vm2677_vm13 = vweird.f32 %v2636_v10 }
 0xacd   :  { %v2615_v58 = vpop.xlane.xlu1 %2614 }
 0xace   :  { %v2629_v30 = vmul.f32 %v2615_v58, %v5441_v44 }
 0xad0   :  { %v4516_v49 = vpop.eup %4515  ;;  %v2637_v7 = vadd.f32 1e-05, %v2629_v30 }
 0xad1   :  { %v2672_v15 = vmul.f32 %v4516_v49, %v2636_v10  ;;  %vm2678_vm12 = vweird.f32 %v4516_v49 }
 0xad2   :  { %4517 = vrsqrt.f32 %v2637_v7  ;;  %vm2679_vm14 = vmor %vm2677_vm13, %vm2678_vm12  ;;  %vm2687_vm2 = vweird.f32 %v2637_v7 }
 0xad3   :  { %v2673_v2 = vmul.f32 %v4516_v49, %v2672_v15  ;;  %v2834_v15 = vld [vmem:[%s6089_s6 + $0x30] sm:$0xff] }
 0xad5   :  { %v2674_v1 = vmul.f32 0.5, %v2673_v2  ;;  %v2618_v14 = vpop.xlane.xlu0 %2617 }
 0xad6   :  { %v2630_v37 = vmul.f32 %v2618_v14, %v5441_v44 }
 0xad7   :  { %v2675_v56 = vsub.f32 1.5, %v2674_v1 }
 0xad8   :  { %v4518_v9 = vpop.eup %4517  ;;  %v2638_v4 = vadd.f32 1e-05, %v2630_v37  ;;  %v2833_v37 = vld [vmem:[%s6089_s6 + $0x28] sm:$0xff] }
 0xad9   :  { %v2676_v21 = vmul.f32 %v4516_v49, %v2675_v56  ;;  %v2682_v31 = vmul.f32 %v4518_v9, %v2637_v7  ;;  %vm2688_vm15 = vweird.f32 %v4518_v9 }
 0xada   :  { %4519 = vrsqrt.f32 %v2638_v4  ;;  %vm2689_vm3 = vmor %vm2687_vm2, %vm2688_vm15  ;;  %vm2697_vm5 = vweird.f32 %v2638_v4 }
 0xadb   :  { %v2680_v22 = vsel %vm2679_vm14, %v4516_v49, %v2676_v21  ;;  %v2683_v16 = vmul.f32 %v4518_v9, %v2682_v31 }
 0xadc   :  { %v2724_v42 = vmul.f32 %v2680_v22, %v5466_v48  ;;  %v2843_v48 = vld [vmem:[%s6089_s6 + $0x78] sm:$0xff] }
 0xadd   :  { %v2684_v36 = vmul.f32 0.5, %v2683_v16  ;;  %v2621_v17 = vpop.xlane.xlu2 %2620  ;;  %2845 = vmatpush.msrb.mxu1 %v2843_v48 }
 0xade   :  { %v2631_v19 = vmul.f32 %v2621_v17, %v5441_v44  ;;  %v2733_v47 = vmul.f32 %v5511_v20, %v2724_v42 }
 0xadf   :  { %v2685_v63 = vsub.f32 1.5, %v2684_v36  ;;  %2846 = vmatpush.msrb.mxu1 %v2842_v61 }
 0xae0   :  { %v4520_v18 = vpop.eup %4519  ;;  %v2639_v45 = vadd.f32 1e-05, %v2631_v19  ;;  %v5544_v53 = vadd.f32 %v5515_v46, %v2733_v47  ;;  %v2830_v19 = vld [vmem:[%s6089_s6 + $0x10] sm:$0xff]  ;;  %v2829_v47 = vld [vmem:[%s6089_s6 + $0x8] sm:$0xff] }
 0xae1   :  { %v2686_v25 = vmul.f32 %v4518_v9, %v2685_v63  ;;  %v2692_v11 = vmul.f32 %v4520_v18, %v2638_v4  ;;  %vm2698_vm4 = vweird.f32 %v4520_v18  ;;  %2847 = vmatpush.msrb.mxu1 %v2841_v50  ;;  %v2832_v4 = vld [vmem:[%s6089_s6 + $0x20] sm:$0xff] }
 0xae2   :  { %4521 = vrsqrt.f32 %v2639_v45  ;;  %4229 = vmatmul.msk.f32.gmra.mxu0 %vm78_vm0, %v5544_v53  ;;  %vm2699_vm6 = vmor %vm2697_vm5, %vm2698_vm4  ;;  %vm2707_vm8 = vweird.f32 %v2639_v45 }
 0xae3   :  { %v2690_v51 = vsel %vm2689_vm3, %v4518_v9, %v2686_v25  ;;  %v2693_v60 = vmul.f32 %v4520_v18, %v2692_v11  ;;  %2848 = vmatpush.msrb.mxu1 %v2840_v27 }
 0xae4   :  { %v2725_v40 = vmul.f32 %v2690_v51, %v5472_v8 }
 0xae5   :  { %v2694_v13 = vmul.f32 0.5, %v2693_v60  ;;  %v2624_v33 = vpop.xlane.xlu1 %2623  ;;  %2849 = vmatpush.msrb.mxu1 %v2839_v6 }
 0xae6   :  { %v2632_v23 = vmul.f32 %v2624_v33, %v5441_v44  ;;  %v2734_v52 = vmul.f32 %v5511_v20, %v2725_v40 }
 0xae7   :  { %v2695_v59 = vsub.f32 1.5, %v2694_v13  ;;  %2850 = vmatpush.msrb.mxu1 %v2838_v32 }
 0xae8   :  { %v4522_v62 = vpop.eup %4521  ;;  %v2640_v8 = vadd.f32 1e-05, %v2632_v23  ;;  %v5564_v3 = vadd.f32 %v5515_v46, %v2734_v52 }
 0xae9   :  { %v2696_v39 = vmul.f32 %v4520_v18, %v2695_v59  ;;  %v2702_v28 = vmul.f32 %v4522_v62, %v2639_v45  ;;  %vm2708_vm7 = vweird.f32 %v4522_v62  ;;  %2851 = vmatpush.msrb.mxu1 %v2837_v5 }
 0xaea   :  { %4523 = vrsqrt.f32 %v2640_v8  ;;  %4230 = vmatmul.msk.f32.gmra.mxu0 %vm78_vm0, %v5564_v3  ;;  %vm2709_vm9 = vmor %vm2707_vm8, %vm2708_vm7  ;;  %vm2717_vm11 = vweird.f32 %v2640_v8 }
 0xaeb   :  { %v2700_v34 = vsel %vm2699_vm6, %v4520_v18, %v2696_v39  ;;  %v2703_v41 = vmul.f32 %v4522_v62, %v2702_v28  ;;  %2852 = vmatpush.msrb.mxu1 %v2836_v0 }
 0xaec   :  { %v2726_v55 = vmul.f32 %v2700_v34, %v5478_v24  ;;  %v2835_v24 = vld [vmem:[%s6089_s6 + $0x38] sm:$0xff]  ;;  %v2844_v34 = vperm.slane %v5398_v38, 3 }
 0xaed   :  { %v2704_v29 = vmul.f32 0.5, %v2703_v41  ;;  %2853 = vmatpush.msrb.mxu1 %v2835_v24 }
 0xaee   :  { %v2735_v12 = vmul.f32 %v5511_v20, %v2726_v55 }
 0xaef   :  { %v2705_v10 = vsub.f32 1.5, %v2704_v29  ;;  %2854 = vmatpush.msrb.mxu1 %v2834_v15 }
 0xaf0   :  { %v4524_v58 = vpop.eup %4523  ;;  %v5583_v30 = vadd.f32 %v5515_v46, %v2735_v12 }
 0xaf1   :  { %v2706_v49 = vmul.f32 %v4522_v62, %v2705_v10  ;;  %v2712_v7 = vmul.f32 %v4524_v58, %v2640_v8  ;;  %vm2718_vm10 = vweird.f32 %v4524_v58  ;;  %2855 = vmatpush.msrb.mxu1 %v2833_v37 }
 0xaf2   :  { %4231 = vmatmul.msk.f32.gmra.mxu0 %vm78_vm0, %v5583_v30  ;;  %vm2719_vm12 = vmor %vm2717_vm11, %vm2718_vm10 }
 0xaf3   :  { %v2710_v2 = vsel %vm2709_vm9, %v4522_v62, %v2706_v49  ;;  %v2713_v1 = vmul.f32 %v4524_v58, %v2712_v7  ;;  %2856 = vmatpush.msrb.mxu1 %v2832_v4 }
 0xaf4   :  { %v2727_v14 = vmul.f32 %v2710_v2, %v5484_v57  ;;  %v2831_v57 = vld [vmem:[%s6089_s6 + $0x18] sm:$0xff] }
 0xaf5   :  { %v2714_v56 = vmul.f32 0.5, %v2713_v1  ;;  %2857 = vmatpush.msrb.mxu1 %v2831_v57 }
 0xaf6   :  { %v2736_v9 = vmul.f32 %v5511_v20, %v2727_v14 }
 0xaf7   :  { %v2715_v21 = vsub.f32 1.5, %v2714_v56  ;;  %2858 = vmatpush.msrb.mxu1 %v2830_v19 }
 0xaf8   :  { %v5602_v31 = vadd.f32 %v5515_v46, %v2736_v9 }
 0xaf9   :  { %v2716_v22 = vmul.f32 %v4524_v58, %v2715_v21  ;;  %2859 = vmatpush.msrb.mxu1 %v2829_v47 }
 0xafa   :  { %4232 = vmatmul.msk.f32.gmra.mxu0 %vm78_vm0, %v5602_v31 }
 0xafb   :  { %v2720_v16 = vsel %vm2719_vm12, %v4524_v58, %v2716_v22 }
 0xafc   :  { %v2728_v42 = vmul.f32 %v2720_v16, %v5490_v54  ;;  %v2828_v54 = vld [vmem:[%s6089_s6] sm:$0xff] }
 0xafd   :  { %2860 = vmatpush.msrb.mxu1 %v2828_v54 }
 0xafe   :  { %v2737_v36 = vmul.f32 %v5511_v20, %v2728_v42  ;;  %v4378_v20 = vld [vmem:[%s6088_s5] ss:$0 sm:$0xff] }
 0xb00   :  { %v5612_v17 = vadd.f32 %v5515_v46, %v2737_v36 }
 0xb02   :  { %4233 = vmatmul.msk.f32.gmra.mxu0 %vm78_vm0, %v5612_v17 }
 0xb2e   :  { %v2796_v46 = vpop.f32.mrf.mxu0 }
 0xb2f   :  { %v2797_v63 = vadd.f32 %v4378_v20, %v2796_v46 }
 0xb31   :  { %v2820_v18 = vmax.f32 %v2797_v63, 0.0 }
 0xb33   :  { %2861 = vmatmul.f32.vlgmr.msrb.gmra.mxu1 %v2820_v18 }
 0xb36   :  { %v2799_v45 = vpop.f32.mrf.mxu0 }
 0xb37   :  { %v2800_v25 = vadd.f32 %v4378_v20, %v2799_v45 }
 0xb39   :  { %v2821_v11 = vmax.f32 %v2800_v25, 0.0 }
 0xb3b   :  { %2864 = vmatmul.f32.gmra.mxu1 %v2821_v11 }
 0xb3e   :  { %v2802_v48 = vpop.f32.mrf.mxu0 }
 0xb3f   :  { %v2803_v61 = vadd.f32 %v4378_v20, %v2802_v48 }
 0xb41   :  { %v2822_v51 = vmax.f32 %v2803_v61, 0.0 }
 0xb43   :  { %2867 = vmatmul.f32.gmra.mxu1 %v2822_v51 }
 0xb5f   :  { %v2805_v60 = vpop.f32.mrf.mxu0 }
 0xb60   :  { %v2806_v40 = vadd.f32 %v4378_v20, %v2805_v60 }
 0xb62   :  { %v2823_v50 = vmax.f32 %v2806_v40, 0.0 }
 0xb64   :  { %2870 = vmatmul.f32.gmra.mxu1 %v2823_v50 }
 0xb67   :  { %v2808_v13 = vpop.f32.mrf.mxu0 }
 0xb68   :  { %v2809_v33 = vadd.f32 %v4378_v20, %v2808_v13 }
 0xb6a   :  { %v2824_v23 = vmax.f32 %v2809_v33, 0.0 }
 0xb6c   :  { %2873 = vmatmul.f32.gmra.mxu1 %v2824_v23 }
 0xb6f   :  { %v2811_v52 = vpop.f32.mrf.mxu0 }
 0xb70   :  { %v2812_v27 = vadd.f32 %v4378_v20, %v2811_v52 }
 0xb72   :  { %v2825_v59 = vmax.f32 %v2812_v27, 0.0 }
 0xb74   :  { %2876 = vmatmul.f32.gmra.mxu1 %v2825_v59 }
 0xb77   :  { %v2814_v62 = vpop.f32.mrf.mxu0 }
 0xb78   :  { %v2815_v8 = vadd.f32 %v4378_v20, %v2814_v62 }
 0xb7a   :  { %v2826_v6 = vmax.f32 %v2815_v8, 0.0 }
 0xb7c   :  { %2879 = vmatmul.f32.gmra.mxu1 %v2826_v6 }
 0xb7f   :  { %v2817_v39 = vpop.f32.mrf.mxu0 }
 0xb80   :  { %v2818_v28 = vadd.f32 %v4378_v20, %v2817_v39 }
 0xb82   :  { %v2827_v32 = vmax.f32 %v2818_v28, 0.0 }
 0xb84   :  { %2882 = vmatmul.f32.gmra.mxu1 %v2827_v32 }
 0xbb0   :  { %v2862_v41 = vpop.f32.mrf.mxu1 }
 0xbb1   :  { %v2863_v55 = vadd.f32 %v2862_v41, %v2844_v34 }
 0xbb3   :  { %v2886_v5 = vadd.f32 %v2863_v55, %v5519_v43 }
 0xbb5   :  { %v2894_v29 = vsel %vm78_vm0, %v2886_v5, 0.0 }
 0xbb6   :  { %2895 = vadd.xlane.f32.xlu0 %v2894_v29 }
 0xbb8   :  { %v2865_v12 = vpop.f32.mrf.mxu1 }
 0xbb9   :  { %v2866_v0 = vadd.f32 %v2865_v12, %v2844_v34 }
 0xbbb   :  { %v2887_v10 = vadd.f32 %v2866_v0, %v5526_v35 }
 0xbbd   :  { %v2897_v58 = vsel %vm78_vm0, %v2887_v10, 0.0 }
 0xbbe   :  { %2898 = vadd.xlane.f32.xlu2 %v2897_v58 }
 0xbc0   :  { %v2868_v24 = vpop.f32.mrf.mxu1 }
 0xbc1   :  { %v2869_v49 = vadd.f32 %v2868_v24, %v2844_v34 }
 0xbc3   :  { %v2888_v7 = vadd.f32 %v2869_v49, %v5533_v26 }
 0xbc5   :  { %v2900_v15 = vsel %vm78_vm0, %v2888_v7, 0.0 }
 0xbc6   :  { %2901 = vadd.xlane.f32.xlu1 %v2900_v15 }
 0xbe1   :  { %v2871_v2 = vpop.f32.mrf.mxu1 }
 0xbe2   :  { %v2872_v1 = vadd.f32 %v2871_v2, %v2844_v34 }
 0xbe4   :  { %v2889_v43 = vadd.f32 %v2872_v1, %v5544_v53 }
 0xbe6   :  { %v2903_v14 = vsel %vm78_vm0, %v2889_v43, 0.0 }
 0xbe7   :  { %2904 = vadd.xlane.f32.xlu0 %v2903_v14 }
 0xbe9   :  { %v2874_v37 = vpop.f32.mrf.mxu1 }
 0xbea   :  { %v2875_v56 = vadd.f32 %v2874_v37, %v2844_v34 }
 0xbec   :  { %v2890_v35 = vadd.f32 %v2875_v56, %v5564_v3 }
 0xbee   :  { %v2906_v9 = vsel %vm78_vm0, %v2890_v35, 0.0 }
 0xbef   :  { %2907 = vadd.xlane.f32.xlu2 %v2906_v9 }
 0xbf1   :  { %v2877_v4 = vpop.f32.mrf.mxu1 }
 0xbf2   :  { %v2878_v21 = vadd.f32 %v2877_v4, %v2844_v34 }
 0xbf4   :  { %v2891_v26 = vadd.f32 %v2878_v21, %v5583_v30 }
 0xbf6   :  { %v2909_v57 = vsel %vm78_vm0, %v2891_v26, 0.0 }
 0xbf7   :  { %2910 = vadd.xlane.f32.xlu1 %v2909_v57 }
 0xbf9   :  { %v2880_v22 = vpop.f32.mrf.mxu1 }
 0xbfa   :  { %v2881_v16 = vadd.f32 %v2880_v22, %v2844_v34 }
 0xbfc   :  { %v2892_v53 = vadd.f32 %v2881_v16, %v5602_v31 }
 0xbfe   :  { %v2912_v42 = vsel %vm78_vm0, %v2892_v53, 0.0 }
 0xbff   :  { %2913 = vadd.xlane.f32.xlu0 %v2912_v42  ;;  %v5697_v42 = vperm.slane %v5398_v38, 4 }
 0xc01   :  { %v2883_v36 = vpop.f32.mrf.mxu1 }
 0xc02   :  { %v2884_v19 = vadd.f32 %v2883_v36, %v2844_v34 }
 0xc04   :  { %v2893_v3 = vadd.f32 %v2884_v19, %v5612_v17 }
 0xc06   :  { %v2915_v47 = vsel %vm78_vm0, %v2893_v3, 0.0 }
 0xc07   :  { %2916 = vadd.xlane.f32.xlu2 %v2915_v47  ;;  %v5701_v47 = vperm.slane %v5398_v38, 5 }
 0xc29   :  { %v2896_v54 = vpop.xlane.xlu0 %2895 }
 0xc2a   :  { %v2918_v30 = vmul.f32 %v2896_v54, %v5441_v44 }
 0xc2c   :  { %v5646_v20 = vsub.f32 %v2886_v5, %v2918_v30 }
 0xc2e   :  { %v2934_v46 = vmul.f32 %v5646_v20, %v5646_v20 }
 0xc30   :  { %v2942_v31 = vsel %vm78_vm0, %v2934_v46, 0.0 }
 0xc31   :  { %v2899_v63 = vpop.xlane.xlu2 %2898  ;;  %2943 = vadd.xlane.f32.xlu1 %v2942_v31 }
 0xc32   :  { %v2919_v18 = vmul.f32 %v2899_v63, %v5441_v44 }
 0xc34   :  { %v5652_v45 = vsub.f32 %v2887_v10, %v2919_v18  ;;  %v5706_v18 = vperm.slane %v5398_v38, 6 }
 0xc36   :  { %v2935_v17 = vmul.f32 %v5652_v45, %v5652_v45 }
 0xc38   :  { %v2945_v25 = vsel %vm78_vm0, %v2935_v17, 0.0 }
 0xc39   :  { %2946 = vadd.xlane.f32.xlu0 %v2945_v25  ;;  %v2902_v11 = vpop.xlane.xlu1 %2901 }
 0xc3a   :  { %v2920_v48 = vmul.f32 %v2902_v11, %v5441_v44 }
 0xc3c   :  { %v5658_v61 = vsub.f32 %v2888_v7, %v2920_v48 }
 0xc3e   :  { %v2936_v51 = vmul.f32 %v5658_v61, %v5658_v61 }
 0xc40   :  { %v2948_v60 = vsel %vm78_vm0, %v2936_v51, 0.0 }
 0xc41   :  { %2949 = vadd.xlane.f32.xlu2 %v2948_v60 }
 0xc5a   :  { %v2905_v40 = vpop.xlane.xlu0 %2904 }
 0xc5b   :  { %v2921_v50 = vmul.f32 %v2905_v40, %v5441_v44 }
 0xc5d   :  { %v5664_v13 = vsub.f32 %v2889_v43, %v2921_v50 }
 0xc5f   :  { %v2937_v33 = vmul.f32 %v5664_v13, %v5664_v13 }
 0xc61   :  { %v2951_v23 = vsel %vm78_vm0, %v2937_v33, 0.0 }
 0xc62   :  { %2952 = vadd.xlane.f32.xlu1 %v2951_v23  ;;  %v2908_v52 = vpop.xlane.xlu2 %2907 }
 0xc63   :  { %v2922_v27 = vmul.f32 %v2908_v52, %v5441_v44 }
 0xc65   :  { %v5670_v59 = vsub.f32 %v2890_v35, %v2922_v27 }
 0xc67   :  { %v2938_v62 = vmul.f32 %v5670_v59, %v5670_v59 }
 0xc69   :  { %v2954_v8 = vsel %vm78_vm0, %v2938_v62, 0.0 }
 0xc6a   :  { %2955 = vadd.xlane.f32.xlu0 %v2954_v8  ;;  %v2911_v6 = vpop.xlane.xlu1 %2910 }
 0xc6b   :  { %v2923_v39 = vmul.f32 %v2911_v6, %v5441_v44 }
 0xc6d   :  { %v5676_v28 = vsub.f32 %v2891_v26, %v2923_v39 }
 0xc6f   :  { %v2939_v32 = vmul.f32 %v5676_v28, %v5676_v28 }
 0xc71   :  { %v2957_v34 = vsel %vm78_vm0, %v2939_v32, 0.0 }
 0xc72   :  { %v2914_v41 = vpop.xlane.xlu0 %2913  ;;  %2958 = vadd.xlane.f32.xlu2 %v2957_v34 }
 0xc73   :  { %v2924_v55 = vmul.f32 %v2914_v41, %v5441_v44 }
 0xc75   :  { %v5682_v5 = vsub.f32 %v2892_v53, %v2924_v55  ;;  %v4571_v55 = vld [vmem:[%s6083_s0 + $0x10] sm:$0xff] }
 0xc77   :  { %v2940_v29 = vmul.f32 %v5682_v5, %v5682_v5 }
 0xc79   :  { %v2960_v12 = vsel %vm78_vm0, %v2940_v29, 0.0 }
 0xc7a   :  { %2961 = vadd.xlane.f32.xlu1 %v2960_v12  ;;  %v2917_v0 = vpop.xlane.xlu2 %2916 }
 0xc7b   :  { %v2925_v10 = vmul.f32 %v2917_v0, %v5441_v44  ;;  %v3120_v0 = vld [vmem:[%s6092_s9 + $0x10] sm:$0xff] }
 0xc7d   :  { %v5688_v58 = vsub.f32 %v2893_v3, %v2925_v10 }
 0xc7f   :  { %v2941_v24 = vmul.f32 %v5688_v58, %v5688_v58 }
 0xc81   :  { %v2963_v49 = vsel %vm78_vm0, %v2941_v24, 0.0 }
 0xc82   :  { %2964 = vadd.xlane.f32.xlu0 %v2963_v49  ;;  %v3119_v49 = vld [vmem:[%s6092_s9 + $0x8] sm:$0xff] }
 0xca4   :  { %v2944_v7 = vpop.xlane.xlu1 %2943 }
 0xca5   :  { %v2966_v15 = vmul.f32 %v2944_v7, %v5441_v44 }
 0xca7   :  { %v2974_v2 = vadd.f32 1e-05, %v2966_v15  ;;  %v3118_v15 = vld [vmem:[%s6092_s9] sm:$0xff] }
 0xca9   :  { %4525 = vrsqrt.f32 %v2974_v2  ;;  %vm2988_vm14 = vweird.f32 %v2974_v2 }
 0xcac   :  { %v2947_v1 = vpop.xlane.xlu0 %2946 }
 0xcad   :  { %v2967_v43 = vmul.f32 %v2947_v1, %v5441_v44 }
 0xcaf   :  { %v4526_v14 = vpop.eup %4525  ;;  %v2975_v37 = vadd.f32 1e-05, %v2967_v43 }
 0xcb0   :  { %v2983_v56 = vmul.f32 %v4526_v14, %v2974_v2  ;;  %vm2989_vm13 = vweird.f32 %v4526_v14 }
 0xcb1   :  { %4527 = vrsqrt.f32 %v2975_v37  ;;  %vm2990_vm15 = vmor %vm2988_vm14, %vm2989_vm13  ;;  %vm2998_vm3 = vweird.f32 %v2975_v37 }
 0xcb2   :  { %v2984_v35 = vmul.f32 %v4526_v14, %v2983_v56 }
 0xcb4   :  { %v2985_v9 = vmul.f32 0.5, %v2984_v35  ;;  %v2950_v4 = vpop.xlane.xlu2 %2949 }
 0xcb5   :  { %v2968_v21 = vmul.f32 %v2950_v4, %v5441_v44 }
 0xcb6   :  { %v2986_v26 = vsub.f32 1.5, %v2985_v9 }
 0xcb7   :  { %v4528_v57 = vpop.eup %4527  ;;  %v2976_v22 = vadd.f32 1e-05, %v2968_v21 }
 0xcb8   :  { %v2987_v16 = vmul.f32 %v4526_v14, %v2986_v26  ;;  %v2993_v53 = vmul.f32 %v4528_v57, %v2975_v37  ;;  %vm2999_vm2 = vweird.f32 %v4528_v57 }
 0xcb9   :  { %4529 = vrsqrt.f32 %v2976_v22  ;;  %vm3000_vm4 = vmor %vm2998_vm3, %vm2999_vm2  ;;  %vm3008_vm6 = vweird.f32 %v2976_v22 }
 0xcba   :  { %v2991_v36 = vsel %vm2990_vm15, %v4526_v14, %v2987_v16  ;;  %v2994_v19 = vmul.f32 %v4528_v57, %v2993_v53 }
 0xcbb   :  { %v3062_v3 = vmul.f32 %v2991_v36, %v5646_v20  ;;  %v4569_v20 = vld [vmem:[%s6083_s0] sm:$0xff]  ;;  %v3101_v36 = vstv %s5753_s4 }
 0xcbc   :  { %v2995_v54 = vmul.f32 0.5, %v2994_v19 }
 0xcbd   :  { %v3071_v30 = vmul.f32 %v5697_v42, %v3062_v3 }
 0xcbe   :  { %v2996_v46 = vsub.f32 1.5, %v2995_v54 }
 0xcbf   :  { %v4530_v31 = vpop.eup %4529  ;;  %v3080_v63 = vadd.f32 %v5701_v47, %v3071_v30  ;;  %v3097_v30 = vstv %s5755_s1 }
 0xcc0   :  { %v2997_v17 = vmul.f32 %v4528_v57, %v2996_v46  ;;  %v3003_v25 = vmul.f32 %v4530_v31, %v2976_v22  ;;  %vm3009_vm5 = vweird.f32 %v4530_v31  ;;  %v3107_v46 = vstv %s5757_s18 }
 0xcc1   :  { %v5711_v11 = vadd.f32 %v4569_v20, %v3080_v63  ;;  %vm3010_vm7 = vmor %vm3008_vm6, %vm3009_vm5 }
 0xcc2   :  { %v3001_v48 = vsel %vm3000_vm4, %v4528_v57, %v2997_v17  ;;  %v3004_v51 = vmul.f32 %v4530_v31, %v3003_v25 }
 0xcc3   :  { %v3063_v60 = vmul.f32 %v3001_v48, %v5652_v45  ;;  %v3152_v40 = vmul.f32 %v5706_v18, %v5711_v11  ;;  %v4570_v45 = vld [vmem:[%s6083_s0 + $0x8] sm:$0xff] }
 0xcc4   :  { %v3005_v50 = vmul.f32 0.5, %v3004_v51 }
 0xcc5   :  { %v3072_v38 = vmul.f32 %v5697_v42, %v3063_v60  ;;  %v3160_v33 = vsel %vm78_vm0, %v3152_v40, 0.0  ;;  %v3098_v60 = vmul.f32 %v3097_v30, %v5711_v11 }
 0xcc6   :  { %v3006_v23 = vsub.f32 1.5, %v3005_v50  ;;  %3161 = vadd.xlane.f32.xlu2 %v3160_v33 }
 0xcc7   :  { %v3081_v52 = vadd.f32 %v5701_v47, %v3072_v38 }
 0xcc8   :  { %v3007_v27 = vmul.f32 %v4530_v31, %v3006_v23 }
 0xcc9   :  { %v5722_v62 = vadd.f32 %v4570_v45, %v3081_v52 }
 0xcca   :  { %v3011_v8 = vsel %vm3010_vm7, %v4530_v31, %v3007_v27  ;;  %v4572_v27 = vld [vmem:[%s6083_s0 + $0x18] sm:$0xff] }
 0xccb   :  { %v3064_v6 = vmul.f32 %v3011_v8, %v5658_v61  ;;  %v3153_v39 = vmul.f32 %v5706_v18, %v5722_v62  ;;  %v3121_v61 = vld [vmem:[%s6092_s9 + $0x18] sm:$0xff]  ;;  %s5760_s9 = sld [smem:[#allocation2 + $0x3]]  ;;  %v3102_v17 = vmul.f32 %v3101_v36, %v5722_v62 }
 0xccc   :  { %3140 = vmatpush.msra.mxu2 %v3121_v61 }
 0xccd   :  { %v3163_v32 = vsel %vm78_vm0, %v3153_v39, 0.0  ;;  %v3073_v34 = vmul.f32 %v5697_v42, %v3064_v6  ;;  %v3104_v52 = vadd.f32 %v3102_v17, %v3098_v60 }
 0xcce   :  { %3164 = vadd.xlane.f32.xlu1 %v3163_v32  ;;  %3141 = vmatpush.msra.mxu2 %v3120_v0 }
 0xccf   :  { %v3082_v41 = vadd.f32 %v5701_v47, %v3073_v34 }
 0xcd0   :  { %3142 = vmatpush.msra.mxu2 %v3119_v49 }
 0xcd1   :  { %v5733_v29 = vadd.f32 %v4571_v55, %v3082_v41  ;;  %v3113_v23 = vstv %s5760_s9 }
 0xcd2   :  { %3143 = vmatpush.msra.mxu2 %v3118_v15 }
 0xcd3   :  { %3477 = vmatpush.msrb.mxu3 %v5733_v29  ;;  %v3154_v12 = vmul.f32 %v5706_v18, %v5733_v29 }
 0xcd5   :  { %v2953_v10 = vpop.xlane.xlu1 %2952  ;;  %v3166_v24 = vsel %vm78_vm0, %v3154_v12, 0.0 }
 0xcd6   :  { %v2969_v7 = vmul.f32 %v2953_v10, %v5441_v44  ;;  %3167 = vadd.xlane.f32.xlu0 %v3166_v24 }
 0xcd8   :  { %v2977_v2 = vadd.f32 1e-05, %v2969_v7 }
 0xcda   :  { %4531 = vrsqrt.f32 %v2977_v2  ;;  %vm3018_vm9 = vweird.f32 %v2977_v2 }
 0xcdd   :  { %v2956_v1 = vpop.xlane.xlu0 %2955 }
 0xcde   :  { %v2970_v43 = vmul.f32 %v2956_v1, %v5441_v44 }
 0xce0   :  { %v4532_v14 = vpop.eup %4531  ;;  %v2978_v37 = vadd.f32 1e-05, %v2970_v43  ;;  %v4573_v43 = vld [vmem:[%s6083_s0 + $0x20] sm:$0xff] }
 0xce1   :  { %v3013_v56 = vmul.f32 %v4532_v14, %v2977_v2  ;;  %vm3019_vm8 = vweird.f32 %v4532_v14 }
 0xce2   :  { %4533 = vrsqrt.f32 %v2978_v37  ;;  %vm3020_vm10 = vmor %vm3018_vm9, %vm3019_vm8  ;;  %vm3028_vm12 = vweird.f32 %v2978_v37  ;;  %vm3195_vm9 = vcmask 1041409  }
 0xce3   :  { %v3014_v35 = vmul.f32 %v4532_v14, %v3013_v56 }
 0xce5   :  { %v3015_v9 = vmul.f32 0.5, %v3014_v35  ;;  %v2959_v4 = vpop.xlane.xlu2 %2958 }
 0xce6   :  { %v2971_v21 = vmul.f32 %v2959_v4, %v5441_v44 }
 0xce7   :  { %v3016_v26 = vsub.f32 1.5, %v3015_v9 }
 0xce8   :  { %v4534_v57 = vpop.eup %4533  ;;  %v2979_v22 = vadd.f32 1e-05, %v2971_v21 }
 0xce9   :  { %v3017_v16 = vmul.f32 %v4532_v14, %v3016_v26  ;;  %v3023_v53 = vmul.f32 %v4534_v57, %v2978_v37  ;;  %vm3029_vm11 = vweird.f32 %v4534_v57 }
 0xcea   :  { %4535 = vrsqrt.f32 %v2979_v22  ;;  %vm3030_vm13 = vmor %vm3028_vm12, %vm3029_vm11  ;;  %vm3038_vm15 = vweird.f32 %v2979_v22  ;;  %vm3199_vm11 = vcmask 1043459   ;;  %vm3205_vm12 = vcmask 1043456  }
 0xceb   :  { %v3021_v19 = vsel %vm3020_vm10, %v4532_v14, %v3017_v16  ;;  %v3024_v3 = vmul.f32 %v4534_v57, %v3023_v53  ;;  %vm3197_vm10 = vcmask 1042434  }
 0xcec   :  { %v3065_v54 = vmul.f32 %v3021_v19, %v5664_v13  ;;  %v3108_v13 = vmul.f32 %v3107_v46, %v5733_v29 }
 0xced   :  { %v3025_v31 = vmul.f32 0.5, %v3024_v3  ;;  %v2962_v63 = vpop.xlane.xlu1 %2961 }
 0xcee   :  { %v2972_v25 = vmul.f32 %v2962_v63, %v5441_v44  ;;  %v3074_v20 = vmul.f32 %v5697_v42, %v3065_v54  ;;  %v3110_v39 = vadd.f32 %v3108_v13, %v3104_v52 }
 0xcef   :  { %v3026_v48 = vsub.f32 1.5, %v3025_v31 }
 0xcf0   :  { %v4536_v51 = vpop.eup %4535  ;;  %v2980_v40 = vadd.f32 1e-05, %v2972_v25  ;;  %v3083_v50 = vadd.f32 %v5701_v47, %v3074_v20 }
 0xcf1   :  { %v3027_v38 = vmul.f32 %v4534_v57, %v3026_v48  ;;  %v3033_v33 = vmul.f32 %v4536_v51, %v2979_v22  ;;  %vm3039_vm14 = vweird.f32 %v4536_v51 }
 0xcf2   :  { %4537 = vrsqrt.f32 %v2980_v40  ;;  %v5782_v45 = vadd.f32 %v4572_v27, %v3083_v50  ;;  %vm3040_vm2 = vmor %vm3038_vm15, %vm3039_vm14  ;;  %vm3048_vm4 = vweird.f32 %v2980_v40 }
 0xcf3   :  { %v3031_v8 = vsel %vm3030_vm13, %v4534_v57, %v3027_v38  ;;  %v3034_v6 = vmul.f32 %v4536_v51, %v3033_v33  ;;  %vm3201_vm13 = vcmask 31744  }
 0xcf4   :  { %v3066_v32 = vmul.f32 %v3031_v8, %v5670_v59  ;;  %v3114_v34 = vmul.f32 %v3113_v23, %v5782_v45  ;;  %3497 = vmatpush.msra.mxu0 %v5782_v45  ;;  %v3155_v41 = vmul.f32 %v5706_v18, %v5782_v45 }
 0xcf5   :  { %v3035_v55 = vmul.f32 0.5, %v3034_v6  ;;  %v2965_v61 = vpop.xlane.xlu0 %2964 }
 0xcf6   :  { %v3075_v12 = vmul.f32 %v5697_v42, %v3066_v32  ;;  %v2973_v0 = vmul.f32 %v2965_v61, %v5441_v44  ;;  %v3169_v10 = vsel %vm78_vm0, %v3155_v41, 0.0  ;;  %v3116_v24 = vadd.f32 %v3114_v34, %v3110_v39  ;;  %v4576_v32 = vld [vmem:[%s6083_s0 + $0x38] sm:$0xff] }
 0xcf7   :  { %v3036_v49 = vsub.f32 1.5, %v3035_v55  ;;  %3170 = vadd.xlane.f32.xlu2 %v3169_v10 }
 0xcf8   :  { %v4538_v59 = vpop.eup %4537  ;;  %v2981_v7 = vadd.f32 1e-05, %v2973_v0  ;;  %4237 = vmatmul.msk.f32.vlgmr.msra.gmra.mxu2 %vm78_vm0, %v3116_v24  ;;  %v3084_v15 = vadd.f32 %v5701_v47, %v3075_v12 }
 0xcf9   :  { %v3037_v2 = vmul.f32 %v4536_v51, %v3036_v49  ;;  %v3043_v1 = vmul.f32 %v4538_v59, %v2980_v40  ;;  %vm3049_vm3 = vweird.f32 %v4538_v59 }
 0xcfa   :  { %4539 = vrsqrt.f32 %v2981_v7  ;;  %v5799_v14 = vadd.f32 %v4573_v43, %v3084_v15  ;;  %vm3050_vm5 = vmor %vm3048_vm4, %vm3049_vm3  ;;  %vm3058_vm7 = vweird.f32 %v2981_v7  ;;  %vm3803_vm3 = vcmask 1040384  }
 0xcfb   :  { %v3041_v37 = vsel %vm3040_vm2, %v4536_v51, %v3037_v2  ;;  %v3044_v56 = vmul.f32 %v4538_v59, %v3043_v1 }
 0xcfc   :  { %v3067_v35 = vmul.f32 %v3041_v37, %v5676_v28  ;;  %v3156_v9 = vmul.f32 %v5706_v18, %v5799_v14  ;;  %v4574_v28 = vld [vmem:[%s6083_s0 + $0x28] sm:$0xff]  ;;  %v3099_v39 = vmul.f32 %v3097_v30, %v5799_v14 }
 0xcfd   :  { %v3045_v4 = vmul.f32 0.5, %v3044_v56 }
 0xcfe   :  { %v3172_v21 = vsel %vm78_vm0, %v3156_v9, 0.0  ;;  %v3076_v26 = vmul.f32 %v5697_v42, %v3067_v35 }
 0xcff   :  { %v3046_v57 = vsub.f32 1.5, %v3045_v4  ;;  %3173 = vadd.xlane.f32.xlu1 %v3172_v21 }
 0xd00   :  { %v4540_v22 = vpop.eup %4539  ;;  %v3085_v16 = vadd.f32 %v5701_v47, %v3076_v26 }
 0xd01   :  { %v3047_v53 = vmul.f32 %v4538_v59, %v3046_v57  ;;  %v3053_v19 = vmul.f32 %v4540_v22, %v2981_v7  ;;  %vm3059_vm6 = vweird.f32 %v4540_v22 }
 0xd02   :  { %v5810_v3 = vadd.f32 %v4574_v28, %v3085_v16  ;;  %vm3060_vm8 = vmor %vm3058_vm7, %vm3059_vm6 }
 0xd03   :  { %v3051_v54 = vsel %vm3050_vm5, %v4538_v59, %v3047_v53  ;;  %v3054_v31 = vmul.f32 %v4540_v22, %v3053_v19  ;;  %v3184_v19 = vld [vmem:[%s6093_s10] sm:$0xff]  ;;  %vm3828_vm5 = vcmask 1046528  }
 0xd04   :  { %v3068_v63 = vmul.f32 %v3051_v54, %v5682_v5  ;;  %3540 = vmatpush.msra.mxu3 %v5810_v3  ;;  %v3157_v17 = vmul.f32 %v5706_v18, %v5810_v3  ;;  %v4575_v5 = vld [vmem:[%s6083_s0 + $0x30] sm:$0xff]  ;;  %v3103_v8 = vmul.f32 %v3101_v36, %v5810_v3 }
 0xd05   :  { %v3055_v25 = vmul.f32 0.5, %v3054_v31 }
 0xd06   :  { %v3175_v20 = vsel %vm78_vm0, %v3157_v17, 0.0  ;;  %v3077_v48 = vmul.f32 %v5697_v42, %v3068_v63 }
 0xd07   :  { %v3056_v51 = vsub.f32 1.5, %v3055_v25  ;;  %3176 = vadd.xlane.f32.xlu0 %v3175_v20  ;;  %v4243_v20 = vld [vmem:[%s6093_s10 + $0x8] sm:$0xff] }
 0xd08   :  { %v3086_v60 = vadd.f32 %v5701_v47, %v3077_v48 }
 0xd09   :  { %v3057_v13 = vmul.f32 %v4540_v22, %v3056_v51 }
 0xd0a   :  { %v5822_v40 = vadd.f32 %v4575_v5, %v3086_v60 }
 0xd0b   :  { %v3061_v50 = vsel %vm3060_vm8, %v4540_v22, %v3057_v13 }
 0xd0c   :  { %v3069_v38 = vmul.f32 %v3061_v50, %v5688_v58  ;;  %3560 = vmatpush.msrb.mxu0 %v5822_v40  ;;  %v3158_v33 = vmul.f32 %v5706_v18, %v5822_v40  ;;  %v3109_v58 = vmul.f32 %v3107_v46, %v5822_v40  ;;  %v3189_v46 = vlaneseq }
 0xd0e   :  { %v3078_v52 = vmul.f32 %v5697_v42, %v3069_v38  ;;  %v3178_v27 = vsel %vm78_vm0, %v3158_v33, 0.0  ;;  %v3105_v42 = vadd.f32 %v3103_v8, %v3099_v39  ;;  %v3190_v0 = vand.u32 127, %v3189_v46 }
 0xd0f   :  { %3179 = vadd.xlane.f32.xlu2 %v3178_v27 }
 0xd10   :  { %v3087_v6 = vadd.f32 %v5701_v47, %v3078_v52  ;;  %v3111_v36 = vadd.f32 %v3109_v58, %v3105_v42 }
 0xd12   :  { %v5843_v34 = vadd.f32 %v4576_v32, %v3087_v6 }
 0xd14   :  { %v3159_v41 = vmul.f32 %v5706_v18, %v5843_v34  ;;  %v3115_v47 = vmul.f32 %v3113_v23, %v5843_v34 }
 0xd16   :  { %v3181_v55 = vsel %vm78_vm0, %v3159_v41, 0.0  ;;  %v3117_v30 = vadd.f32 %v3115_v47, %v3111_v36 }
 0xd17   :  { %3182 = vadd.xlane.f32.xlu1 %v3181_v55 }
 0xd18   :  { %4238 = vmatmul.msk.f32.gmra.mxu2 %vm78_vm0, %v3117_v30 }
 0xd39   :  { %v3162_v61 = vpop.xlane.xlu2 %3161 }
 0xd3a   :  { %v3191_v59 = vperm.slane %v3162_v61, %v3190_v0 }
 0xd41   :  { %v3165_v12 = vpop.xlane.xlu1 %3164 }
 0xd42   :  { %v3192_v24 = vperm.slane %v3165_v12, %v3190_v0 }
 0xd44   :  { %v3196_v23 = vsel %vm3195_vm9, %v3192_v24, %v3191_v59 }
 0xd49   :  { %v3168_v10 = vpop.xlane.xlu0 %3167 }
 0xd4a   :  { %v3193_v49 = vperm.slane %v3168_v10, %v3190_v0 }
 0xd4c   :  { %v3198_v15 = vsel %vm3197_vm10, %v3193_v49, %v3196_v23 }
 0xd6a   :  { %v3171_v18 = vpop.xlane.xlu2 %3170 }
 0xd6b   :  { %v3194_v7 = vperm.slane %v3171_v18, %v3190_v0 }
 0xd6d   :  { %v3200_v2 = vsel %vm3199_vm11, %v3194_v7, %v3198_v15 }
 0xd6e   :  { %4239 = vmatpush.msk.msrb.mxu2 %vm3205_vm12, %v3200_v2 }
 0xd72   :  { %v3174_v43 = vpop.xlane.xlu1 %3173 }
 0xd73   :  { %v3232_v4 = vperm.slane %v3174_v43, %v3190_v0 }
 0xd7a   :  { %v3177_v37 = vpop.xlane.xlu0 %3176 }
 0xd7b   :  { %v3145_v1 = vpop.f32.mrf.mxu2  ;;  %v3233_v35 = vperm.slane %v3177_v37, %v3190_v0 }
 0xd7c   :  { %4240 = vmatmul.msk.f32.vlgmr.msrb.gmra.mxu2 %vm3201_vm13, %v3145_v1 }
 0xd7d   :  { %v3236_v26 = vsel %vm3195_vm9, %v3233_v35, %v3232_v4 }
 0xd82   :  { %v3180_v56 = vpop.xlane.xlu2 %3179 }
 0xd83   :  { %v3234_v9 = vperm.slane %v3180_v56, %v3190_v0 }
 0xd85   :  { %v3237_v22 = vsel %vm3197_vm10, %v3234_v9, %v3236_v26 }
 0xd8a   :  { %v3183_v21 = vpop.xlane.xlu1 %3182 }
 0xd8b   :  { %v3235_v57 = vperm.slane %v3183_v21, %v3190_v0 }
 0xd8d   :  { %v3238_v16 = vsel %vm3199_vm11, %v3235_v57, %v3237_v22 }
 0xd8e   :  { %4241 = vmatpush.msk.msra.mxu2 %vm3205_vm12, %v3238_v16 }
 0xd9b   :  { %v3148_v53 = vpop.f32.mrf.mxu2 }
 0xd9c   :  { %4242 = vmatmul.msk.f32.vlgmr.msra.gmra.mxu2 %vm3201_vm13, %v3148_v53 }
 0xdff   :  { %v3225_v28 = vpop.f32.mrf.mxu2 }
 0xe00   :  { %v3226_v54 = vadd.f32 %v3225_v28, %v3184_v19 }
 0xe02   :  { %v3264_v31 = vmul.f32 0.5, %v3226_v54 }
 0xe04   :  { %4541 = vtanh.f32 %v3264_v31 }
 0xe0a   :  { %v4542_v63 = vpop.eup %4541 }
 0xe0b   :  { %v3268_v17 = vadd.f32 1.0, %v4542_v63 }
 0xe0d   :  { %v3270_v25 = vmul.f32 0.5, %v3268_v17 }
 0xe0f   :  { %3292 = vmatpush.msrb.mxu2 %v3270_v25 }
 0xe10   :  { %4244 = vmatmul.msk.f32.vlgmr.msrb.gmra.mxu2 %vm151_vm1, %v4243_v20 }
 0xe1f   :  { %v3261_v48 = vpop.f32.mrf.mxu2 }
 0xe20   :  { %v3262_v51 = vadd.f32 %v3261_v48, %v3184_v19 }
 0xe22   :  { %v3265_v60 = vmul.f32 0.5, %v3262_v51 }
 0xe24   :  { %4543 = vtanh.f32 %v3265_v60 }
 0xe2a   :  { %v4544_v13 = vpop.eup %4543 }
 0xe2b   :  { %v3269_v5 = vadd.f32 1.0, %v4544_v13 }
 0xe2d   :  { %v3271_v50 = vmul.f32 0.5, %v3269_v5 }
 0xe2f   :  { %3312 = vmatpush.msra.mxu2 %v3271_v50 }
 0xe30   :  { %4245 = vmatmul.msk.f32.vlgmr.msra.gmra.mxu2 %vm151_vm1, %v4243_v20 }
 0xe31   :  { %3437 = vmatpush.msrb.mxu2 %v5711_v11 }
 0xe33   :  { %3457 = vmatpush.msra.mxu2 %v5722_v62 }
 0xe93   :  { %v3294_v38 = vpop.f32.mrf.mxu2 }
 0xe94   :  { %v3317_v33 = vsel %vm151_vm1, %v3294_v38, -inf }
 0xe95   :  { %v3318_v52 = vrot.slane %v3317_v33, 4 }
 0xe97   :  { %v3319_v27 = vmax.f32 %v3317_v33, %v3318_v52 }
 0xe99   :  { %v3320_v8 = vrot.slane %v3319_v27, 2 }
 0xe9b   :  { %v3321_v6 = vmax.f32 %v3319_v27, %v3320_v8 }
 0xe9d   :  { %v3322_v39 = vrot.slane %v3321_v6, 1 }
 0xe9f   :  { %v3323_v58 = vmax.f32 %v3321_v6, %v3322_v39 }
 0xea1   :  { %v3331_v32 = vsub.f32 %v3294_v38, %v3323_v58 }
 0xea3   :  { %v3333_v42 = vmul.f32 1.442695, %v3331_v32 }
 0xea5   :  { %4545 = vpow2.f32 %v3333_v42 }
 0xeab   :  { %v4546_v41 = vpop.eup %4545 }
 0xeac   :  { %v3337_v36 = vsel %vm151_vm1, %v4546_v41, 0.0 }
 0xead   :  { %v3338_v47 = vrot.slane %v3337_v36, 4 }
 0xeaf   :  { %v3339_v55 = vadd.f32 %v3338_v47, %v3337_v36 }
 0xeb1   :  { %v3340_v30 = vrot.slane %v3339_v55, 2 }
 0xeb3   :  { %v3341_v46 = vadd.f32 %v3340_v30, %v3339_v55  ;;  %v3314_v61 = vpop.f32.mrf.mxu2 }
 0xeb4   :  { %v3324_v12 = vsel %vm151_vm1, %v3314_v61, -inf }
 0xeb5   :  { %v3325_v0 = vrot.slane %v3324_v12, 4  ;;  %v3342_v10 = vrot.slane %v3341_v46, 1 }
 0xeb7   :  { %v3326_v24 = vmax.f32 %v3324_v12, %v3325_v0  ;;  %v3343_v49 = vadd.f32 %v3342_v10, %v3341_v46 }
 0xeb9   :  { %v3327_v59 = vrot.slane %v3326_v24, 2  ;;  %4547 = vrcp.f32 %v3343_v49 }
 0xebb   :  { %v3328_v18 = vmax.f32 %v3326_v24, %v3327_v59 }
 0xebd   :  { %v3329_v23 = vrot.slane %v3328_v18, 1 }
 0xebf   :  { %v4548_v7 = vpop.eup %4547  ;;  %v3330_v15 = vmax.f32 %v3328_v18, %v3329_v23 }
 0xec0   :  { %v3353_v2 = vmul.f32 %v4548_v7, %v4546_v41  ;;  %v4277_v7 = vld [vmem:[%s6094_s11 + $0x58] sm:$0xff] }
 0xec1   :  { %v3332_v1 = vsub.f32 %v3314_v61, %v3330_v15  ;;  %v4276_v15 = vld [vmem:[%s6094_s11 + $0x50] sm:$0xff]  ;;  %4009 = vmatpush.msra.mxu1 %v4277_v7 }
 0xec2   :  { %3355 = vxpose.xlu0.b32.start.end [1/1] (short) (narrow) %v3353_v2, 8 }
 0xec3   :  { %v3335_v43 = vmul.f32 1.442695, %v3332_v1  ;;  %4010 = vmatpush.msra.mxu1 %v4276_v15 }
 0xec5   :  { %4549 = vpow2.f32 %v3335_v43 }
 0xecb   :  { %v4550_v37 = vpop.eup %4549 }
 0xecc   :  { %v3344_v56 = vsel %vm151_vm1, %v4550_v37, 0.0 }
 0xecd   :  { %v3345_v35 = vrot.slane %v3344_v56, 4 }
 0xecf   :  { %v3346_v9 = vadd.f32 %v3345_v35, %v3344_v56 }
 0xed1   :  { %v3347_v4 = vrot.slane %v3346_v9, 2 }
 0xed3   :  { %v3348_v21 = vadd.f32 %v3347_v4, %v3346_v9 }
 0xed5   :  { %v3349_v26 = vrot.slane %v3348_v21, 1 }
 0xed7   :  { %v3350_v57 = vadd.f32 %v3349_v26, %v3348_v21 }
 0xed9   :  { %4551 = vrcp.f32 %v3350_v57 }
 0xedf   :  { %v4552_v22 = vpop.eup %4551 }
 0xee0   :  { %v3354_v16 = vmul.f32 %v4552_v22, %v4550_v37 }
 0xee2   :  { %3387 = vxpose.xlu2.b32.start.end [1/1] (short) (narrow) %v3354_v16, 8 }
 0xf66   :  { %v3371_v53 = vpop.trf.xlu0 }
 0xf67   :  { %4246 = vmatmul.msk.f32.vlgmr.msrb.gmra.mxu2 %vm151_vm1, %v3371_v53  ;;  %4248 = vmatmul.msk.f32.vlgmr.msrb.gmra.mxu3 %vm151_vm1, %v3371_v53 }
 0xf68   :  { %4249 = vmatmul.msk.f32.vlgmr.msra.gmra.mxu0 %vm151_vm1, %v3371_v53  ;;  %3520 = vmatpush.msrb.mxu2 %v5799_v14 }
 0xf6f   :  { %4247 = vmatmul.msk.f32.vlgmr.msra.gmra.mxu2 %vm151_vm1, %v3371_v53 }
 0xf70   :  { %3580 = vmatpush.msra.mxu2 %v5843_v34 }
 0xf7b   :  { %v3403_v19 = vpop.trf.xlu2 }
 0xf7c   :  { %4250 = vmatmul.msk.f32.vlgmr.msrb.gmra.mxu2 %vm151_vm1, %v3403_v19  ;;  %4251 = vmatmul.msk.f32.vlgmr.msra.gmra.mxu3 %vm151_vm1, %v3403_v19 }
 0xf7d   :  { %4252 = vmatmul.msk.f32.vlgmr.msrb.gmra.mxu0 %vm151_vm1, %v3403_v19 }
 0xf84   :  { %4253 = vmatmul.msk.f32.vlgmr.msra.gmra.mxu2 %vm151_vm1, %v3403_v19 }
 0xfe5   :  { %v3499_v63 = vpop.f32.mrf.mxu0 }
 0xfea   :  { %v3439_v28 = vpop.f32.mrf.mxu2  ;;  %v3479_v48 = vpop.f32.mrf.mxu3 }
 0xfeb   :  { %v3440_v54 = vadd.f32 %v3439_v28, %v5711_v11  ;;  %v3480_v51 = vadd.f32 %v3479_v48, %v5733_v29  ;;  %v3839_v48 = vld [vmem:[%s6094_s11 + $0x10] sm:$0xff] }
 0xfed   :  { %v3585_v31 = vsel %vm78_vm0, %v3440_v54, 0.0  ;;  %v3591_v11 = vsel %vm78_vm0, %v3480_v51, 0.0 }
 0xfee   :  { %3586 = vadd.xlane.f32.xlu1 %v3585_v31 }
 0xff2   :  { %v3459_v17 = vpop.f32.mrf.mxu2 }
 0xff3   :  { %v3460_v25 = vadd.f32 %v3459_v17, %v5722_v62  ;;  %v3500_v62 = vadd.f32 %v3499_v63, %v5782_v45  ;;  %v4257_v63 = vld [vmem:[%s6094_s11 + $0x38] sm:$0xff]  ;;  %v4256_v17 = vld [vmem:[%s6094_s11 + $0x30] sm:$0xff] }
 0xff4   :  { %3874 = vmatpush.msrb.mxu3 %v4257_v63 }
 0xff5   :  { %v3588_v20 = vsel %vm78_vm0, %v3460_v25, 0.0  ;;  %v3594_v29 = vsel %vm78_vm0, %v3500_v62, 0.0 }
 0xff6   :  { %3589 = vadd.xlane.f32.xlu1 %v3588_v20  ;;  %3875 = vmatpush.msrb.mxu3 %v4256_v17  ;;  %v4255_v20 = vld [vmem:[%s6094_s11 + $0x28] sm:$0xff] }
 0xff8   :  { %3876 = vmatpush.msrb.mxu3 %v4255_v20 }
 0xffa   :  { %v3562_v60 = vpop.f32.mrf.mxu0 }
 0xffb   :  { %v3563_v13 = vadd.f32 %v3562_v60, %v5822_v40  ;;  %v4275_v60 = vld [vmem:[%s6094_s11 + $0x48] sm:$0xff] }
 0xffc   :  { %4011 = vmatpush.msra.mxu1 %v4275_v60 }
 0xffd   :  { %v3603_v5 = vsel %vm78_vm0, %v3563_v13, 0.0 }
 0xffe   :  { %3604 = vadd.xlane.f32.xlu2 %v3603_v5  ;;  %3592 = vadd.xlane.f32.xlu1 %v3591_v11  ;;  %v4274_v5 = vld [vmem:[%s6094_s11 + $0x40] sm:$0xff] }
 0xfff   :  { %v3542_v50 = vpop.f32.mrf.mxu3  ;;  %v3522_v52 = vpop.f32.mrf.mxu2  ;;  %v3837_v11 = vld [vmem:[%s6094_s11] sm:$0xff]  ;;  %4012 = vmatpush.msra.mxu1 %v4274_v5 }
0x1000   :  { %v3543_v38 = vadd.f32 %v3542_v50, %v5810_v3  ;;  %v3523_v40 = vadd.f32 %v3522_v52, %v5799_v14 }
0x1002   :  { %v3600_v33 = vsel %vm78_vm0, %v3543_v38, 0.0  ;;  %v3597_v27 = vsel %vm78_vm0, %v3523_v40, 0.0 }
0x1003   :  { %3601 = vadd.xlane.f32.xlu0 %v3600_v33 }
0x1006   :  { %3595 = vadd.xlane.f32.xlu1 %v3594_v29 }
0x1007   :  { %v3582_v8 = vpop.f32.mrf.mxu2 }
0x1008   :  { %v3583_v6 = vadd.f32 %v3582_v8, %v5843_v34 }
0x100a   :  { %v3606_v39 = vsel %vm78_vm0, %v3583_v6, 0.0 }
0x100e   :  { %3598 = vadd.xlane.f32.xlu1 %v3597_v27 }
0x1016   :  { %3607 = vadd.xlane.f32.xlu1 %v3606_v39 }
0x1061   :  { %v3587_v3 = vpop.xlane.xlu1 %3586 }
0x1062   :  { %v3609_v45 = vmul.f32 %v3587_v3, %v5441_v44 }
0x1064   :  { %v5903_v58 = vsub.f32 %v3440_v54, %v3609_v45 }
0x1066   :  { %v3625_v32 = vmul.f32 %v5903_v58, %v5903_v58 }
0x1068   :  { %v3633_v42 = vsel %vm78_vm0, %v3625_v32, 0.0 }
0x1069   :  { %v3590_v14 = vpop.xlane.xlu1 %3589  ;;  %3634 = vadd.xlane.f32.xlu1 %v3633_v42 }
0x106a   :  { %v3610_v41 = vmul.f32 %v3590_v14, %v5441_v44  ;;  %v5992_v14 = vld [vmem:[%s6090_s7 + $0x8] sm:$0x3] }
0x106c   :  { %v5909_v36 = vsub.f32 %v3460_v25, %v3610_v41  ;;  %v3840_v25 = vld [vmem:[%s6094_s11 + $0x18] sm:$0xff] }
0x106d   :  { %3939 = vmatpush.msra.mxu0 %v3840_v25 }
0x106e   :  { %v3626_v34 = vmul.f32 %v5909_v36, %v5909_v36 }
0x106f   :  { %3940 = vmatpush.msra.mxu0 %v3839_v48 }
0x1070   :  { %v3636_v47 = vsel %vm78_vm0, %v3626_v34, 0.0 }
0x1071   :  { %v3593_v55 = vpop.xlane.xlu1 %3592  ;;  %3637 = vadd.xlane.f32.xlu1 %v3636_v47  ;;  %v3605_v9 = vpop.xlane.xlu2 %3604  ;;  %v4577_v47 = vld [vmem:[%s6090_s7] sm:$0xff]  ;;  %s4631_s7 = smov [#allocation5]  }
0x1072   :  { %v3611_v30 = vmul.f32 %v3593_v55, %v5441_v44  ;;  %v3615_v4 = vmul.f32 %v3605_v9, %v5441_v44  ;;  %v5997_v55 = vperm.slane %v4577_v47, 7  ;;  %s4075_s3 = sshll.u32 %s4631_s7, 4  ;;  %s4076_s3 = int_to_ptr.vmem [resolvable:$true] %s4075_s3 }
0x1074   :  { %v5915_v46 = vsub.f32 %v3480_v51, %v3611_v30  ;;  %v5944_v26 = vsub.f32 %v3563_v13, %v3615_v4  ;;  %v4254_v51 = vld [vmem:[%s6094_s11 + $0x20] sm:$0xff]  ;;  %v3838_v13 = vld [vmem:[%s6094_s11 + $0x8] sm:$0xff] }
0x1075   :  { %3877 = vmatpush.msrb.mxu3 %v4254_v51  ;;  %3941 = vmatpush.msra.mxu0 %v3838_v13 }
0x1076   :  { %v3627_v61 = vmul.f32 %v5915_v46, %v5915_v46  ;;  %v3602_v18 = vpop.xlane.xlu0 %3601  ;;  %v3631_v53 = vmul.f32 %v5944_v26, %v5944_v26 }
0x1077   :  { %v3614_v1 = vmul.f32 %v3602_v18, %v5441_v44  ;;  %3942 = vmatpush.msra.mxu0 %v3837_v11 }
0x1078   :  { %v3639_v12 = vsel %vm78_vm0, %v3627_v61, 0.0  ;;  %v3651_v28 = vsel %vm78_vm0, %v3631_v53, 0.0 }
0x1079   :  { %v3596_v0 = vpop.xlane.xlu1 %3595  ;;  %3640 = vadd.xlane.f32.xlu1 %v3639_v12  ;;  %v5938_v56 = vsub.f32 %v3543_v38, %v3614_v1  ;;  %v6000_v12 = vperm.slane %v5992_v14, 0 }
0x107a   :  { %v3612_v10 = vmul.f32 %v3596_v0, %v5441_v44 }
0x107b   :  { %v3630_v21 = vmul.f32 %v5938_v56, %v5938_v56 }
0x107c   :  { %v5921_v24 = vsub.f32 %v3500_v62, %v3612_v10 }
0x107d   :  { %v3648_v57 = vsel %vm78_vm0, %v3630_v21, 0.0 }
0x107e   :  { %v3628_v49 = vmul.f32 %v5921_v24, %v5921_v24 }
0x1080   :  { %v3642_v59 = vsel %vm78_vm0, %v3628_v49, 0.0 }
0x1081   :  { %3643 = vadd.xlane.f32.xlu1 %v3642_v59  ;;  %v3599_v23 = vpop.xlane.xlu1 %3598 }
0x1082   :  { %v3613_v2 = vmul.f32 %v3599_v23, %v5441_v44 }
0x1084   :  { %v5934_v43 = vsub.f32 %v3523_v40, %v3613_v2 }
0x1086   :  { %v3629_v37 = vmul.f32 %v5934_v43, %v5934_v43 }
0x1088   :  { %v3645_v35 = vsel %vm78_vm0, %v3629_v37, 0.0 }
0x1089   :  { %3646 = vadd.xlane.f32.xlu1 %v3645_v35  ;;  %v3608_v22 = vpop.xlane.xlu1 %3607 }
0x108a   :  { %v3616_v16 = vmul.f32 %v3608_v22, %v5441_v44 }
0x108c   :  { %v5950_v19 = vsub.f32 %v3583_v6, %v3616_v16 }
0x108e   :  { %v3632_v54 = vmul.f32 %v5950_v19, %v5950_v19 }
0x1090   :  { %v3654_v31 = vsel %vm78_vm0, %v3632_v54, 0.0 }
0x1091   :  { %3649 = vadd.xlane.f32.xlu1 %v3648_v57 }
0x1099   :  { %3652 = vadd.xlane.f32.xlu1 %v3651_v28 }
0x10a1   :  { %3655 = vadd.xlane.f32.xlu1 %v3654_v31 }
0x10dc   :  { %v3635_v50 = vpop.xlane.xlu1 %3634 }
0x10dd   :  { %v3657_v38 = vmul.f32 %v3635_v50, %v5441_v44 }
0x10df   :  { %v3665_v62 = vadd.f32 1e-05, %v3657_v38 }
0x10e1   :  { %4553 = vrsqrt.f32 %v3665_v62  ;;  %vm3679_vm14 = vweird.f32 %v3665_v62 }
0x10e4   :  { %v3638_v33 = vpop.xlane.xlu1 %3637 }
0x10e5   :  { %v3658_v52 = vmul.f32 %v3638_v33, %v5441_v44 }
0x10e7   :  { %v4554_v29 = vpop.eup %4553  ;;  %v3666_v40 = vadd.f32 1e-05, %v3658_v52 }
0x10e8   :  { %v3674_v27 = vmul.f32 %v4554_v29, %v3665_v62  ;;  %vm3680_vm1 = vweird.f32 %v4554_v29 }
0x10e9   :  { %4555 = vrsqrt.f32 %v3666_v40  ;;  %vm3681_vm15 = vmor %vm3679_vm14, %vm3680_vm1  ;;  %vm3689_vm4 = vweird.f32 %v3666_v40 }
0x10ea   :  { %v3675_v8 = vmul.f32 %v4554_v29, %v3674_v27 }
0x10ec   :  { %v3676_v6 = vmul.f32 0.5, %v3675_v8  ;;  %v3641_v39 = vpop.xlane.xlu1 %3640 }
0x10ed   :  { %v3659_v3 = vmul.f32 %v3641_v39, %v5441_v44 }
0x10ee   :  { %v3677_v45 = vsub.f32 1.5, %v3676_v6 }
0x10ef   :  { %v4556_v32 = vpop.eup %4555  ;;  %v3667_v42 = vadd.f32 1e-05, %v3659_v3 }
0x10f0   :  { %v3678_v41 = vmul.f32 %v4554_v29, %v3677_v45  ;;  %v3684_v34 = vmul.f32 %v4556_v32, %v3666_v40  ;;  %vm3690_vm2 = vweird.f32 %v4556_v32 }
0x10f1   :  { %4557 = vrsqrt.f32 %v3667_v42  ;;  %vm3691_vm6 = vmor %vm3689_vm4, %vm3690_vm2  ;;  %vm3699_vm8 = vweird.f32 %v3667_v42 }
0x10f2   :  { %v3682_v30 = vsel %vm3681_vm15, %v4554_v29, %v3678_v41  ;;  %v3685_v61 = vmul.f32 %v4556_v32, %v3684_v34 }
0x10f3   :  { %v3753_v0 = vmul.f32 %v3682_v30, %v5903_v58 }
0x10f4   :  { %v3686_v10 = vmul.f32 0.5, %v3685_v61  ;;  %v3644_v49 = vpop.xlane.xlu1 %3643 }
0x10f5   :  { %v3762_v59 = vmul.f32 %v5997_v55, %v3753_v0  ;;  %v3660_v18 = vmul.f32 %v3644_v49, %v5441_v44 }
0x10f6   :  { %v3687_v23 = vsub.f32 1.5, %v3686_v10 }
0x10f7   :  { %v4558_v7 = vpop.eup %4557  ;;  %v3771_v15 = vadd.f32 %v6000_v12, %v3762_v59  ;;  %v3668_v2 = vadd.f32 1e-05, %v3660_v18 }
0x10f8   :  { %v3688_v1 = vmul.f32 %v4556_v32, %v3687_v23  ;;  %v3694_v37 = vmul.f32 %v4558_v7, %v3667_v42  ;;  %vm3700_vm7 = vweird.f32 %v4558_v7 }
0x10f9   :  { %4559 = vrsqrt.f32 %v3668_v2  ;;  %4258 = vmatmul.msk.f32.vlgmr.msrb.gmra.mxu3 %vm78_vm0, %v3771_v15  ;;  %v3787_v58 = vrot.slane %v3771_v15, 7  ;;  %v3812_v35 = vrot.slane %v3771_v15, 1  ;;  %vm3701_vm9 = vmor %vm3699_vm8, %vm3700_vm7  ;;  %vm3709_vm11 = vweird.f32 %v3668_v2 }
0x10fa   :  { %v3692_v9 = vsel %vm3691_vm6, %v4556_v32, %v3688_v1  ;;  %v3695_v4 = vmul.f32 %v4558_v7, %v3694_v37 }
0x10fb   :  { %v3754_v21 = vmul.f32 %v3692_v9, %v5909_v36  ;;  %v3804_v57 = vsel %vm3803_vm3, 0.0, %v3787_v58  ;;  %v3829_v22 = vsel %vm3828_vm5, %v3812_v35, 0.0 }
0x10fc   :  { %v3696_v16 = vmul.f32 0.5, %v3695_v4  ;;  %4266 = vmatmul.msk.f32.vlgmr.msra.gmra.mxu0 %vm78_vm0, %v3804_v57  ;;  %4278 = vmatmul.msk.f32.vlgmr.msra.gmra.mxu1 %vm78_vm0, %v3829_v22  ;;  %v3647_v53 = vpop.xlane.xlu1 %3646 }
0x10fd   :  { %v3661_v28 = vmul.f32 %v3647_v53, %v5441_v44  ;;  %v3763_v54 = vmul.f32 %v5997_v55, %v3754_v21 }
0x10fe   :  { %v3697_v31 = vsub.f32 1.5, %v3696_v16 }
0x10ff   :  { %v4560_v63 = vpop.eup %4559  ;;  %v3669_v17 = vadd.f32 1e-05, %v3661_v28  ;;  %v3772_v36 = vadd.f32 %v6000_v12, %v3763_v54 }
0x1100   :  { %v3698_v25 = vmul.f32 %v4558_v7, %v3697_v31  ;;  %v3704_v20 = vmul.f32 %v4560_v63, %v3668_v2  ;;  %vm3710_vm10 = vweird.f32 %v4560_v63 }
0x1101   :  { %4561 = vrsqrt.f32 %v3669_v17  ;;  %4259 = vmatmul.msk.f32.gmra.mxu3 %vm78_vm0, %v3772_v36  ;;  %v3788_v48 = vrot.slane %v3772_v36, 7  ;;  %v3813_v51 = vrot.slane %v3772_v36, 1  ;;  %vm3711_vm12 = vmor %vm3709_vm11, %vm3710_vm10  ;;  %vm3719_vm1 = vweird.f32 %v3669_v17 }
0x1102   :  { %v3702_v60 = vsel %vm3701_vm9, %v4558_v7, %v3698_v25  ;;  %v3705_v13 = vmul.f32 %v4560_v63, %v3704_v20 }
0x1103   :  { %v3755_v5 = vmul.f32 %v3702_v60, %v5915_v46  ;;  %v3805_v11 = vsel %vm3803_vm3, 0.0, %v3788_v48  ;;  %v3830_v50 = vsel %vm3828_vm5, %v3813_v51, 0.0 }
0x1104   :  { %v3706_v38 = vmul.f32 0.5, %v3705_v13  ;;  %4267 = vmatmul.msk.f32.gmra.mxu0 %vm78_vm0, %v3805_v11  ;;  %4279 = vmatmul.msk.f32.gmra.mxu1 %vm78_vm0, %v3830_v50  ;;  %v3650_v62 = vpop.xlane.xlu1 %3649 }
0x1105   :  { %v3662_v33 = vmul.f32 %v3650_v62, %v5441_v44  ;;  %v3764_v52 = vmul.f32 %v5997_v55, %v3755_v5 }
0x1106   :  { %v3707_v29 = vsub.f32 1.5, %v3706_v38 }
0x1107   :  { %v4562_v40 = vpop.eup %4561  ;;  %v3670_v27 = vadd.f32 1e-05, %v3662_v33  ;;  %v3773_v46 = vadd.f32 %v6000_v12, %v3764_v52 }
0x1108   :  { %v3708_v8 = vmul.f32 %v4560_v63, %v3707_v29  ;;  %v3714_v6 = vmul.f32 %v4562_v40, %v3669_v17  ;;  %vm3720_vm13 = vweird.f32 %v4562_v40 }
0x1109   :  { %4563 = vrsqrt.f32 %v3670_v27  ;;  %4260 = vmatmul.msk.f32.gmra.mxu3 %vm78_vm0, %v3773_v46  ;;  %v3789_v39 = vrot.slane %v3773_v46, 7  ;;  %v3814_v3 = vrot.slane %v3773_v46, 1  ;;  %vm3721_vm14 = vmor %vm3719_vm1, %vm3720_vm13  ;;  %vm3729_vm2 = vweird.f32 %v3670_v27 }
0x110a   :  { %v3712_v45 = vsel %vm3711_vm12, %v4560_v63, %v3708_v8  ;;  %v3715_v32 = vmul.f32 %v4562_v40, %v3714_v6 }
0x110b   :  { %v3756_v42 = vmul.f32 %v3712_v45, %v5921_v24  ;;  %v3806_v41 = vsel %vm3803_vm3, 0.0, %v3789_v39  ;;  %v3831_v34 = vsel %vm3828_vm5, %v3814_v3, 0.0 }
0x110c   :  { %v3716_v47 = vmul.f32 0.5, %v3715_v32  ;;  %4268 = vmatmul.msk.f32.gmra.mxu0 %vm78_vm0, %v3806_v41  ;;  %4280 = vmatmul.msk.f32.gmra.mxu1 %vm78_vm0, %v3831_v34  ;;  %v3653_v30 = vpop.xlane.xlu1 %3652 }
0x110d   :  { %v3663_v61 = vmul.f32 %v3653_v30, %v5441_v44  ;;  %v3765_v0 = vmul.f32 %v5997_v55, %v3756_v42 }
0x110e   :  { %v3717_v10 = vsub.f32 1.5, %v3716_v47 }
0x110f   :  { %v4564_v49 = vpop.eup %4563  ;;  %v3671_v59 = vadd.f32 1e-05, %v3663_v61  ;;  %v3774_v24 = vadd.f32 %v6000_v12, %v3765_v0 }
0x1110   :  { %v3718_v18 = vmul.f32 %v4562_v40, %v3717_v10  ;;  %v3724_v23 = vmul.f32 %v4564_v49, %v3670_v27  ;;  %vm3730_vm15 = vweird.f32 %v4564_v49 }
0x1111   :  { %4565 = vrsqrt.f32 %v3671_v59  ;;  %4261 = vmatmul.msk.f32.gmra.mxu3 %vm78_vm0, %v3774_v24  ;;  %v3790_v7 = vrot.slane %v3774_v24, 7  ;;  %v3815_v15 = vrot.slane %v3774_v24, 1  ;;  %vm3731_vm4 = vmor %vm3729_vm2, %vm3730_vm15  ;;  %vm3739_vm7 = vweird.f32 %v3671_v59 }
0x1112   :  { %v3722_v2 = vsel %vm3721_vm14, %v4562_v40, %v3718_v18  ;;  %v3725_v1 = vmul.f32 %v4564_v49, %v3724_v23 }
0x1113   :  { %v3757_v37 = vmul.f32 %v3722_v2, %v5934_v43  ;;  %v3807_v58 = vsel %vm3803_vm3, 0.0, %v3790_v7  ;;  %v3832_v35 = vsel %vm3828_vm5, %v3815_v15, 0.0 }
0x1114   :  { %v3726_v9 = vmul.f32 0.5, %v3725_v1  ;;  %4269 = vmatmul.msk.f32.gmra.mxu0 %vm78_vm0, %v3807_v58  ;;  %4281 = vmatmul.msk.f32.gmra.mxu1 %vm78_vm0, %v3832_v35  ;;  %v3656_v4 = vpop.xlane.xlu1 %3655 }
0x1115   :  { %v3664_v21 = vmul.f32 %v3656_v4, %v5441_v44  ;;  %v3766_v57 = vmul.f32 %v5997_v55, %v3757_v37 }
0x1116   :  { %v3727_v22 = vsub.f32 1.5, %v3726_v9 }
0x1117   :  { %v4566_v16 = vpop.eup %4565  ;;  %v3672_v53 = vadd.f32 1e-05, %v3664_v21  ;;  %v3775_v43 = vadd.f32 %v6000_v12, %v3766_v57 }
0x1118   :  { %v3728_v28 = vmul.f32 %v4564_v49, %v3727_v22  ;;  %v3734_v54 = vmul.f32 %v4566_v16, %v3671_v59  ;;  %vm3740_vm6 = vweird.f32 %v4566_v16 }
0x1119   :  { %4567 = vrsqrt.f32 %v3672_v53  ;;  %4262 = vmatmul.msk.f32.gmra.mxu3 %vm78_vm0, %v3775_v43  ;;  %v3791_v31 = vrot.slane %v3775_v43, 7  ;;  %v3816_v63 = vrot.slane %v3775_v43, 1  ;;  %vm3741_vm8 = vmor %vm3739_vm7, %vm3740_vm6  ;;  %vm3749_vm10 = vweird.f32 %v3672_v53 }
0x111a   :  { %v3732_v17 = vsel %vm3731_vm4, %v4564_v49, %v3728_v28  ;;  %v3735_v36 = vmul.f32 %v4566_v16, %v3734_v54 }
0x111b   :  { %v3758_v44 = vmul.f32 %v3732_v17, %v5938_v56  ;;  %v3808_v25 = vsel %vm3803_vm3, 0.0, %v3791_v31  ;;  %v3833_v20 = vsel %vm3828_vm5, %v3816_v63, 0.0 }
0x111c   :  { %v3736_v48 = vmul.f32 0.5, %v3735_v36  ;;  %4270 = vmatmul.msk.f32.gmra.mxu0 %vm78_vm0, %v3808_v25  ;;  %4282 = vmatmul.msk.f32.gmra.mxu1 %vm78_vm0, %v3833_v20 }
0x111d   :  { %v3767_v51 = vmul.f32 %v5997_v55, %v3758_v44 }
0x111e   :  { %v3737_v60 = vsub.f32 1.5, %v3736_v48 }
0x111f   :  { %v4568_v13 = vpop.eup %4567  ;;  %v3776_v5 = vadd.f32 %v6000_v12, %v3767_v51 }
0x1120   :  { %v3738_v11 = vmul.f32 %v4566_v16, %v3737_v60  ;;  %v3744_v50 = vmul.f32 %v4568_v13, %v3672_v53  ;;  %vm3750_vm9 = vweird.f32 %v4568_v13 }
0x1121   :  { %4263 = vmatmul.msk.f32.gmra.mxu3 %vm78_vm0, %v3776_v5  ;;  %v3792_v56 = vrot.slane %v3776_v5, 7  ;;  %v3817_v38 = vrot.slane %v3776_v5, 1  ;;  %vm3751_vm11 = vmor %vm3749_vm10, %vm3750_vm9 }
0x1122   :  { %v3742_v62 = vsel %vm3741_vm8, %v4566_v16, %v3738_v11  ;;  %v3745_v33 = vmul.f32 %v4568_v13, %v3744_v50 }
0x1123   :  { %v3759_v52 = vmul.f32 %v3742_v62, %v5944_v26  ;;  %v3809_v29 = vsel %vm3803_vm3, 0.0, %v3792_v56  ;;  %v3834_v40 = vsel %vm3828_vm5, %v3817_v38, 0.0 }
0x1124   :  { %v3746_v27 = vmul.f32 0.5, %v3745_v33  ;;  %4271 = vmatmul.msk.f32.gmra.mxu0 %vm78_vm0, %v3809_v29  ;;  %4283 = vmatmul.msk.f32.gmra.mxu1 %vm78_vm0, %v3834_v40 }
0x1125   :  { %v3768_v46 = vmul.f32 %v5997_v55, %v3759_v52 }
0x1126   :  { %v3747_v8 = vsub.f32 1.5, %v3746_v27 }
0x1127   :  { %v3777_v6 = vadd.f32 %v6000_v12, %v3768_v46 }
0x1128   :  { %v3748_v39 = vmul.f32 %v4568_v13, %v3747_v8 }
0x1129   :  { %4264 = vmatmul.msk.f32.gmra.mxu3 %vm78_vm0, %v3777_v6  ;;  %v3793_v26 = vrot.slane %v3777_v6, 7  ;;  %v3818_v3 = vrot.slane %v3777_v6, 1 }
0x112a   :  { %v3752_v45 = vsel %vm3751_vm11, %v4568_v13, %v3748_v39 }
0x112b   :  { %v3760_v32 = vmul.f32 %v3752_v45, %v5950_v19  ;;  %v3810_v42 = vsel %vm3803_vm3, 0.0, %v3793_v26  ;;  %v3835_v41 = vsel %vm3828_vm5, %v3818_v3, 0.0 }
0x112c   :  { %4272 = vmatmul.msk.f32.gmra.mxu0 %vm78_vm0, %v3810_v42  ;;  %4284 = vmatmul.msk.f32.gmra.mxu1 %vm78_vm0, %v3835_v41 }
0x112d   :  { %v3769_v34 = vmul.f32 %v5997_v55, %v3760_v32  ;;  %v4046_v55 = vperm.slane %v5992_v14, 1 }
0x112f   :  { %v3778_v47 = vadd.f32 %v6000_v12, %v3769_v34 }
0x1131   :  { %4265 = vmatmul.msk.f32.gmra.mxu3 %vm78_vm0, %v3778_v47  ;;  %v3794_v30 = vrot.slane %v3778_v47, 7  ;;  %v3819_v61 = vrot.slane %v3778_v47, 1 }
0x1133   :  { %v3811_v0 = vsel %vm3803_vm3, 0.0, %v3794_v30  ;;  %v3836_v19 = vsel %vm3828_vm5, %v3819_v61, 0.0 }
0x1134   :  { %4273 = vmatmul.msk.f32.gmra.mxu0 %vm78_vm0, %v3811_v0  ;;  %4285 = vmatmul.msk.f32.gmra.mxu1 %vm78_vm0, %v3836_v19 }
0x1179   :  { %v3944_v10 = vpop.f32.mrf.mxu0  ;;  %v4014_v49 = vpop.f32.mrf.mxu1 }
0x117c   :  { %v3879_v59 = vpop.f32.mrf.mxu3 }
0x117d   :  { %v3945_v24 = vadd.f32 %v3944_v10, %v3879_v59 }
0x117f   :  { %v4038_v18 = vadd.f32 %v4014_v49, %v3945_v24 }
0x1181   :  { %v4047_v12 = vadd.f32 %v4046_v55, %v4038_v18  ;;  %v3947_v23 = vpop.f32.mrf.mxu0  ;;  %v4017_v7 = vpop.f32.mrf.mxu1 }
0x1183   :  { %v4055_v15 = vmax.f32 %v4047_v12, 0.0 }
0x1184   :  { %v3882_v2 = vpop.f32.mrf.mxu3 }
0x1185   :  { %4063 = vst.msk [vmem:[#allocation5] sm:$0xff] %vm78_vm0, %v4055_v15  ;;  %v3948_v1 = vadd.f32 %v3947_v23, %v3882_v2 }
0x1187   :  { %v4039_v37 = vadd.f32 %v4017_v7, %v3948_v1 }
0x1189   :  { %v4048_v58 = vadd.f32 %v4046_v55, %v4039_v37  ;;  %v3950_v35 = vpop.f32.mrf.mxu0  ;;  %v4020_v9 = vpop.f32.mrf.mxu1 }
0x118b   :  { %v4056_v4 = vmax.f32 %v4048_v58, 0.0 }
0x118c   :  { %v3885_v21 = vpop.f32.mrf.mxu3 }
0x118d   :  { %4064 = vst.msk [vmem:[#allocation5 + $0x8] sm:$0xff] %vm78_vm0, %v4056_v4  ;;  %v3951_v57 = vadd.f32 %v3950_v35, %v3885_v21 }
0x118f   :  { %v4040_v22 = vadd.f32 %v4020_v9, %v3951_v57 }
0x1191   :  { %v4049_v14 = vadd.f32 %v4046_v55, %v4040_v22  ;;  %v3953_v16 = vpop.f32.mrf.mxu0  ;;  %v4023_v53 = vpop.f32.mrf.mxu1 }
0x1193   :  { %v4057_v43 = vmax.f32 %v4049_v14, 0.0 }
0x1194   :  { %v3888_v28 = vpop.f32.mrf.mxu3 }
0x1195   :  { %4065 = vst.msk [vmem:[#allocation5 + $0x10] sm:$0xff] %vm78_vm0, %v4057_v43  ;;  %v3954_v54 = vadd.f32 %v3953_v16, %v3888_v28 }
0x1197   :  { %v4041_v31 = vadd.f32 %v4023_v53, %v3954_v54 }
0x1199   :  { %v4050_v63 = vadd.f32 %v4046_v55, %v4041_v31  ;;  %v3956_v17 = vpop.f32.mrf.mxu0  ;;  %v4026_v36 = vpop.f32.mrf.mxu1 }
0x119b   :  { %v4058_v44 = vmax.f32 %v4050_v63, 0.0 }
0x119c   :  { %v3891_v25 = vpop.f32.mrf.mxu3 }
0x119d   :  { %4066 = vst.msk [vmem:[#allocation5 + $0x18] sm:$0xff] %vm78_vm0, %v4058_v44  ;;  %v3957_v20 = vadd.f32 %v3956_v17, %v3891_v25 }
0x119f   :  { %v4042_v48 = vadd.f32 %v4026_v36, %v3957_v20 }
0x11a1   :  { %v4051_v51 = vadd.f32 %v4046_v55, %v4042_v48  ;;  %v3959_v60 = vpop.f32.mrf.mxu0  ;;  %v4029_v13 = vpop.f32.mrf.mxu1 }
0x11a3   :  { %v4059_v5 = vmax.f32 %v4051_v51, 0.0 }
0x11a4   :  { %v3894_v11 = vpop.f32.mrf.mxu3 }
0x11a5   :  { %4067 = vst.msk [vmem:[#allocation5 + $0x20] sm:$0xff] %vm78_vm0, %v4059_v5  ;;  %v3960_v50 = vadd.f32 %v3959_v60, %v3894_v11 }
0x11a7   :  { %v4043_v56 = vadd.f32 %v4029_v13, %v3960_v50 }
0x11a9   :  { %v4052_v38 = vadd.f32 %v4046_v55, %v4043_v56  ;;  %v3962_v62 = vpop.f32.mrf.mxu0  ;;  %v4032_v52 = vpop.f32.mrf.mxu1 }
0x11ab   :  { %v4060_v33 = vmax.f32 %v4052_v38, 0.0 }
0x11ac   :  { %v3897_v29 = vpop.f32.mrf.mxu3 }
0x11ad   :  { %4068 = vst.msk [vmem:[#allocation5 + $0x28] sm:$0xff] %vm78_vm0, %v4060_v33  ;;  %v3963_v40 = vadd.f32 %v3962_v62, %v3897_v29 }
0x11af   :  { %v4044_v27 = vadd.f32 %v4032_v52, %v3963_v40 }
0x11b1   :  { %v4053_v46 = vadd.f32 %v4046_v55, %v4044_v27  ;;  %v3965_v6 = vpop.f32.mrf.mxu0  ;;  %v4035_v3 = vpop.f32.mrf.mxu1 }
0x11b3   :  { %v4061_v8 = vmax.f32 %v4053_v46, 0.0 }
0x11b4   :  { %v3900_v39 = vpop.f32.mrf.mxu3 }
0x11b5   :  { %4069 = vst.msk [vmem:[#allocation5 + $0x30] sm:$0xff] %vm78_vm0, %v4061_v8  ;;  %v3966_v26 = vadd.f32 %v3965_v6, %v3900_v39 }
0x11b7   :  { %v4045_v45 = vadd.f32 %v4035_v3, %v3966_v26 }
0x11b9   :  { %v4054_v32 = vadd.f32 %v4046_v55, %v4045_v45 }
0x11bb   :  { %v4062_v42 = vmax.f32 %v4054_v32, 0.0 }
0x11bd   :  { %4070 = vst.msk [vmem:[#allocation5 + $0x38] sm:$0xff] %vm78_vm0, %v4062_v42 }
0x11be   :  { %4083 = dma.vmem_to_hbm [thread:$0]  %s4076_s3, 1024, %s4078_s29, [#allocation3], %s4632_s30, %s4632_s30, %s4633_s8  }
0x11bf   :  { %4616 = dma.done.wait [#allocation3], 1024  }
0x11c0   :  { %4617 = vsyncadd [#allocation3], 4294966272 }
0x11c1   :  { %4088 = vsyncpa [#allocation3], 1 }
0x11c2   :  { %4089 = vsyncpa [#allocation4], 1 }

</bundles_post_ra>
